<compile_context>
chip_gen: v5e
topology: v5e:2x2
jax: 0.10.0
libtpu: 0.0.40
codegen_flags: <defaults>
</compile_context>

<pallas_src>
import jax
import jax.numpy as jnp
from jax.experimental import pallas as pl
from jax.experimental.pallas import tpu as pltpu


def _zero_border(pad_ref, dt):
    """Zero the 1-pixel halo of a (H+2, W+2, C) VMEM scratch (4 thin stores)."""
    Hp, Wp, C = pad_ref.shape
    pad_ref[pl.ds(0, 1), :, :] = jnp.zeros((1, Wp, C), dt)
    pad_ref[pl.ds(Hp - 1, 1), :, :] = jnp.zeros((1, Wp, C), dt)
    pad_ref[:, pl.ds(0, 1), :] = jnp.zeros((Hp, 1, C), dt)
    pad_ref[:, pl.ds(Wp - 1, 1), :] = jnp.zeros((Hp, 1, C), dt)


def _conv3x3(pad_ref, w, b, H, W, C):
    """3x3 'same' conv as a single MXU matmul: (H*W, 9C) @ (9C, C), f32 accumulate."""
    taps = []
    for dh in range(3):          # tap order (dh, dw, cin) matches the wrapper-side
        for dw in range(3):      # weight reshape (3, 3, Cin, Cout) -> (9*Cin, Cout)
            taps.append(pad_ref[pl.ds(dh, H), pl.ds(dw, W), :].reshape(H * W, C))
    patch = jnp.concatenate(taps, axis=-1)                       # (H*W, 9C)
    acc = jnp.dot(patch, w, preferred_element_type=jnp.float32)  # one MXU pass
    return acc + b.astype(jnp.float32)                           # (H*W, C) f32


def _resblock_kernel(x_ref, w1_ref, b1_ref, w2_ref, b2_ref, out_ref,
                     xpad_ref, y1pad_ref):
    _, H, W, C = x_ref.shape
    cdt = xpad_ref.dtype            # MXU input dtype (f32, or bf16 if requested)

    # conv1: stage x into the zero-halo scratch, one matmul, ReLU in f32.
    _zero_border(xpad_ref, cdt)
    xpad_ref[pl.ds(1, H), pl.ds(1, W), :] = x_ref[0].astype(cdt)
    y1 = jnp.maximum(_conv3x3(xpad_ref, w1_ref[...], b1_ref[...], H, W, C), 0.0)

    # conv2 on y1 (kept entirely in VMEM - no HBM round trip), residual add in f32.
    _zero_border(y1pad_ref, cdt)
    y1pad_ref[pl.ds(1, H), pl.ds(1, W), :] = y1.reshape(H, W, C).astype(cdt)
    y2 = _conv3x3(y1pad_ref, w2_ref[...], b2_ref[...], H, W, C)
    out = y2 + x_ref[0].reshape(H * W, C).astype(jnp.float32)
    out_ref[0] = out.reshape(H, W, C).astype(out_ref.dtype)


def resblock_forward(x_nhwc, w1, b1, w2, b2, *, compute_dtype=None):
    """Fused ResBlock forward: x -> conv3x3 -> ReLU -> conv3x3 -> + x (stride 1, pad 1).

    x_nhwc: (N, H, W, C); w*: (3, 3, Cin, Cout) HWIO; b*: (C,) or (1, C).
    compute_dtype: optional MXU input dtype (e.g. jnp.bfloat16 on v6e/v7x);
    accumulation, bias, ReLU and the residual add always happen in float32.
    Output dtype matches the input dtype.
    """
    N, H, W, C = x_nhwc.shape
    out_dtype = x_nhwc.dtype
    cdt = jnp.dtype(compute_dtype) if compute_dtype is not None else jnp.dtype(out_dtype)

    # Fold the 3x3 taps into the contraction dim: (3,3,Cin,Cout) -> (9*Cin, Cout).
    w1f = w1.reshape(9 * C, C).astype(cdt)
    w2f = w2.reshape(9 * C, C).astype(cdt)
    b1f = b1.reshape(1, C).astype(jnp.float32)
    b2f = b2.reshape(1, C).astype(jnp.float32)

    flops = 2 * (2 * 9 * C * C * H * W) * N          # two 3x3 convs
    bytes_io = (2 * N * H * W * C) * jnp.dtype(out_dtype).itemsize \
        + (w1f.size + w2f.size) * cdt.itemsize + (b1f.size + b2f.size) * 4

    # TODO(synk): for production-size feature maps (e.g. 256x256x64) add a spatial
    # row-tile grid axis with a 2-row recomputed halo and lane-dense (rows, W*C)
    # output slabs; the whole-image-per-block form below targets small feature maps.
    return pl.pallas_call(
        _resblock_kernel,
        out_shape=jax.ShapeDtypeStruct((N, H, W, C), out_dtype),
        grid_spec=pltpu.PrefetchScalarGridSpec(
            num_scalar_prefetch=0,
            grid=(N,),
            in_specs=[
                pl.BlockSpec((1, H, W, C), lambda n: (n, 0, 0, 0)),
                pl.BlockSpec((9 * C, C), lambda n: (0, 0)),   # weights stay resident
                pl.BlockSpec((1, C), lambda n: (0, 0)),
                pl.BlockSpec((9 * C, C), lambda n: (0, 0)),
                pl.BlockSpec((1, C), lambda n: (0, 0)),
            ],
            out_specs=pl.BlockSpec((1, H, W, C), lambda n: (n, 0, 0, 0)),
            scratch_shapes=[
                pltpu.VMEM((H + 2, W + 2, C), cdt),   # zero-halo staging for x
                pltpu.VMEM((H + 2, W + 2, C), cdt),   # zero-halo staging for y1
            ],
        ),
        compiler_params=pltpu.CompilerParams(
            dimension_semantics=("parallel",),        # batch axis -> megacore / 2 TCs
            vmem_limit_bytes=48 * 1024 * 1024,        # explicit, fits v5e/v6e/v7x
        ),
        cost_estimate=pl.CostEstimate(
            flops=int(flops), transcendentals=0, bytes_accessed=int(bytes_io)),
    )(x_nhwc, w1f, b1f, w2f, b2f)


if __name__ == "__main__":
    # Small-shape stand-in for ResBlock(feature_channel=64, layer_num=2).
    N, H, W, C = 2, 16, 16, 8
    key = jax.random.PRNGKey(0)
    kx, kw1, kb1, kw2, kb2 = jax.random.split(key, 5)

    x = jax.random.normal(kx, (N, H, W, C), jnp.float32)

    # Conv2d-style uniform init bounds.
    fan_in = C * 3 * 3
    bound = 1.0 / (fan_in ** 0.5)
    w1 = jax.random.uniform(kw1, (3, 3, C, C), jnp.float32, -bound, bound)
    b1 = jax.random.uniform(kb1, (1, C), jnp.float32, -bound, bound)
    w2 = jax.random.uniform(kw2, (3, 3, C, C), jnp.float32, -bound, bound)
    b2 = jax.random.uniform(kb2, (1, C), jnp.float32, -bound, bound)

    out = jax.block_until_ready(resblock_forward(x, w1, b1, w2, b2))

    # Pure-JAX reference with identical semantics (NHWC view of the PyTorch module).
    def reference(a):
        conv = lambda z, w, b: jax.lax.conv_general_dilated(
            z, w, (1, 1), 'SAME',
            dimension_numbers=('NHWC', 'HWIO', 'NHWC')) + b.reshape(1, 1, 1, C)
        y = jax.nn.relu(conv(a, w1, b1))
        return conv(y, w2, b2) + a

    expected = reference(x)
    assert out.shape == (N, H, W, C)
    assert out.dtype == x.dtype
    assert jnp.allclose(out, expected, atol=1e-4, rtol=1e-4), "mismatch vs reference"
    print("KERNEL_OK")
</pallas_src>

<mosaic_0001>
module attributes {stable_mosaic.version = 11 : i64} {
  func.func @_resblock_kernel(%arg0: i32, %arg1: memref<1x16x16x8xf32, #tpu.memory_space<vmem>>, %arg2: memref<72x8xf32, #tpu.memory_space<vmem>>, %arg3: memref<1x8xf32, #tpu.memory_space<vmem>>, %arg4: memref<72x8xf32, #tpu.memory_space<vmem>>, %arg5: memref<1x8xf32, #tpu.memory_space<vmem>>, %arg6: memref<1x16x16x8xf32, #tpu.memory_space<vmem>>, %arg7: memref<18x18x8xf32, #tpu.memory_space<vmem>>, %arg8: memref<18x18x8xf32, #tpu.memory_space<vmem>>) attributes {dimension_semantics = [#tpu.dimension_semantics<parallel>], iteration_bounds = array<i64: 2>, scalar_prefetch = 0 : i64, scratch_operands = 2 : i64, tpu.core_type = #tpu.core_type<tc>, window_params = [{transform_indices = @transform_0, window_bounds = array<i64: 1, 16, 16, 8>}, {pipeline_mode = #tpu.pipeline_mode<synchronous>, transform_indices = @transform_1, window_bounds = array<i64: 72, 8>}, {pipeline_mode = #tpu.pipeline_mode<synchronous>, transform_indices = @transform_2, window_bounds = array<i64: 1, 8>}, {pipeline_mode = #tpu.pipeline_mode<synchronous>, transform_indices = @transform_3, window_bounds = array<i64: 72, 8>}, {pipeline_mode = #tpu.pipeline_mode<synchronous>, transform_indices = @transform_4, window_bounds = array<i64: 1, 8>}, {transform_indices = @transform_5, window_bounds = array<i64: 1, 16, 16, 8>}]} {
    %cst = arith.constant 0.000000e+00 : f32
    %0 = vector.broadcast %cst : f32 to vector<1x18x8xf32>
    %c0 = arith.constant 0 : index
    %c0_0 = arith.constant 0 : index
    %c0_1 = arith.constant 0 : index
    %1 = vector.load %arg7[%c0, %c0_0, %c0_1] : memref<18x18x8xf32, #tpu.memory_space<vmem>>, vector<1x18x8xf32>
    tpu.vector_store %arg7[%c0, %c0_0, %c0_1], %0 {strides = array<i32>} : memref<18x18x8xf32, #tpu.memory_space<vmem>>, vector<1x18x8xf32>,
    %cst_2 = arith.constant 0.000000e+00 : f32
    %2 = vector.broadcast %cst_2 : f32 to vector<1x18x8xf32>
    %c17 = arith.constant 17 : index
    %c0_3 = arith.constant 0 : index
    %c0_4 = arith.constant 0 : index
    %3 = vector.load %arg7[%c17, %c0_3, %c0_4] : memref<18x18x8xf32, #tpu.memory_space<vmem>>, vector<1x18x8xf32>
    tpu.vector_store %arg7[%c17, %c0_3, %c0_4], %2 {strides = array<i32>} : memref<18x18x8xf32, #tpu.memory_space<vmem>>, vector<1x18x8xf32>,
    %cst_5 = arith.constant 0.000000e+00 : f32
    %4 = vector.broadcast %cst_5 : f32 to vector<18x1x8xf32>
    %c0_6 = arith.constant 0 : index
    %c0_7 = arith.constant 0 : index
    %c0_8 = arith.constant 0 : index
    %5 = vector.load %arg7[%c0_6, %c0_7, %c0_8] : memref<18x18x8xf32, #tpu.memory_space<vmem>>, vector<18x1x8xf32>
    tpu.vector_store %arg7[%c0_6, %c0_7, %c0_8], %4 {strides = array<i32>} : memref<18x18x8xf32, #tpu.memory_space<vmem>>, vector<18x1x8xf32>,
    %cst_9 = arith.constant 0.000000e+00 : f32
    %6 = vector.broadcast %cst_9 : f32 to vector<18x1x8xf32>
    %c0_10 = arith.constant 0 : index
    %c17_11 = arith.constant 17 : index
    %c0_12 = arith.constant 0 : index
    %7 = vector.load %arg7[%c0_10, %c17_11, %c0_12] : memref<18x18x8xf32, #tpu.memory_space<vmem>>, vector<18x1x8xf32>
    tpu.vector_store %arg7[%c0_10, %c17_11, %c0_12], %6 {strides = array<i32>} : memref<18x18x8xf32, #tpu.memory_space<vmem>>, vector<18x1x8xf32>,
    %c0_13 = arith.constant 0 : index
    %c0_14 = arith.constant 0 : index
    %c0_15 = arith.constant 0 : index
    %c0_16 = arith.constant 0 : index
    %8 = vector.load %arg1[%c0_13, %c0_14, %c0_15, %c0_16] : memref<1x16x16x8xf32, #tpu.memory_space<vmem>>, vector<1x16x16x8xf32>
    %9 = vector.shape_cast %8 : vector<1x16x16x8xf32> to vector<16x16x8xf32>
    %c1 = arith.constant 1 : index
    %c1_17 = arith.constant 1 : index
    %c0_18 = arith.constant 0 : index
    %10 = vector.load %arg7[%c1, %c1_17, %c0_18] : memref<18x18x8xf32, #tpu.memory_space<vmem>>, vector<16x16x8xf32>
    tpu.vector_store %arg7[%c1, %c1_17, %c0_18], %9 {strides = array<i32>} : memref<18x18x8xf32, #tpu.memory_space<vmem>>, vector<16x16x8xf32>,
    %c0_19 = arith.constant 0 : index
    %c0_20 = arith.constant 0 : index
    %11 = vector.load %arg2[%c0_19, %c0_20] : memref<72x8xf32, #tpu.memory_space<vmem>>, vector<72x8xf32>
    %c0_21 = arith.constant 0 : index
    %c0_22 = arith.constant 0 : index
    %12 = vector.load %arg3[%c0_21, %c0_22] : memref<1x8xf32, #tpu.memory_space<vmem>>, vector<1x8xf32>
    %c0_23 = arith.constant 0 : index
    %c0_24 = arith.constant 0 : index
    %c0_25 = arith.constant 0 : index
    %13 = vector.load %arg7[%c0_23, %c0_24, %c0_25] : memref<18x18x8xf32, #tpu.memory_space<vmem>>, vector<16x16x8xf32>
    %14 = vector.shape_cast %13 : vector<16x16x8xf32> to vector<256x8xf32>
    %c0_26 = arith.constant 0 : index
    %c1_27 = arith.constant 1 : index
    %c0_28 = arith.constant 0 : index
    %15 = vector.load %arg7[%c0_26, %c1_27, %c0_28] : memref<18x18x8xf32, #tpu.memory_space<vmem>>, vector<16x16x8xf32>
    %16 = vector.shape_cast %15 : vector<16x16x8xf32> to vector<256x8xf32>
    %c0_29 = arith.constant 0 : index
    %c2 = arith.constant 2 : index
    %c0_30 = arith.constant 0 : index
    %17 = vector.load %arg7[%c0_29, %c2, %c0_30] : memref<18x18x8xf32, #tpu.memory_space<vmem>>, vector<16x16x8xf32>
    %18 = vector.shape_cast %17 : vector<16x16x8xf32> to vector<256x8xf32>
    %c1_31 = arith.constant 1 : index
    %c0_32 = arith.constant 0 : index
    %c0_33 = arith.constant 0 : index
    %19 = vector.load %arg7[%c1_31, %c0_32, %c0_33] : memref<18x18x8xf32, #tpu.memory_space<vmem>>, vector<16x16x8xf32>
    %20 = vector.shape_cast %19 : vector<16x16x8xf32> to vector<256x8xf32>
    %c1_34 = arith.constant 1 : index
    %c1_35 = arith.constant 1 : index
    %c0_36 = arith.constant 0 : index
    %21 = vector.load %arg7[%c1_34, %c1_35, %c0_36] : memref<18x18x8xf32, #tpu.memory_space<vmem>>, vector<16x16x8xf32>
    %22 = vector.shape_cast %21 : vector<16x16x8xf32> to vector<256x8xf32>
    %c1_37 = arith.constant 1 : index
    %c2_38 = arith.constant 2 : index
    %c0_39 = arith.constant 0 : index
    %23 = vector.load %arg7[%c1_37, %c2_38, %c0_39] : memref<18x18x8xf32, #tpu.memory_space<vmem>>, vector<16x16x8xf32>
    %24 = vector.shape_cast %23 : vector<16x16x8xf32> to vector<256x8xf32>
    %c2_40 = arith.constant 2 : index
    %c0_41 = arith.constant 0 : index
    %c0_42 = arith.constant 0 : index
    %25 = vector.load %arg7[%c2_40, %c0_41, %c0_42] : memref<18x18x8xf32, #tpu.memory_space<vmem>>, vector<16x16x8xf32>
    %26 = vector.shape_cast %25 : vector<16x16x8xf32> to vector<256x8xf32>
    %c2_43 = arith.constant 2 : index
    %c1_44 = arith.constant 1 : index
    %c0_45 = arith.constant 0 : index
    %27 = vector.load %arg7[%c2_43, %c1_44, %c0_45] : memref<18x18x8xf32, #tpu.memory_space<vmem>>, vector<16x16x8xf32>
    %28 = vector.shape_cast %27 : vector<16x16x8xf32> to vector<256x8xf32>
    %c2_46 = arith.constant 2 : index
    %c2_47 = arith.constant 2 : index
    %c0_48 = arith.constant 0 : index
    %29 = vector.load %arg7[%c2_46, %c2_47, %c0_48] : memref<18x18x8xf32, #tpu.memory_space<vmem>>, vector<16x16x8xf32>
    %30 = vector.shape_cast %29 : vector<16x16x8xf32> to vector<256x8xf32>
    %31 = tpu.concatenate %14, %16, %18, %20, %22, %24, %26, %28, %30 in 1 : vector<256x8xf32>, vector<256x8xf32>, vector<256x8xf32>, vector<256x8xf32>, vector<256x8xf32>, vector<256x8xf32>, vector<256x8xf32>, vector<256x8xf32>, vector<256x8xf32> -> vector<256x72xf32>
    %cst_49 = arith.constant dense<0.000000e+00> : vector<256x8xf32>
    %32 = tpu.matmul %31, %11, %cst_49 {dimension_numbers = #tpu.dot_dimension_numbers<[1], [0], [0], [1], [0, 0, 1, 1], [], []>} : vector<256x72xf32>, vector<72x8xf32>, vector<256x8xf32> -> vector<256x8xf32>
    %33 = vector.broadcast %12 : vector<1x8xf32> to vector<256x8xf32>
    %34 = arith.addf %32, %33 : vector<256x8xf32>
    %cst_50 = arith.constant 0.000000e+00 : f32
    %35 = vector.broadcast %cst_50 : f32 to vector<256x8xf32>
    %36 = arith.maximumf %34, %35 : vector<256x8xf32>
    %cst_51 = arith.constant 0.000000e+00 : f32
    %37 = vector.broadcast %cst_51 : f32 to vector<1x18x8xf32>
    %c0_52 = arith.constant 0 : index
    %c0_53 = arith.constant 0 : index
    %c0_54 = arith.constant 0 : index
    %38 = vector.load %arg8[%c0_52, %c0_53, %c0_54] : memref<18x18x8xf32, #tpu.memory_space<vmem>>, vector<1x18x8xf32>
    tpu.vector_store %arg8[%c0_52, %c0_53, %c0_54], %37 {strides = array<i32>} : memref<18x18x8xf32, #tpu.memory_space<vmem>>, vector<1x18x8xf32>,
    %cst_55 = arith.constant 0.000000e+00 : f32
    %39 = vector.broadcast %cst_55 : f32 to vector<1x18x8xf32>
    %c17_56 = arith.constant 17 : index
    %c0_57 = arith.constant 0 : index
    %c0_58 = arith.constant 0 : index
    %40 = vector.load %arg8[%c17_56, %c0_57, %c0_58] : memref<18x18x8xf32, #tpu.memory_space<vmem>>, vector<1x18x8xf32>
    tpu.vector_store %arg8[%c17_56, %c0_57, %c0_58], %39 {strides = array<i32>} : memref<18x18x8xf32, #tpu.memory_space<vmem>>, vector<1x18x8xf32>,
    %cst_59 = arith.constant 0.000000e+00 : f32
    %41 = vector.broadcast %cst_59 : f32 to vector<18x1x8xf32>
    %c0_60 = arith.constant 0 : index
    %c0_61 = arith.constant 0 : index
    %c0_62 = arith.constant 0 : index
    %42 = vector.load %arg8[%c0_60, %c0_61, %c0_62] : memref<18x18x8xf32, #tpu.memory_space<vmem>>, vector<18x1x8xf32>
    tpu.vector_store %arg8[%c0_60, %c0_61, %c0_62], %41 {strides = array<i32>} : memref<18x18x8xf32, #tpu.memory_space<vmem>>, vector<18x1x8xf32>,
    %cst_63 = arith.constant 0.000000e+00 : f32
    %43 = vector.broadcast %cst_63 : f32 to vector<18x1x8xf32>
    %c0_64 = arith.constant 0 : index
    %c17_65 = arith.constant 17 : index
    %c0_66 = arith.constant 0 : index
    %44 = vector.load %arg8[%c0_64, %c17_65, %c0_66] : memref<18x18x8xf32, #tpu.memory_space<vmem>>, vector<18x1x8xf32>
    tpu.vector_store %arg8[%c0_64, %c17_65, %c0_66], %43 {strides = array<i32>} : memref<18x18x8xf32, #tpu.memory_space<vmem>>, vector<18x1x8xf32>,
    %45 = vector.shape_cast %36 : vector<256x8xf32> to vector<16x16x8xf32>
    %c1_67 = arith.constant 1 : index
    %c1_68 = arith.constant 1 : index
    %c0_69 = arith.constant 0 : index
    %46 = vector.load %arg8[%c1_67, %c1_68, %c0_69] : memref<18x18x8xf32, #tpu.memory_space<vmem>>, vector<16x16x8xf32>
    tpu.vector_store %arg8[%c1_67, %c1_68, %c0_69], %45 {strides = array<i32>} : memref<18x18x8xf32, #tpu.memory_space<vmem>>, vector<16x16x8xf32>,
    %c0_70 = arith.constant 0 : index
    %c0_71 = arith.constant 0 : index
    %47 = vector.load %arg4[%c0_70, %c0_71] : memref<72x8xf32, #tpu.memory_space<vmem>>, vector<72x8xf32>
    %c0_72 = arith.constant 0 : index
    %c0_73 = arith.constant 0 : index
    %48 = vector.load %arg5[%c0_72, %c0_73] : memref<1x8xf32, #tpu.memory_space<vmem>>, vector<1x8xf32>
    %c0_74 = arith.constant 0 : index
    %c0_75 = arith.constant 0 : index
    %c0_76 = arith.constant 0 : index
    %49 = vector.load %arg8[%c0_74, %c0_75, %c0_76] : memref<18x18x8xf32, #tpu.memory_space<vmem>>, vector<16x16x8xf32>
    %50 = vector.shape_cast %49 : vector<16x16x8xf32> to vector<256x8xf32>
    %c0_77 = arith.constant 0 : index
    %c1_78 = arith.constant 1 : index
    %c0_79 = arith.constant 0 : index
    %51 = vector.load %arg8[%c0_77, %c1_78, %c0_79] : memref<18x18x8xf32, #tpu.memory_space<vmem>>, vector<16x16x8xf32>
    %52 = vector.shape_cast %51 : vector<16x16x8xf32> to vector<256x8xf32>
    %c0_80 = arith.constant 0 : index
    %c2_81 = arith.constant 2 : index
    %c0_82 = arith.constant 0 : index
    %53 = vector.load %arg8[%c0_80, %c2_81, %c0_82] : memref<18x18x8xf32, #tpu.memory_space<vmem>>, vector<16x16x8xf32>
    %54 = vector.shape_cast %53 : vector<16x16x8xf32> to vector<256x8xf32>
    %c1_83 = arith.constant 1 : index
    %c0_84 = arith.constant 0 : index
    %c0_85 = arith.constant 0 : index
    %55 = vector.load %arg8[%c1_83, %c0_84, %c0_85] : memref<18x18x8xf32, #tpu.memory_space<vmem>>, vector<16x16x8xf32>
    %56 = vector.shape_cast %55 : vector<16x16x8xf32> to vector<256x8xf32>
    %c1_86 = arith.constant 1 : index
    %c1_87 = arith.constant 1 : index
    %c0_88 = arith.constant 0 : index
    %57 = vector.load %arg8[%c1_86, %c1_87, %c0_88] : memref<18x18x8xf32, #tpu.memory_space<vmem>>, vector<16x16x8xf32>
    %58 = vector.shape_cast %57 : vector<16x16x8xf32> to vector<256x8xf32>
    %c1_89 = arith.constant 1 : index
    %c2_90 = arith.constant 2 : index
    %c0_91 = arith.constant 0 : index
    %59 = vector.load %arg8[%c1_89, %c2_90, %c0_91] : memref<18x18x8xf32, #tpu.memory_space<vmem>>, vector<16x16x8xf32>
    %60 = vector.shape_cast %59 : vector<16x16x8xf32> to vector<256x8xf32>
    %c2_92 = arith.constant 2 : index
    %c0_93 = arith.constant 0 : index
    %c0_94 = arith.constant 0 : index
    %61 = vector.load %arg8[%c2_92, %c0_93, %c0_94] : memref<18x18x8xf32, #tpu.memory_space<vmem>>, vector<16x16x8xf32>
    %62 = vector.shape_cast %61 : vector<16x16x8xf32> to vector<256x8xf32>
    %c2_95 = arith.constant 2 : index
    %c1_96 = arith.constant 1 : index
    %c0_97 = arith.constant 0 : index
    %63 = vector.load %arg8[%c2_95, %c1_96, %c0_97] : memref<18x18x8xf32, #tpu.memory_space<vmem>>, vector<16x16x8xf32>
    %64 = vector.shape_cast %63 : vector<16x16x8xf32> to vector<256x8xf32>
    %c2_98 = arith.constant 2 : index
    %c2_99 = arith.constant 2 : index
    %c0_100 = arith.constant 0 : index
    %65 = vector.load %arg8[%c2_98, %c2_99, %c0_100] : memref<18x18x8xf32, #tpu.memory_space<vmem>>, vector<16x16x8xf32>
    %66 = vector.shape_cast %65 : vector<16x16x8xf32> to vector<256x8xf32>
    %67 = tpu.concatenate %50, %52, %54, %56, %58, %60, %62, %64, %66 in 1 : vector<256x8xf32>, vector<256x8xf32>, vector<256x8xf32>, vector<256x8xf32>, vector<256x8xf32>, vector<256x8xf32>, vector<256x8xf32>, vector<256x8xf32>, vector<256x8xf32> -> vector<256x72xf32>
    %cst_101 = arith.constant dense<0.000000e+00> : vector<256x8xf32>
    %68 = tpu.matmul %67, %47, %cst_101 {dimension_numbers = #tpu.dot_dimension_numbers<[1], [0], [0], [1], [0, 0, 1, 1], [], []>} : vector<256x72xf32>, vector<72x8xf32>, vector<256x8xf32> -> vector<256x8xf32>
    %69 = vector.broadcast %48 : vector<1x8xf32> to vector<256x8xf32>
    %70 = arith.addf %68, %69 : vector<256x8xf32>
    %c0_102 = arith.constant 0 : index
    %c0_103 = arith.constant 0 : index
    %c0_104 = arith.constant 0 : index
    %c0_105 = arith.constant 0 : index
    %71 = vector.load %arg1[%c0_102, %c0_103, %c0_104, %c0_105] : memref<1x16x16x8xf32, #tpu.memory_space<vmem>>, vector<1x16x16x8xf32>
    %72 = vector.shape_cast %71 : vector<1x16x16x8xf32> to vector<16x16x8xf32>
    %73 = vector.shape_cast %72 : vector<16x16x8xf32> to vector<256x8xf32>
    %74 = arith.addf %70, %73 : vector<256x8xf32>
    %75 = vector.shape_cast %74 : vector<256x8xf32> to vector<16x16x8xf32>
    %c0_106 = arith.constant 0 : index
    %c0_107 = arith.constant 0 : index
    %c0_108 = arith.constant 0 : index
    %c0_109 = arith.constant 0 : index
    %76 = vector.load %arg6[%c0_106, %c0_107, %c0_108, %c0_109] : memref<1x16x16x8xf32, #tpu.memory_space<vmem>>, vector<1x16x16x8xf32>
    %77 = vector.shape_cast %76 : vector<1x16x16x8xf32> to vector<16x16x8xf32>
    %78 = vector.shape_cast %75 : vector<16x16x8xf32> to vector<1x16x16x8xf32>
    tpu.vector_store %arg6[%c0_106, %c0_107, %c0_108, %c0_109], %78 {strides = array<i32>} : memref<1x16x16x8xf32, #tpu.memory_space<vmem>>, vector<1x16x16x8xf32>,
    return
  }
  func.func @transform_0(%arg0: i32) -> (i32, i32, i32, i32) {
    %c0_i32 = arith.constant 0 : i32
    %c0_i32_0 = arith.constant 0 : i32
    %c0_i32_1 = arith.constant 0 : i32
    %c0_i32_2 = arith.constant 0 : i32
    return %arg0, %c0_i32, %c0_i32_0, %c0_i32_1 : i32, i32, i32, i32
  }
  func.func @transform_1(%arg0: i32) -> (i32, i32) {
    %c0_i32 = arith.constant 0 : i32
    %c0_i32_0 = arith.constant 0 : i32
    %c0_i32_1 = arith.constant 0 : i32
    return %c0_i32, %c0_i32_0 : i32, i32
  }
  func.func @transform_2(%arg0: i32) -> (i32, i32) {
    %c0_i32 = arith.constant 0 : i32
    %c0_i32_0 = arith.constant 0 : i32
    %c0_i32_1 = arith.constant 0 : i32
    return %c0_i32, %c0_i32_0 : i32, i32
  }
  func.func @transform_3(%arg0: i32) -> (i32, i32) {
    %c0_i32 = arith.constant 0 : i32
    %c0_i32_0 = arith.constant 0 : i32
    %c0_i32_1 = arith.constant 0 : i32
    return %c0_i32, %c0_i32_0 : i32, i32
  }
  func.func @transform_4(%arg0: i32) -> (i32, i32) {
    %c0_i32 = arith.constant 0 : i32
    %c0_i32_0 = arith.constant 0 : i32
    %c0_i32_1 = arith.constant 0 : i32
    return %c0_i32, %c0_i32_0 : i32, i32
  }
  func.func @transform_5(%arg0: i32) -> (i32, i32, i32, i32) {
    %c0_i32 = arith.constant 0 : i32
    %c0_i32_0 = arith.constant 0 : i32
    %c0_i32_1 = arith.constant 0 : i32
    %c0_i32_2 = arith.constant 0 : i32
    return %arg0, %c0_i32, %c0_i32_0, %c0_i32_1 : i32, i32, i32, i32
  }
}

</mosaic_0001>

<bundles_post_ra>
// kernel: tpu_custom_call.1
= control target key start
LH: loop header
LB: loop body
LE: loop exit
PB: predicated region body
PF: predicated region fallthrough
CT: control target
= control target key end

     0   :  { %s4388_s18 = smov 0   ;;  %s7830_s0 = inlined_call_operand.vmem [shape: f32[2,16,16,8], index: 0, kind: input, shape index: {}]   ;;  %s7831_s1 = inlined_call_operand.vmem [shape: f32[72,8], index: 1, kind: input, shape index: {}]   ;;  %s7832_s2 = inlined_call_operand.vmem [shape: f32[1,8], index: 2, kind: input, shape index: {}]   ;;  %s7833_s3 = inlined_call_operand.vmem [shape: f32[72,8], index: 3, kind: input, shape index: {}]   ;;  %s7834_s4 = inlined_call_operand.vmem [shape: f32[1,8], index: 4, kind: input, shape index: {}]   ;;  %s7835_s5 = inlined_call_operand.vmem [shape: f32[2,16,16,8], index: 5, kind: output, shape index: {}]  }
   0x1 LB: > { %s4185_s19 = sadd.s32 4294967295, %s4347_s18   ;;  %p4189_p0 = scmp.ge.s32.totalorder %s4347_s18, 1  ;;  %s4347_s18 = sphi %s4388_s18, %s15_s18  }
   0x2   : > { %p187_p1 = scmp.lt.s32.totalorder %s4347_s18, 3 }
   0x4   : > { %p188_p2 = pnand %p4189_p0, %p187_p1 }
   0x6   : > { %191 = sbr.rel (%p188_p2) target bundleno = 1868 (0x74c), region = 40 }
   0xb   : > { %vm225_vm0 = vcmask 64512   ;;  %p215_p3 = scmp.lt.s32.totalorder %s4185_s19, 1  ;;  %v4349_v0 = vmov 0.0   ;;  %vm228_vm1 = vcmask 58368   ;;  %s4350_s24 = smov 8   ;;  %vm234_vm2 = vcmask 57344  }
   0xc   : > { %226 = vst.msk [vmem:[#allocation2] sm:$0xff] %vm225_vm0, %v4349_v0  ;;  %s4351_s25 = smov 16   ;;  %s4352_s26 = smov 24   ;;  %vm1691_vm3 = vcmask 130048   ;;  %vm1724_vm4 = vcmask 195584   ;;  %vm1790_vm5 = vcmask 326656  }
   0xd   : > { %227 = vst.msk [vmem:[#allocation2 + $0x8] sm:$0xff] %vm225_vm0, %v4349_v0  ;;  %s8479_s19 = smov (!%p215_p3, %s4185_s19), 1  ;;  %s4353_s27 = smov 32   ;;  %vm1757_vm6 = vcmask 261120   ;;  %vm1823_vm7 = vcmask 392192   ;;  %vm1889_vm8 = vcmask 523264  }
   0xe   : > { %231 = vst.msk [vmem:[#allocation2 + $0x198] sm:$0xff] %vm225_vm0, %v4349_v0  ;;  %s4260_s20 = sshll.u32 %s8479_s19, 8  ;;  %s4354_s28 = smov 40   ;;  %vm1856_vm9 = vcmask 457728   ;;  %vm1925_vm10 = vcmask 588800  }
   0xf   : > { %232 = vst.msk [vmem:[#allocation2 + $0x1a0] sm:$0xff] %vm225_vm0, %v4349_v0  ;;  %s4414_s23 = scalar_lea.vmem %s7830_s0, %s4260_s20  ;;  %s4355_s29 = smov 48  }
  0x10   : > { %2167 = vst.msk [vmem:[#allocation3] sm:$0xff] %vm225_vm0, %v4349_v0  ;;  %v273_v1 = vld [vmem:[%s4414_s23 + $0x10] sm:$0xff]  ;;  %v271_v2 = vld [vmem:[%s4414_s23] sm:$0xff]  ;;  %v274_v4 = vld [vmem:[%s4414_s23 + $0x18] sm:$0xff]  ;;  %s4356_s30 = smov 56   ;;  %s4357_s6 = smov 64  }
  0x11   : > { %2168 = vst.msk [vmem:[#allocation3 + $0x8] sm:$0xff] %vm225_vm0, %v4349_v0  ;;  %v272_v5 = vld [vmem:[%s4414_s23 + $0x8] sm:$0xff]  ;;  %v275_v6 = vld [vmem:[%s4414_s23 + $0x20] sm:$0xff]  ;;  %v277_v7 = vld [vmem:[%s4414_s23 + $0x30] sm:$0xff]  ;;  %s7577_s14 = scalar_lea.vmem %s7835_s5, %s4260_s20 }
  0x12   : > { %2171 = vst.msk [vmem:[#allocation3 + $0x198] sm:$0xff] %vm225_vm0, %v4349_v0  ;;  %v276_v9 = vld [vmem:[%s4414_s23 + $0x28] sm:$0xff]  ;;  %v278_v11 = vld [vmem:[%s4414_s23 + $0x38] sm:$0xff]  ;;  %v279_v14 = vld [vmem:[%s4414_s23 + $0x40] sm:$0xff] }
  0x13   : > { %2172 = vst.msk [vmem:[#allocation3 + $0x1a0] sm:$0xff] %vm225_vm0, %v4349_v0  ;;  %v280_v13 = vld [vmem:[%s4414_s23 + $0x48] sm:$0xff]  ;;  %v281_v15 = vld [vmem:[%s4414_s23 + $0x50] sm:$0xff]  ;;  %v283_v16 = vld [vmem:[%s4414_s23 + $0x60] sm:$0xff] }
  0x14   : > { %v378_v3 = vld [vmem:[#allocation2 + $0x1] sm:$0xff]  ;;  %306 = vst.msk [vmem:[#allocation2 + $0x31] sm:$0xff] %vm225_vm0, %v273_v1  ;;  %v282_v18 = vld [vmem:[%s4414_s23 + $0x58] sm:$0xff]  ;;  %v285_v23 = vld [vmem:[%s4414_s23 + $0x70] sm:$0xff] }
  0x15   : > { %667 = vrot.lane.b32.xlu0 %v378_v3, %s4350_s24  ;;  %304 = vst.msk [vmem:[#allocation2 + $0x19] sm:$0xff] %vm225_vm0, %v271_v2  ;;  %v284_v20 = vld [vmem:[%s4414_s23 + $0x68] sm:$0xff]  ;;  %v286_v22 = vld [vmem:[%s4414_s23 + $0x78] sm:$0xff]  ;;  %v287_v24 = vld [vmem:[%s4414_s23 + $0x80] sm:$0xff] }
  0x16   : > { %229 = vst.msk [vmem:[#allocation2 + $0x10] sm:$0x3] %vm228_vm1, %v4349_v0  ;;  %v289_v25 = vld [vmem:[%s4414_s23 + $0x90] sm:$0xff]  ;;  %v288_v26 = vld [vmem:[%s4414_s23 + $0x88] sm:$0xff]  ;;  %v290_v27 = vld [vmem:[%s4414_s23 + $0x98] sm:$0xff] }
  0x17   : > { %233 = vst.msk [vmem:[#allocation2 + $0x1a8] sm:$0x3] %vm228_vm1, %v4349_v0  ;;  %v292_v31 = vld [vmem:[%s4414_s23 + $0xa8] sm:$0xff]  ;;  %v291_v32 = vld [vmem:[%s4414_s23 + $0xa0] sm:$0xff]  ;;  %v293_v33 = vld [vmem:[%s4414_s23 + $0xb0] sm:$0xff] }
  0x18   : > { %2169 = vst.msk [vmem:[#allocation3 + $0x10] sm:$0x3] %vm228_vm1, %v4349_v0  ;;  %v295_v37 = vld [vmem:[%s4414_s23 + $0xc0] sm:$0xff]  ;;  %v294_v38 = vld [vmem:[%s4414_s23 + $0xb8] sm:$0xff]  ;;  %v296_v39 = vld [vmem:[%s4414_s23 + $0xc8] sm:$0xff] }
  0x19   : > { %2173 = vst.msk [vmem:[#allocation3 + $0x1a8] sm:$0x3] %vm228_vm1, %v4349_v0  ;;  %v298_v43 = vld [vmem:[%s4414_s23 + $0xd8] sm:$0xff]  ;;  %v297_v44 = vld [vmem:[%s4414_s23 + $0xd0] sm:$0xff]  ;;  %v299_v45 = vld [vmem:[%s4414_s23 + $0xe0] sm:$0xff] }
  0x1a   : > { %307 = vst.msk [vmem:[#allocation2 + $0x39] sm:$0xff] %vm225_vm0, %v274_v4  ;;  %v300_v49 = vld [vmem:[%s4414_s23 + $0xe8] sm:$0xff] }
  0x1b   : > { %v4436_v8 = vld [vmem:[#allocation2 + $0x31] sm:$0xff]  ;;  %305 = vst.msk [vmem:[#allocation2 + $0x21] sm:$0xff] %vm225_vm0, %v272_v5  ;;  %v410_v62 = vld [vmem:[#allocation2 + $0x2] sm:$0xff] }
  0x1c   : > { %675 = vrot.lane.b32.xlu2 %v4436_v8, %s4350_s24  ;;  %v4442_v10 = vld [vmem:[#allocation2 + $0x19] sm:$0xff]  ;;  %308 = vst.msk [vmem:[#allocation2 + $0x49] sm:$0xff] %vm225_vm0, %v275_v6 }
  0x1d   : > { %671 = vrot.lane.b32.xlu1 %v4442_v10, %s4350_s24  ;;  %v379_v12 = vld [vmem:[#allocation2 + $0x9] sm:$0xff]  ;;  %310 = vst.msk [vmem:[#allocation2 + $0x61] sm:$0xff] %vm225_vm0, %v277_v7 }
  0x1e   : > { %669 = vrot.lane.b32.xlu0 %v379_v12, %s4350_s24  ;;  %309 = vst.msk [vmem:[#allocation2 + $0x51] sm:$0xff] %vm225_vm0, %v276_v9 }
  0x1f   : > { %311 = vst.msk [vmem:[#allocation2 + $0x69] sm:$0xff] %vm225_vm0, %v278_v11 }
  0x20   : > { %313 = vst.msk [vmem:[#allocation2 + $0x81] sm:$0xff] %vm225_vm0, %v280_v13 }
  0x21   : > { %v4457_v17 = vld [vmem:[#allocation2 + $0x39] sm:$0xff]  ;;  %312 = vst.msk [vmem:[#allocation2 + $0x79] sm:$0xff] %vm225_vm0, %v279_v14 }
  0x22   : > { %v4461_v19 = vld [vmem:[#allocation2 + $0x21] sm:$0xff]  ;;  %314 = vst.msk [vmem:[#allocation2 + $0x91] sm:$0xff] %vm225_vm0, %v281_v15  ;;  %v4704_v4 = vld [vmem:[#allocation2 + $0x32] sm:$0xff] }
  0x23   : > { %v4465_v21 = vld [vmem:[#allocation2 + $0x49] sm:$0xff]  ;;  %316 = vst.msk [vmem:[#allocation2 + $0xa9] sm:$0xff] %vm225_vm0, %v283_v16  ;;  %v4700_v3 = vld [vmem:[#allocation2 + $0x1a] sm:$0xff] }
  0x24   : > { %677 = vrot.lane.b32.xlu2 %v4457_v17, %s4350_s24  ;;  %315 = vst.msk [vmem:[#allocation2 + $0x99] sm:$0xff] %vm225_vm0, %v282_v18  ;;  %v4485_v28 = vld [vmem:[#allocation2 + $0x61] sm:$0xff] }
  0x25   : > { %673 = vrot.lane.b32.xlu1 %v4461_v19, %s4350_s24  ;;  %317 = vst.msk [vmem:[#allocation2 + $0xb1] sm:$0xff] %vm225_vm0, %v284_v20  ;;  %v4488_v29 = vld [vmem:[#allocation2 + $0x51] sm:$0xff] }
  0x26   : > { %679 = vrot.lane.b32.xlu0 %v4465_v21, %s4350_s24  ;;  %319 = vst.msk [vmem:[#allocation2 + $0xc9] sm:$0xff] %vm225_vm0, %v286_v22  ;;  %v4491_v30 = vld [vmem:[#allocation2 + $0x69] sm:$0xff] }
  0x27   : > { %318 = vst.msk [vmem:[#allocation2 + $0xc1] sm:$0xff] %vm225_vm0, %v285_v23  ;;  %v4506_v34 = vld [vmem:[#allocation2 + $0x81] sm:$0xff]  ;;  %v4726_v6 = vld [vmem:[#allocation2 + $0x4a] sm:$0xff] }
  0x28   : > { %320 = vst.msk [vmem:[#allocation2 + $0xd9] sm:$0xff] %vm225_vm0, %v287_v24  ;;  %v4508_v35 = vld [vmem:[#allocation2 + $0x79] sm:$0xff]  ;;  %v4760_v13 = vld [vmem:[#allocation2 + $0x62] sm:$0xff] }
  0x29   : > { %322 = vst.msk [vmem:[#allocation2 + $0xf1] sm:$0xff] %vm225_vm0, %v289_v25  ;;  %v4510_v36 = vld [vmem:[#allocation2 + $0x91] sm:$0xff]  ;;  %v4764_v14 = vld [vmem:[#allocation2 + $0x7a] sm:$0xff] }
  0x2a   : > { %321 = vst.msk [vmem:[#allocation2 + $0xe1] sm:$0xff] %vm225_vm0, %v288_v26  ;;  %v4524_v40 = vld [vmem:[#allocation2 + $0xa9] sm:$0xff] }
  0x2b   : > { %323 = vst.msk [vmem:[#allocation2 + $0xf9] sm:$0xff] %vm225_vm0, %v290_v27  ;;  %v4526_v41 = vld [vmem:[#allocation2 + $0x99] sm:$0xff] }
  0x2c   : > { %683 = vrot.lane.b32.xlu2 %v4485_v28, %s4350_s24  ;;  %325 = vst.msk [vmem:[#allocation2 + $0x111] sm:$0xff] %vm225_vm0, %v292_v31  ;;  %v4528_v42 = vld [vmem:[#allocation2 + $0xb1] sm:$0xff] }
  0x2d   : > { %681 = vrot.lane.b32.xlu1 %v4488_v29, %s4350_s24  ;;  %324 = vst.msk [vmem:[#allocation2 + $0x109] sm:$0xff] %vm225_vm0, %v291_v32  ;;  %v4542_v46 = vld [vmem:[#allocation2 + $0xc9] sm:$0xff]  ;;  %v4788_v18 = vld [vmem:[#allocation2 + $0x92] sm:$0xff] }
  0x2e   : > { %685 = vrot.lane.b32.xlu0 %v4491_v30, %s4350_s24  ;;  %326 = vst.msk [vmem:[#allocation2 + $0x121] sm:$0xff] %vm225_vm0, %v293_v33  ;;  %v4544_v47 = vld [vmem:[#allocation2 + $0xc1] sm:$0xff]  ;;  %v4818_v27 = vld [vmem:[#allocation2 + $0xaa] sm:$0xff] }
  0x2f   : > { %328 = vst.msk [vmem:[#allocation2 + $0x139] sm:$0xff] %vm225_vm0, %v295_v37  ;;  %v4546_v48 = vld [vmem:[#allocation2 + $0xd9] sm:$0xff]  ;;  %v4820_v31 = vld [vmem:[#allocation2 + $0xc2] sm:$0xff] }
  0x30   : > { %327 = vst.msk [vmem:[#allocation2 + $0x129] sm:$0xff] %vm225_vm0, %v294_v38  ;;  %v4560_v50 = vld [vmem:[#allocation2 + $0xf1] sm:$0xff] }
  0x31   : > { %329 = vst.msk [vmem:[#allocation2 + $0x141] sm:$0xff] %vm225_vm0, %v296_v39  ;;  %v4564_v51 = vld [vmem:[#allocation2 + $0xe1] sm:$0xff] }
  0x32   : > { %331 = vst.msk [vmem:[#allocation2 + $0x159] sm:$0xff] %vm225_vm0, %v298_v43  ;;  %v4568_v52 = vld [vmem:[#allocation2 + $0xf9] sm:$0xff] }
  0x33   : > { %330 = vst.msk [vmem:[#allocation2 + $0x151] sm:$0xff] %vm225_vm0, %v297_v44  ;;  %v4588_v53 = vld [vmem:[#allocation2 + $0x111] sm:$0xff]  ;;  %v4834_v37 = vld [vmem:[#allocation2 + $0xda] sm:$0xff] }
  0x34   : > { %689 = vrot.lane.b32.xlu2 %v4506_v34, %s4350_s24  ;;  %332 = vst.msk [vmem:[#allocation2 + $0x169] sm:$0xff] %vm225_vm0, %v299_v45  ;;  %v4592_v54 = vld [vmem:[#allocation2 + $0x109] sm:$0xff] }
  0x35   : > { %687 = vrot.lane.b32.xlu1 %v4508_v35, %s4350_s24  ;;  %333 = vst.msk [vmem:[#allocation2 + $0x171] sm:$0xff] %vm225_vm0, %v300_v49  ;;  %v4596_v55 = vld [vmem:[#allocation2 + $0x121] sm:$0xff] }
  0x36   : > { %691 = vrot.lane.b32.xlu0 %v4510_v36, %s4350_s24  ;;  %253 = vst.msk [vmem:[#allocation2 + $0x11] sm:$0x1] %vm234_vm2, %v4349_v0  ;;  %v4616_v56 = vld [vmem:[#allocation2 + $0x139] sm:$0xff] }
  0x37   : > { %235 = vst.msk [vmem:[#allocation2] sm:$0x1] %vm234_vm2, %v4349_v0  ;;  %v4620_v57 = vld [vmem:[#allocation2 + $0x129] sm:$0xff] }
  0x38   : > { %236 = vst.msk [vmem:[#allocation2 + $0x18] sm:$0x1] %vm234_vm2, %v4349_v0  ;;  %v4624_v58 = vld [vmem:[#allocation2 + $0x141] sm:$0xff] }
  0x39   : > { %237 = vst.msk [vmem:[#allocation2 + $0x30] sm:$0x1] %vm234_vm2, %v4349_v0  ;;  %v4644_v59 = vld [vmem:[#allocation2 + $0x159] sm:$0xff] }
  0x3a   : > { %238 = vst.msk [vmem:[#allocation2 + $0x48] sm:$0x1] %vm234_vm2, %v4349_v0  ;;  %v4648_v60 = vld [vmem:[#allocation2 + $0x151] sm:$0xff] }
  0x3b   : > { %239 = vst.msk [vmem:[#allocation2 + $0x60] sm:$0x1] %vm234_vm2, %v4349_v0  ;;  %v4652_v61 = vld [vmem:[#allocation2 + $0x169] sm:$0xff] }
  0x3c   : > { %695 = vrot.lane.b32.xlu2 %v4524_v40, %s4350_s24  ;;  %240 = vst.msk [vmem:[#allocation2 + $0x78] sm:$0x1] %vm234_vm2, %v4349_v0  ;;  %v4674_v63 = vld [vmem:[#allocation2 + $0x171] sm:$0xff] }
  0x3d   : > { %693 = vrot.lane.b32.xlu1 %v4526_v41, %s4350_s24  ;;  %241 = vst.msk [vmem:[#allocation2 + $0x90] sm:$0x1] %vm234_vm2, %v4349_v0  ;;  %v411_v1 = vld [vmem:[#allocation2 + $0xa] sm:$0xff] }
  0x3e   : > { %697 = vrot.lane.b32.xlu0 %v4528_v42, %s4350_s24  ;;  %242 = vst.msk [vmem:[#allocation2 + $0xa8] sm:$0x1] %vm234_vm2, %v4349_v0 }
  0x3f   : > { %243 = vst.msk [vmem:[#allocation2 + $0xc0] sm:$0x1] %vm234_vm2, %v4349_v0 }
  0x40   : > { %244 = vst.msk [vmem:[#allocation2 + $0xd8] sm:$0x1] %vm234_vm2, %v4349_v0 }
  0x41   : > { %245 = vst.msk [vmem:[#allocation2 + $0xf0] sm:$0x1] %vm234_vm2, %v4349_v0 }
  0x42   : > { %246 = vst.msk [vmem:[#allocation2 + $0x108] sm:$0x1] %vm234_vm2, %v4349_v0 }
  0x43   : > { %247 = vst.msk [vmem:[#allocation2 + $0x120] sm:$0x1] %vm234_vm2, %v4349_v0 }
  0x44   : > { %701 = vrot.lane.b32.xlu2 %v4542_v46, %s4350_s24  ;;  %248 = vst.msk [vmem:[#allocation2 + $0x138] sm:$0x1] %vm234_vm2, %v4349_v0 }
  0x45   : > { %699 = vrot.lane.b32.xlu1 %v4544_v47, %s4350_s24  ;;  %249 = vst.msk [vmem:[#allocation2 + $0x150] sm:$0x1] %vm234_vm2, %v4349_v0 }
  0x46   : > { %703 = vrot.lane.b32.xlu0 %v4546_v48, %s4350_s24  ;;  %250 = vst.msk [vmem:[#allocation2 + $0x168] sm:$0x1] %vm234_vm2, %v4349_v0 }
  0x47   : > { %251 = vst.msk [vmem:[#allocation2 + $0x180] sm:$0x1] %vm234_vm2, %v4349_v0 }
  0x48   : > { %252 = vst.msk [vmem:[#allocation2 + $0x198] sm:$0x1] %vm234_vm2, %v4349_v0 }
  0x49   : > { %254 = vst.msk [vmem:[#allocation2 + $0x29] sm:$0x1] %vm234_vm2, %v4349_v0 }
  0x4a   : > { %255 = vst.msk [vmem:[#allocation2 + $0x41] sm:$0x1] %vm234_vm2, %v4349_v0 }
  0x4b   : > { %256 = vst.msk [vmem:[#allocation2 + $0x59] sm:$0x1] %vm234_vm2, %v4349_v0 }
  0x4c   : > { %707 = vrot.lane.b32.xlu2 %v4560_v50, %s4350_s24  ;;  %257 = vst.msk [vmem:[#allocation2 + $0x71] sm:$0x1] %vm234_vm2, %v4349_v0 }
  0x4d   : > { %705 = vrot.lane.b32.xlu1 %v4564_v51, %s4350_s24  ;;  %258 = vst.msk [vmem:[#allocation2 + $0x89] sm:$0x1] %vm234_vm2, %v4349_v0 }
  0x4e   : > { %709 = vrot.lane.b32.xlu0 %v4568_v52, %s4350_s24  ;;  %259 = vst.msk [vmem:[#allocation2 + $0xa1] sm:$0x1] %vm234_vm2, %v4349_v0 }
  0x4f   : > { %260 = vst.msk [vmem:[#allocation2 + $0xb9] sm:$0x1] %vm234_vm2, %v4349_v0 }
  0x50   : > { %261 = vst.msk [vmem:[#allocation2 + $0xd1] sm:$0x1] %vm234_vm2, %v4349_v0  ;;  %v4696_v2 = vld [vmem:[#allocation2 + $0x22] sm:$0xff] }
  0x51   : > { %262 = vst.msk [vmem:[#allocation2 + $0xe9] sm:$0x1] %vm234_vm2, %v4349_v0  ;;  %v4730_v7 = vld [vmem:[#allocation2 + $0x3a] sm:$0xff] }
  0x52   : > { %263 = vst.msk [vmem:[#allocation2 + $0x101] sm:$0x1] %vm234_vm2, %v4349_v0  ;;  %v4734_v9 = vld [vmem:[#allocation2 + $0x52] sm:$0xff] }
  0x53   : > { %264 = vst.msk [vmem:[#allocation2 + $0x119] sm:$0x1] %vm234_vm2, %v4349_v0  ;;  %v4756_v12 = vld [vmem:[#allocation2 + $0x6a] sm:$0xff] }
  0x54   : > { %713 = vrot.lane.b32.xlu2 %v4588_v53, %s4350_s24  ;;  %265 = vst.msk [vmem:[#allocation2 + $0x131] sm:$0x1] %vm234_vm2, %v4349_v0  ;;  %v4792_v20 = vld [vmem:[#allocation2 + $0x82] sm:$0xff] }
  0x55   : > { %711 = vrot.lane.b32.xlu1 %v4592_v54, %s4350_s24  ;;  %266 = vst.msk [vmem:[#allocation2 + $0x149] sm:$0x1] %vm234_vm2, %v4349_v0  ;;  %v4796_v22 = vld [vmem:[#allocation2 + $0x9a] sm:$0xff] }
  0x56   : > { %715 = vrot.lane.b32.xlu0 %v4596_v55, %s4350_s24  ;;  %267 = vst.msk [vmem:[#allocation2 + $0x161] sm:$0x1] %vm234_vm2, %v4349_v0  ;;  %v4816_v26 = vld [vmem:[#allocation2 + $0xb2] sm:$0xff] }
  0x57   : > { %268 = vst.msk [vmem:[#allocation2 + $0x179] sm:$0x1] %vm234_vm2, %v4349_v0  ;;  %v4836_v38 = vld [vmem:[#allocation2 + $0xca] sm:$0xff] }
  0x58   : > { %269 = vst.msk [vmem:[#allocation2 + $0x191] sm:$0x1] %vm234_vm2, %v4349_v0  ;;  %v4838_v39 = vld [vmem:[#allocation2 + $0xe2] sm:$0xff] }
  0x59   : > { %270 = vst.msk [vmem:[#allocation2 + $0x1a9] sm:$0x1] %vm234_vm2, %v4349_v0  ;;  %v4852_v49 = vld [vmem:[#allocation2 + $0xfa] sm:$0xff] }
  0x5a   : > { %2174 = vst.msk [vmem:[#allocation3] sm:$0x1] %vm234_vm2, %v4349_v0 }
  0x5b   : > { %2175 = vst.msk [vmem:[#allocation3 + $0x18] sm:$0x1] %vm234_vm2, %v4349_v0 }
  0x5c   : > { %719 = vrot.lane.b32.xlu2 %v4616_v56, %s4350_s24  ;;  %2176 = vst.msk [vmem:[#allocation3 + $0x30] sm:$0x1] %vm234_vm2, %v4349_v0 }
  0x5d   : > { %717 = vrot.lane.b32.xlu1 %v4620_v57, %s4350_s24  ;;  %2177 = vst.msk [vmem:[#allocation3 + $0x48] sm:$0x1] %vm234_vm2, %v4349_v0 }
  0x5e   : > { %721 = vrot.lane.b32.xlu0 %v4624_v58, %s4350_s24  ;;  %2178 = vst.msk [vmem:[#allocation3 + $0x60] sm:$0x1] %vm234_vm2, %v4349_v0 }
  0x5f   : > { %2179 = vst.msk [vmem:[#allocation3 + $0x78] sm:$0x1] %vm234_vm2, %v4349_v0 }
  0x60   : > { %2180 = vst.msk [vmem:[#allocation3 + $0x90] sm:$0x1] %vm234_vm2, %v4349_v0 }
  0x61   : > { %2181 = vst.msk [vmem:[#allocation3 + $0xa8] sm:$0x1] %vm234_vm2, %v4349_v0 }
  0x62   : > { %2182 = vst.msk [vmem:[#allocation3 + $0xc0] sm:$0x1] %vm234_vm2, %v4349_v0 }
  0x63   : > { %2183 = vst.msk [vmem:[#allocation3 + $0xd8] sm:$0x1] %vm234_vm2, %v4349_v0 }
  0x64   : > { %725 = vrot.lane.b32.xlu2 %v4644_v59, %s4350_s24  ;;  %2184 = vst.msk [vmem:[#allocation3 + $0xf0] sm:$0x1] %vm234_vm2, %v4349_v0 }
  0x65   : > { %723 = vrot.lane.b32.xlu1 %v4648_v60, %s4350_s24  ;;  %2185 = vst.msk [vmem:[#allocation3 + $0x108] sm:$0x1] %vm234_vm2, %v4349_v0 }
  0x66   : > { %727 = vrot.lane.b32.xlu0 %v4652_v61, %s4350_s24  ;;  %2186 = vst.msk [vmem:[#allocation3 + $0x120] sm:$0x1] %vm234_vm2, %v4349_v0 }
  0x67   : > { %2187 = vst.msk [vmem:[#allocation3 + $0x138] sm:$0x1] %vm234_vm2, %v4349_v0 }
  0x68   : > { %2188 = vst.msk [vmem:[#allocation3 + $0x150] sm:$0x1] %vm234_vm2, %v4349_v0 }
  0x69   : > { %2189 = vst.msk [vmem:[#allocation3 + $0x168] sm:$0x1] %vm234_vm2, %v4349_v0 }
  0x6a   : > { %2190 = vst.msk [vmem:[#allocation3 + $0x180] sm:$0x1] %vm234_vm2, %v4349_v0 }
  0x6b   : > { %2191 = vst.msk [vmem:[#allocation3 + $0x198] sm:$0x1] %vm234_vm2, %v4349_v0 }
  0x6c   : > { %795 = vrot.lane.b32.xlu2 %v410_v62, %s4351_s25  ;;  %2192 = vst.msk [vmem:[#allocation3 + $0x11] sm:$0x1] %vm234_vm2, %v4349_v0  ;;  %v4854_v62 = vld [vmem:[#allocation2 + $0xf2] sm:$0xff] }
  0x6d   : > { %729 = vrot.lane.b32.xlu1 %v4674_v63, %s4350_s24  ;;  %2193 = vst.msk [vmem:[#allocation3 + $0x29] sm:$0x1] %vm234_vm2, %v4349_v0 }
  0x6e   : > { %797 = vrot.lane.b32.xlu0 %v411_v1, %s4351_s25  ;;  %2194 = vst.msk [vmem:[#allocation3 + $0x41] sm:$0x1] %vm234_vm2, %v4349_v0  ;;  %v4856_v1 = vld [vmem:[#allocation2 + $0x10a] sm:$0xff] }
  0x6f   : > { %2195 = vst.msk [vmem:[#allocation3 + $0x59] sm:$0x1] %vm234_vm2, %v4349_v0 }
  0x70   : > { %2196 = vst.msk [vmem:[#allocation3 + $0x71] sm:$0x1] %vm234_vm2, %v4349_v0 }
  0x71   : > { %2197 = vst.msk [vmem:[#allocation3 + $0x89] sm:$0x1] %vm234_vm2, %v4349_v0 }
  0x72   : > { %2198 = vst.msk [vmem:[#allocation3 + $0xa1] sm:$0x1] %vm234_vm2, %v4349_v0 }
  0x73   : > { %2199 = vst.msk [vmem:[#allocation3 + $0xb9] sm:$0x1] %vm234_vm2, %v4349_v0 }
  0x74   : > { %801 = vrot.lane.b32.xlu2 %v4696_v2, %s4351_s25  ;;  %2200 = vst.msk [vmem:[#allocation3 + $0xd1] sm:$0x1] %vm234_vm2, %v4349_v0 }
  0x75   : > { %799 = vrot.lane.b32.xlu1 %v4700_v3, %s4351_s25  ;;  %2201 = vst.msk [vmem:[#allocation3 + $0xe9] sm:$0x1] %vm234_vm2, %v4349_v0 }
  0x76   : > { %803 = vrot.lane.b32.xlu0 %v4704_v4, %s4351_s25  ;;  %v4718_v5 = vpop.permute.xlu2 %675  ;;  %2202 = vst.msk [vmem:[#allocation3 + $0x101] sm:$0x1] %vm234_vm2, %v4349_v0 }
  0x77   : > { %7890 = vst [vmem:[#allocation4_spill] sm:$0xff] %v4718_v5  ;;  %v4892_v5 = vld [vmem:[#allocation2 + $0x152] sm:$0xff] }
  0x78   : > { %2203 = vst.msk [vmem:[#allocation3 + $0x119] sm:$0x1] %vm234_vm2, %v4349_v0 }
  0x79   : > { %2204 = vst.msk [vmem:[#allocation3 + $0x131] sm:$0x1] %vm234_vm2, %v4349_v0 }
  0x7a   : > { %2205 = vst.msk [vmem:[#allocation3 + $0x149] sm:$0x1] %vm234_vm2, %v4349_v0 }
  0x7b   : > { %2206 = vst.msk [vmem:[#allocation3 + $0x161] sm:$0x1] %vm234_vm2, %v4349_v0 }
  0x7c   : > { %807 = vrot.lane.b32.xlu2 %v4726_v6, %s4351_s25  ;;  %2207 = vst.msk [vmem:[#allocation3 + $0x179] sm:$0x1] %vm234_vm2, %v4349_v0 }
  0x7d   : > { %805 = vrot.lane.b32.xlu1 %v4730_v7, %s4351_s25  ;;  %2208 = vst.msk [vmem:[#allocation3 + $0x191] sm:$0x1] %vm234_vm2, %v4349_v0 }
  0x7e   : > { %809 = vrot.lane.b32.xlu0 %v4734_v9, %s4351_s25  ;;  %v4748_v11 = vpop.permute.xlu2 %677  ;;  %2209 = vst.msk [vmem:[#allocation3 + $0x1a9] sm:$0x1] %vm234_vm2, %v4349_v0 }
  0x7f   : > { %7891 = vst [vmem:[#allocation5_spill] sm:$0xff] %v4748_v11  ;;  %v4890_v11 = vld [vmem:[#allocation2 + $0x13a] sm:$0xff] }
  0x80   : > { %7911 = vst [vmem:[#allocation25_spill] sm:$0xff] %v4892_v5 }
  0x84   : > { %813 = vrot.lane.b32.xlu2 %v4756_v12, %s4351_s25 }
  0x85   : > { %811 = vrot.lane.b32.xlu1 %v4760_v13, %s4351_s25 }
  0x86   : > { %815 = vrot.lane.b32.xlu0 %v4764_v14, %s4351_s25  ;;  %v4778_v15 = vpop.permute.xlu2 %683 }
  0x87   : > { %7892 = vst [vmem:[#allocation6_spill] sm:$0xff] %v4778_v15  ;;  %v4782_v16 = vpop.permute.xlu0 %667  ;;  %v4870_v15 = vld [vmem:[#allocation2 + $0x122] sm:$0xff] }
  0x88   : > { %7893 = vst [vmem:[#allocation7_spill] sm:$0xff] %v4782_v16  ;;  %v349_v16 = vld [vmem:[#allocation2 + $0x20] sm:$0xff] }
  0x8c   : > { %819 = vrot.lane.b32.xlu2 %v4788_v18, %s4351_s25 }
  0x8d   : > { %817 = vrot.lane.b32.xlu1 %v4792_v20, %s4351_s25 }
  0x8e   : > { %821 = vrot.lane.b32.xlu0 %v4796_v22, %s4351_s25  ;;  %v4810_v23 = vpop.permute.xlu2 %689 }
  0x8f   : > { %7894 = vst [vmem:[#allocation8_spill] sm:$0xff] %v4810_v23  ;;  %v4812_v24 = vpop.permute.xlu1 %671 }
  0x90   : > { %7895 = vst [vmem:[#allocation9_spill] sm:$0xff] %v4812_v24  ;;  %v4814_v25 = vpop.permute.xlu0 %669  ;;  %v4908_v24 = vld [vmem:[#allocation2 + $0x15a] sm:$0xff] }
  0x91   : > { %7896 = vst [vmem:[#allocation10_spill] sm:$0xff] %v4814_v25  ;;  %v4910_v25 = vld [vmem:[#allocation2 + $0x172] sm:$0xff] }
  0x92   : > { %7916 = vst [vmem:[#allocation30_spill] sm:$0xff] %v4908_v24 }
  0x93   : > { %7917 = vst [vmem:[#allocation31_spill] sm:$0xff] %v4910_v25 }
  0x94   : > { %825 = vrot.lane.b32.xlu2 %v4816_v26, %s4351_s25 }
  0x95   : > { %823 = vrot.lane.b32.xlu1 %v4818_v27, %s4351_s25 }
  0x96   : > { %827 = vrot.lane.b32.xlu0 %v4820_v31, %s4351_s25  ;;  %v4828_v0 = vpop.permute.xlu2 %695 }
  0x97   : > { %7897 = vst [vmem:[#allocation11_spill] sm:$0xff] %v4828_v0  ;;  %v4830_v32 = vpop.permute.xlu1 %673 }
  0x98   : > { %7898 = vst [vmem:[#allocation12_spill] sm:$0xff] %v4830_v32  ;;  %v4832_v33 = vpop.permute.xlu0 %679  ;;  %v4906_v32 = vld [vmem:[#allocation2 + $0x16a] sm:$0xff] }
  0x99   : > { %7899 = vst [vmem:[#allocation13_spill] sm:$0xff] %v4832_v33  ;;  %v4888_v33 = vld [vmem:[#allocation2 + $0x142] sm:$0xff] }
  0x9a   : > { %7910 = vst [vmem:[#allocation24_spill] sm:$0xff] %v4888_v33 }
  0x9b   : > { %7915 = vst [vmem:[#allocation29_spill] sm:$0xff] %v4906_v32 }
  0x9c   : > { %831 = vrot.lane.b32.xlu2 %v4834_v37, %s4351_s25 }
  0x9d   : > { %829 = vrot.lane.b32.xlu1 %v4836_v38, %s4351_s25 }
  0x9e   : > { %833 = vrot.lane.b32.xlu0 %v4838_v39, %s4351_s25  ;;  %v4846_v43 = vpop.permute.xlu2 %701 }
  0x9f   : > { %7900 = vst [vmem:[#allocation14_spill] sm:$0xff] %v4846_v43  ;;  %v4848_v44 = vpop.permute.xlu1 %681  ;;  %v4874_v43 = vld [vmem:[#allocation2 + $0x12a] sm:$0xff] }
  0xa0   : > { %7901 = vst [vmem:[#allocation15_spill] sm:$0xff] %v4848_v44  ;;  %v4850_v45 = vpop.permute.xlu0 %685  ;;  %v4872_v44 = vld [vmem:[#allocation2 + $0x112] sm:$0xff] }
  0xa1   : > { %7902 = vst [vmem:[#allocation16_spill] sm:$0xff] %v4850_v45 }
  0xa2   : > { %7906 = vst [vmem:[#allocation20_spill] sm:$0xff] %v4874_v43 }
  0xa4   : > { %837 = vrot.lane.b32.xlu2 %v4852_v49, %s4351_s25 }
  0xa5   : > { %835 = vrot.lane.b32.xlu1 %v4854_v62, %s4351_s25 }
  0xa6   : > { %839 = vrot.lane.b32.xlu0 %v4856_v1, %s4351_s25  ;;  %v4864_v0 = vpop.permute.xlu2 %707 }
  0xa7   : > { %7903 = vst [vmem:[#allocation17_spill] sm:$0xff] %v4864_v0  ;;  %v4866_v23 = vpop.permute.xlu1 %687 }
  0xa8   : > { %7904 = vst [vmem:[#allocation18_spill] sm:$0xff] %v4866_v23  ;;  %v4868_v45 = vpop.permute.xlu0 %691 }
  0xa9   : > { %7905 = vst [vmem:[#allocation19_spill] sm:$0xff] %v4868_v45 }
  0xac   : > { %843 = vrot.lane.b32.xlu2 %v4870_v15, %s4351_s25 }
  0xad   : > { %841 = vrot.lane.b32.xlu1 %v4872_v44, %s4351_s25 }
  0xae   : > { %845 = vrot.lane.b32.xlu0 %v4874_v43, %s4351_s25  ;;  %v4882_v0 = vpop.permute.xlu2 %713  ;;  %v4999_v43 = vld [vmem:[#allocation2 + $0xe0] sm:$0xff] }
  0xaf   : > { %7907 = vst [vmem:[#allocation21_spill] sm:$0xff] %v4882_v0  ;;  %v4884_v23 = vpop.permute.xlu1 %693 }
  0xb0   : > { %7908 = vst [vmem:[#allocation22_spill] sm:$0xff] %v4884_v23  ;;  %v4886_v45 = vpop.permute.xlu0 %697 }
  0xb1   : > { %7909 = vst [vmem:[#allocation23_spill] sm:$0xff] %v4886_v45 }
  0xb4   : > { %849 = vrot.lane.b32.xlu2 %v4888_v33, %s4351_s25  ;;  %v350_v33 = vld [vmem:[#allocation2 + $0x30] sm:$0xff] }
  0xb5   : > { %847 = vrot.lane.b32.xlu1 %v4890_v11, %s4351_s25 }
  0xb6   : > { %851 = vrot.lane.b32.xlu0 %v4892_v5, %s4351_s25  ;;  %v4900_v0 = vpop.permute.xlu2 %719  ;;  %v348_v5 = vld [vmem:[#allocation2 + $0x18] sm:$0xff] }
  0xb7   : > { %7912 = vst [vmem:[#allocation26_spill] sm:$0xff] %v4900_v0  ;;  %v4902_v23 = vpop.permute.xlu1 %699 }
  0xb8   : > { %7913 = vst [vmem:[#allocation27_spill] sm:$0xff] %v4902_v23  ;;  %v4904_v45 = vpop.permute.xlu0 %703 }
  0xb9   : > { %7914 = vst [vmem:[#allocation28_spill] sm:$0xff] %v4904_v45 }
  0xbc   : > { %855 = vrot.lane.b32.xlu2 %v4906_v32, %s4351_s25 }
  0xbd   : > { %853 = vrot.lane.b32.xlu1 %v4908_v24, %s4351_s25 }
  0xbe   : > { %857 = vrot.lane.b32.xlu0 %v4910_v25, %s4351_s25  ;;  %v4918_v0 = vpop.permute.xlu2 %725 }
  0xbf   : > { %7918 = vst [vmem:[#allocation32_spill] sm:$0xff] %v4918_v0  ;;  %v4920_v23 = vpop.permute.xlu1 %705  ;;  %v4933_v0 = vld [vmem:[#allocation2 + $0x48] sm:$0xff] }
  0xc0   : > { %7919 = vst [vmem:[#allocation33_spill] sm:$0xff] %v4920_v23  ;;  %v4922_v45 = vpop.permute.xlu0 %709  ;;  %v351_v23 = vld [vmem:[#allocation2 + $0x38] sm:$0xff] }
  0xc1   : > { %7920 = vst [vmem:[#allocation34_spill] sm:$0xff] %v4922_v45  ;;  %v4937_v45 = vld [vmem:[#allocation2 + $0x50] sm:$0xff] }
  0xc2   : > { %7924 = vst [vmem:[#allocation38_spill] sm:$0xff] %v4933_v0 }
  0xc3   : > { %7925 = vst [vmem:[#allocation39_spill] sm:$0xff] %v4937_v45 }
  0xc4   : > { %925 = vrot.lane.b32.xlu2 %v349_v16, %s4352_s26 }
  0xc5   : > { %923 = vrot.lane.b32.xlu1 %v348_v5, %s4352_s26 }
  0xc6   : > { %927 = vrot.lane.b32.xlu0 %v350_v33, %s4352_s26  ;;  %v4927_v32 = vpop.permute.xlu2 %795 }
  0xc7   : > { %7921 = vst [vmem:[#allocation35_spill] sm:$0xff] %v4927_v32  ;;  %v4929_v24 = vpop.permute.xlu1 %711  ;;  %v4952_v32 = vld [vmem:[#allocation2 + $0x78] sm:$0xff] }
  0xc8   : > { %7922 = vst [vmem:[#allocation36_spill] sm:$0xff] %v4929_v24  ;;  %v4931_v25 = vpop.permute.xlu0 %715  ;;  %v354_v24 = vld [vmem:[#allocation2 + $0x60] sm:$0xff] }
  0xc9   : > { %7923 = vst [vmem:[#allocation37_spill] sm:$0xff] %v4931_v25  ;;  %v4948_v25 = vld [vmem:[#allocation2 + $0x68] sm:$0xff] }
  0xca   : > { %7929 = vst [vmem:[#allocation43_spill] sm:$0xff] %v4948_v25 }
  0xcb   : > { %7930 = vst [vmem:[#allocation44_spill] sm:$0xff] %v4952_v32 }
  0xcc   : > { %931 = vrot.lane.b32.xlu2 %v4933_v0, %s4352_s26  ;;  %v302_v0 = vld [vmem:[%s4414_s23 + $0xf8] sm:$0xff] }
  0xcd   : > { %929 = vrot.lane.b32.xlu1 %v351_v23, %s4352_s26  ;;  %335 = vst.msk [vmem:[#allocation2 + $0x189] sm:$0xff] %vm225_vm0, %v302_v0 }
  0xce   : > { %933 = vrot.lane.b32.xlu0 %v4937_v45, %s4352_s26  ;;  %v4942_v5 = vpop.permute.xlu2 %801  ;;  %v357_v45 = vld [vmem:[#allocation2 + $0x80] sm:$0xff] }
  0xcf   : > { %7926 = vst [vmem:[#allocation40_spill] sm:$0xff] %v4942_v5  ;;  %v4944_v16 = vpop.permute.xlu1 %717 }
  0xd0   : > { %7927 = vst [vmem:[#allocation41_spill] sm:$0xff] %v4944_v16  ;;  %v4946_v33 = vpop.permute.xlu0 %721 }
  0xd1   : > { %7928 = vst [vmem:[#allocation42_spill] sm:$0xff] %v4946_v33  ;;  %v4963_v33 = vld [vmem:[#allocation2 + $0x90] sm:$0xff] }
  0xd2   : > { %7934 = vst [vmem:[#allocation48_spill] sm:$0xff] %v4963_v33 }
  0xd4   : > { %937 = vrot.lane.b32.xlu2 %v4948_v25, %s4352_s26  ;;  %v4967_v25 = vld [vmem:[#allocation2 + $0x98] sm:$0xff] }
  0xd5   : > { %935 = vrot.lane.b32.xlu1 %v354_v24, %s4352_s26  ;;  %7935 = vst [vmem:[#allocation49_spill] sm:$0xff] %v4967_v25 }
  0xd6   : > { %939 = vrot.lane.b32.xlu0 %v4952_v32, %s4352_s26  ;;  %v4957_v23 = vpop.permute.xlu2 %807  ;;  %v360_v32 = vld [vmem:[#allocation2 + $0xa8] sm:$0xff] }
  0xd7   : > { %7931 = vst [vmem:[#allocation45_spill] sm:$0xff] %v4957_v23  ;;  %v4959_v5 = vpop.permute.xlu1 %723  ;;  %v4978_v23 = vld [vmem:[#allocation2 + $0xb0] sm:$0xff] }
  0xd8   : > { %7932 = vst [vmem:[#allocation46_spill] sm:$0xff] %v4959_v5  ;;  %v4961_v16 = vpop.permute.xlu0 %727 }
  0xd9   : > { %7933 = vst [vmem:[#allocation47_spill] sm:$0xff] %v4961_v16 }
  0xda   : > { %7939 = vst [vmem:[#allocation53_spill] sm:$0xff] %v4978_v23 }
  0xdc   : > { %943 = vrot.lane.b32.xlu2 %v4963_v33, %s4352_s26  ;;  %v4982_v33 = vld [vmem:[#allocation2 + $0xc0] sm:$0xff] }
  0xdd   : > { %941 = vrot.lane.b32.xlu1 %v357_v45, %s4352_s26 }
  0xde   : > { %945 = vrot.lane.b32.xlu0 %v4967_v25, %s4352_s26  ;;  %v4972_v24 = vpop.permute.xlu2 %813  ;;  %v363_v25 = vld [vmem:[#allocation2 + $0xc8] sm:$0xff] }
  0xdf   : > { %7936 = vst [vmem:[#allocation50_spill] sm:$0xff] %v4972_v24  ;;  %v4974_v5 = vpop.permute.xlu1 %729 }
  0xe0   : > { %7937 = vst [vmem:[#allocation51_spill] sm:$0xff] %v4974_v5  ;;  %v4976_v16 = vpop.permute.xlu0 %797 }
  0xe1   : > { %7938 = vst [vmem:[#allocation52_spill] sm:$0xff] %v4976_v16  ;;  %v4993_v16 = vld [vmem:[#allocation2 + $0xd8] sm:$0xff] }
  0xe2   : > { %7943 = vst [vmem:[#allocation57_spill] sm:$0xff] %v4993_v16 }
  0xe4   : > { %949 = vrot.lane.b32.xlu2 %v4978_v23, %s4352_s26  ;;  %v301_v23 = vld [vmem:[%s4414_s23 + $0xf0] sm:$0xff] }
  0xe5   : > { %947 = vrot.lane.b32.xlu1 %v360_v32, %s4352_s26  ;;  %334 = vst.msk [vmem:[#allocation2 + $0x181] sm:$0xff] %vm225_vm0, %v301_v23 }
  0xe6   : > { %951 = vrot.lane.b32.xlu0 %v4982_v33, %s4352_s26  ;;  %v4987_v45 = vpop.permute.xlu2 %819 }
  0xe7   : > { %7940 = vst [vmem:[#allocation54_spill] sm:$0xff] %v4987_v45  ;;  %v4989_v24 = vpop.permute.xlu1 %799 }
  0xe8   : > { %7941 = vst [vmem:[#allocation55_spill] sm:$0xff] %v4989_v24  ;;  %v4991_v5 = vpop.permute.xlu0 %803  ;;  %v5012_v24 = vld [vmem:[#allocation2 + $0xf8] sm:$0xff] }
  0xe9   : > { %7942 = vst [vmem:[#allocation56_spill] sm:$0xff] %v4991_v5 }
  0xea   : > { %7947 = vst [vmem:[#allocation61_spill] sm:$0xff] %v5012_v24 }
  0xec   : > { %955 = vrot.lane.b32.xlu2 %v4993_v16, %s4352_s26  ;;  %v366_v16 = vld [vmem:[#allocation2 + $0xf0] sm:$0xff] }
  0xed   : > { %953 = vrot.lane.b32.xlu1 %v363_v25, %s4352_s26  ;;  %v5016_v25 = vld [vmem:[#allocation2 + $0x108] sm:$0xff] }
  0xee   : > { %957 = vrot.lane.b32.xlu0 %v4999_v43, %s4352_s26  ;;  %v5005_v32 = vpop.permute.xlu2 %825  ;;  %7948 = vst [vmem:[#allocation62_spill] sm:$0xff] %v5016_v25 }
  0xef   : > { %7944 = vst [vmem:[#allocation58_spill] sm:$0xff] %v5005_v32  ;;  %v5008_v45 = vpop.permute.xlu1 %805 }
  0xf0   : > { %7945 = vst [vmem:[#allocation59_spill] sm:$0xff] %v5008_v45  ;;  %v5010_v5 = vpop.permute.xlu0 %809  ;;  %v369_v45 = vld [vmem:[#allocation2 + $0x110] sm:$0xff] }
  0xf1   : > { %7946 = vst [vmem:[#allocation60_spill] sm:$0xff] %v5010_v5  ;;  %v5027_v5 = vld [vmem:[#allocation2 + $0x120] sm:$0xff] }
  0xf2   : > { %7952 = vst [vmem:[#allocation66_spill] sm:$0xff] %v5027_v5 }
  0xf4   : > { %961 = vrot.lane.b32.xlu2 %v5012_v24, %s4352_s26  ;;  %v5031_v24 = vld [vmem:[#allocation2 + $0x128] sm:$0xff] }
  0xf5   : > { %959 = vrot.lane.b32.xlu1 %v366_v16, %s4352_s26  ;;  %7953 = vst [vmem:[#allocation67_spill] sm:$0xff] %v5031_v24 }
  0xf6   : > { %963 = vrot.lane.b32.xlu0 %v5016_v25, %s4352_s26  ;;  %v5021_v23 = vpop.permute.xlu2 %831  ;;  %v5044_v25 = vld [vmem:[#allocation2 + $0x138] sm:$0xff] }
  0xf7   : > { %7949 = vst [vmem:[#allocation63_spill] sm:$0xff] %v5021_v23  ;;  %v5023_v0 = vpop.permute.xlu1 %811 }
  0xf8   : > { %7950 = vst [vmem:[#allocation64_spill] sm:$0xff] %v5023_v0  ;;  %v5025_v32 = vpop.permute.xlu0 %815 }
  0xf9   : > { %7951 = vst [vmem:[#allocation65_spill] sm:$0xff] %v5025_v32  ;;  %v5042_v32 = vld [vmem:[#allocation2 + $0x140] sm:$0xff] }
  0xfa   : > { %7957 = vst [vmem:[#allocation71_spill] sm:$0xff] %v5042_v32 }
  0xfb   : > { %7958 = vst [vmem:[#allocation72_spill] sm:$0xff] %v5044_v25 }
  0xfc   : > { %967 = vrot.lane.b32.xlu2 %v5027_v5, %s4352_s26  ;;  %v5048_v5 = vld [vmem:[#allocation2 + $0x150] sm:$0xff] }
  0xfd   : > { %965 = vrot.lane.b32.xlu1 %v369_v45, %s4352_s26  ;;  %7959 = vst [vmem:[#allocation73_spill] sm:$0xff] %v5048_v5 }
  0xfe   : > { %969 = vrot.lane.b32.xlu0 %v5031_v24, %s4352_s26  ;;  %v5036_v16 = vpop.permute.xlu2 %837  ;;  %v5062_v24 = vld [vmem:[#allocation2 + $0x158] sm:$0xff] }
  0xff   : > { %7954 = vst [vmem:[#allocation68_spill] sm:$0xff] %v5036_v16  ;;  %v5038_v23 = vpop.permute.xlu1 %817  ;;  %v5060_v16 = vld [vmem:[#allocation2 + $0x168] sm:$0xff] }
 0x100   : > { %7955 = vst [vmem:[#allocation69_spill] sm:$0xff] %v5038_v23  ;;  %v5040_v0 = vpop.permute.xlu0 %821 }
 0x101   : > { %7956 = vst [vmem:[#allocation70_spill] sm:$0xff] %v5040_v0 }
 0x102   : > { %7963 = vst [vmem:[#allocation77_spill] sm:$0xff] %v5060_v16 }
 0x104   : > { %973 = vrot.lane.b32.xlu2 %v5042_v32, %s4352_s26  ;;  %v5066_v32 = vld [vmem:[#allocation2 + $0x170] sm:$0xff] }
 0x105   : > { %971 = vrot.lane.b32.xlu1 %v5044_v25, %s4352_s26  ;;  %v5080_v25 = vld [vmem:[#allocation2 + $0x180] sm:$0xff] }
 0x106   : > { %975 = vrot.lane.b32.xlu0 %v5048_v5, %s4352_s26  ;;  %v5054_v45 = vpop.permute.xlu2 %843  ;;  %v5078_v5 = vld [vmem:[#allocation2 + $0x188] sm:$0xff] }
 0x107   : > { %7960 = vst [vmem:[#allocation74_spill] sm:$0xff] %v5054_v45  ;;  %v5056_v23 = vpop.permute.xlu1 %823 }
 0x108   : > { %7961 = vst [vmem:[#allocation75_spill] sm:$0xff] %v5056_v23  ;;  %v5058_v0 = vpop.permute.xlu0 %827 }
 0x109   : > { %7962 = vst [vmem:[#allocation76_spill] sm:$0xff] %v5058_v0 }
 0x10a   : > { %7967 = vst [vmem:[#allocation81_spill] sm:$0xff] %v5078_v5 }
 0x10c   : > { %979 = vrot.lane.b32.xlu2 %v5060_v16, %s4352_s26 }
 0x10d   : > { %977 = vrot.lane.b32.xlu1 %v5062_v24, %s4352_s26 }
 0x10e   : > { %981 = vrot.lane.b32.xlu0 %v5066_v32, %s4352_s26  ;;  %v5072_v45 = vpop.permute.xlu2 %849 }
 0x10f   : > { %7964 = vst [vmem:[#allocation78_spill] sm:$0xff] %v5072_v45  ;;  %v5074_v23 = vpop.permute.xlu1 %829 }
 0x110   : > { %7965 = vst [vmem:[#allocation79_spill] sm:$0xff] %v5074_v23  ;;  %v5076_v0 = vpop.permute.xlu0 %833 }
 0x111   : > { %7966 = vst [vmem:[#allocation80_spill] sm:$0xff] %v5076_v0 }
 0x114   : > { %985 = vrot.lane.b32.xlu2 %v5078_v5, %s4352_s26 }
 0x115   : > { %983 = vrot.lane.b32.xlu1 %v5080_v25, %s4352_s26 }
 0x116   : > { %v5086_v16 = vpop.permute.xlu2 %855  ;;  %1051 = vrot.lane.b32.xlu0 %v4442_v10, %s4353_s27 }
 0x117   : > { %7968 = vst [vmem:[#allocation82_spill] sm:$0xff] %v5086_v16  ;;  %v5090_v45 = vpop.permute.xlu1 %835 }
 0x118   : > { %7969 = vst [vmem:[#allocation83_spill] sm:$0xff] %v5090_v45  ;;  %v5092_v23 = vpop.permute.xlu0 %839  ;;  %v593_v45 = vld [vmem:[#allocation2 + $0x139] sm:$0xff] }
 0x119   : > { %7970 = vst [vmem:[#allocation84_spill] sm:$0xff] %v5092_v23 }
 0x11c   : > { %1055 = vrot.lane.b32.xlu2 %v4436_v8, %s4353_s27 }
 0x11d   : > { %1053 = vrot.lane.b32.xlu1 %v4461_v19, %s4353_s27 }
 0x11e   : > { %1057 = vrot.lane.b32.xlu0 %v4457_v17, %s4353_s27  ;;  %v5100_v0 = vpop.permute.xlu2 %925 }
 0x11f   : > { %v5102_v16 = vpop.permute.xlu1 %841 }
 0x120   : > { %7971 = vst [vmem:[#allocation85_spill] sm:$0xff] %v5102_v16  ;;  %v5104_v5 = vpop.permute.xlu0 %845  ;;  %v558_v16 = vld [vmem:[#allocation2 + $0x110] sm:$0xff] }
 0x121   : > { %7972 = vst [vmem:[#allocation86_spill] sm:$0xff] %v5104_v5 }
 0x124   : > { %1061 = vrot.lane.b32.xlu2 %v4488_v29, %s4353_s27 }
 0x125   : > { %1059 = vrot.lane.b32.xlu1 %v4465_v21, %s4353_s27 }
 0x126   : > { %1063 = vrot.lane.b32.xlu0 %v4485_v28, %s4353_s27  ;;  %v5112_v8 = vpop.permute.xlu2 %931 }
 0x127   : > { %v5114_v10 = vpop.permute.xlu1 %847 }
 0x128   : > { %7973 = vst [vmem:[#allocation87_spill] sm:$0xff] %v5114_v10  ;;  %v5116_v17 = vpop.permute.xlu0 %851  ;;  %v5340_v10 = vld [vmem:[#allocation2 + $0x18a] sm:$0xff] }
 0x129   : > { %7974 = vst [vmem:[#allocation88_spill] sm:$0xff] %v5116_v17  ;;  %v8009_v17 = vld [vmem:[#allocation25_spill] sm:$0xff] }
 0x12c   : > { %1067 = vrot.lane.b32.xlu2 %v4508_v35, %s4353_s27 }
 0x12d   : > { %1065 = vrot.lane.b32.xlu1 %v4491_v30, %s4353_s27 }
 0x12e   : > { %1069 = vrot.lane.b32.xlu0 %v4506_v34, %s4353_s27  ;;  %v5124_v19 = vpop.permute.xlu2 %937 }
 0x12f   : > { %v5126_v21 = vpop.permute.xlu1 %853 }
 0x130   : > { %7975 = vst [vmem:[#allocation89_spill] sm:$0xff] %v5126_v21  ;;  %v5128_v28 = vpop.permute.xlu0 %857 }
 0x131   : > { %7976 = vst [vmem:[#allocation90_spill] sm:$0xff] %v5128_v28  ;;  %v5216_v28 = vld [vmem:[#allocation2 + $0x189] sm:$0xff] }
 0x134   : > { %1073 = vrot.lane.b32.xlu2 %v4526_v41, %s4353_s27 }
 0x135   : > { %1071 = vrot.lane.b32.xlu1 %v4510_v36, %s4353_s27 }
 0x136   : > { %1075 = vrot.lane.b32.xlu0 %v4524_v40, %s4353_s27  ;;  %v5136_v29 = vpop.permute.xlu2 %943 }
 0x137   : > { %7977 = vst [vmem:[#allocation91_spill] sm:$0xff] %v5136_v29  ;;  %v5138_v30 = vpop.permute.xlu1 %923  ;;  %v594_v29 = vld [vmem:[#allocation2 + $0x141] sm:$0xff] }
 0x138   : > { %v5140_v34 = vpop.permute.xlu0 %927 }
 0x13c   : > { %1079 = vrot.lane.b32.xlu2 %v4544_v47, %s4353_s27 }
 0x13d   : > { %1077 = vrot.lane.b32.xlu1 %v4528_v42, %s4353_s27 }
 0x13e   : > { %1081 = vrot.lane.b32.xlu0 %v4542_v46, %s4353_s27  ;;  %v5148_v35 = vpop.permute.xlu2 %949 }
 0x13f   : > { %7978 = vst [vmem:[#allocation92_spill] sm:$0xff] %v5148_v35  ;;  %v5150_v36 = vpop.permute.xlu1 %929  ;;  %v552_v35 = vld [vmem:[#allocation2 + $0xc8] sm:$0xff] }
 0x140   : > { %v5152_v40 = vpop.permute.xlu0 %933 }
 0x144   : > { %1085 = vrot.lane.b32.xlu2 %v4564_v51, %s4353_s27 }
 0x145   : > { %1083 = vrot.lane.b32.xlu1 %v4546_v48, %s4353_s27 }
 0x146   : > { %1087 = vrot.lane.b32.xlu0 %v4560_v50, %s4353_s27  ;;  %v5160_v41 = vpop.permute.xlu2 %955 }
 0x147   : > { %v5162_v42 = vpop.permute.xlu1 %935 }
 0x148   : > { %v5164_v46 = vpop.permute.xlu0 %939 }
 0x14c   : > { %1091 = vrot.lane.b32.xlu2 %v4592_v54, %s4353_s27 }
 0x14d   : > { %1089 = vrot.lane.b32.xlu1 %v4568_v52, %s4353_s27 }
 0x14e   : > { %1093 = vrot.lane.b32.xlu0 %v4588_v53, %s4353_s27  ;;  %v5172_v47 = vpop.permute.xlu2 %961 }
 0x14f   : > { %7979 = vst [vmem:[#allocation93_spill] sm:$0xff] %v5172_v47  ;;  %v5174_v48 = vpop.permute.xlu1 %941  ;;  %v621_v47 = vld [vmem:[#allocation2 + $0x10a] sm:$0xff] }
 0x150   : > { %7980 = vst [vmem:[#allocation94_spill] sm:$0xff] %v5174_v48  ;;  %v5176_v50 = vpop.permute.xlu0 %945  ;;  %v617_v48 = vld [vmem:[#allocation2 + $0xda] sm:$0xff] }
 0x151   : > { %7981 = vst [vmem:[#allocation95_spill] sm:$0xff] %v5176_v50  ;;  %v578_v50 = vld [vmem:[#allocation2 + $0x81] sm:$0xff] }
 0x154   : > { %1097 = vrot.lane.b32.xlu2 %v4620_v57, %s4353_s27  ;;  %v5202_v57 = vld [vmem:[#allocation2 + $0x181] sm:$0xff] }
 0x155   : > { %1095 = vrot.lane.b32.xlu1 %v4596_v55, %s4353_s27 }
 0x156   : > { %1099 = vrot.lane.b32.xlu0 %v4616_v56, %s4353_s27  ;;  %v5184_v51 = vpop.permute.xlu2 %967 }
 0x157   : > { %7982 = vst [vmem:[#allocation96_spill] sm:$0xff] %v5184_v51  ;;  %v5186_v52 = vpop.permute.xlu1 %947  ;;  %v8047_v51 = vld [vmem:[#allocation73_spill] sm:$0xff] }
 0x158   : > { %7983 = vst [vmem:[#allocation97_spill] sm:$0xff] %v5186_v52  ;;  %v5188_v53 = vpop.permute.xlu0 %951 }
 0x159   : > { %7984 = vst [vmem:[#allocation98_spill] sm:$0xff] %v5188_v53  ;;  %v8021_v53 = vld [vmem:[#allocation43_spill] sm:$0xff] }
 0x15c   : > { %1103 = vrot.lane.b32.xlu2 %v4648_v60, %s4353_s27 }
 0x15d   : > { %1101 = vrot.lane.b32.xlu1 %v4624_v58, %s4353_s27 }
 0x15e   : > { %1105 = vrot.lane.b32.xlu0 %v4644_v59, %s4353_s27  ;;  %v5196_v54 = vpop.permute.xlu2 %973 }
 0x15f   : > { %7985 = vst [vmem:[#allocation99_spill] sm:$0xff] %v5196_v54  ;;  %v5198_v55 = vpop.permute.xlu1 %953  ;;  %v539_v54 = vld [vmem:[#allocation2 + $0x30] sm:$0xff] }
 0x160   : > { %7986 = vst [vmem:[#allocation100_spill] sm:$0xff] %v5198_v55  ;;  %v5200_v56 = vpop.permute.xlu0 %957  ;;  %v8017_v55 = vld [vmem:[#allocation38_spill] sm:$0xff] }
 0x164   : > { %1109 = vrot.lane.b32.xlu2 %v4674_v63, %s4353_s27 }
 0x165   : > { %1107 = vrot.lane.b32.xlu1 %v4652_v61, %s4353_s27 }
 0x166   : > { %1111 = vrot.lane.b32.xlu0 %v5202_v57, %s4353_s27  ;;  %v5210_v58 = vpop.permute.xlu2 %979 }
 0x167   : > { %7987 = vst [vmem:[#allocation101_spill] sm:$0xff] %v5210_v58  ;;  %v5212_v59 = vpop.permute.xlu1 %959 }
 0x168   : > { %v5214_v60 = vpop.permute.xlu0 %963 }
 0x169   : > { %7988 = vst [vmem:[#allocation102_spill] sm:$0xff] %v5214_v60  ;;  %v592_v60 = vld [vmem:[#allocation2 + $0x129] sm:$0xff] }
 0x16c   : > { %1179 = vrot.lane.b32.xlu2 %v4700_v3, %s4354_s28 }
 0x16d   : > { %1113 = vrot.lane.b32.xlu1 %v5216_v28, %s4353_s27 }
 0x16e   : > { %1181 = vrot.lane.b32.xlu0 %v4696_v2, %s4354_s28  ;;  %v5224_v61 = vpop.permute.xlu2 %985 }
 0x16f   : > { %7989 = vst [vmem:[#allocation103_spill] sm:$0xff] %v5224_v61  ;;  %v5226_v63 = vpop.permute.xlu1 %965  ;;  %v8003_v61 = vld [vmem:[#allocation20_spill] sm:$0xff] }
 0x170   : > { %7990 = vst [vmem:[#allocation104_spill] sm:$0xff] %v5226_v63  ;;  %v5228_v21 = vpop.permute.xlu0 %969  ;;  %v577_v63 = vld [vmem:[#allocation2 + $0x79] sm:$0xff] }
 0x171   : > { %7991 = vst [vmem:[#allocation105_spill] sm:$0xff] %v5228_v21  ;;  %v549_v21 = vld [vmem:[#allocation2 + $0xa8] sm:$0xff] }
 0x174   : > { %1185 = vrot.lane.b32.xlu2 %v4730_v7, %s4354_s28 }
 0x175   : > { %1183 = vrot.lane.b32.xlu1 %v4704_v4, %s4354_s28 }
 0x176   : > { %1187 = vrot.lane.b32.xlu0 %v4726_v6, %s4354_s28  ;;  %v5236_v3 = vpop.permute.xlu2 %1055 }
 0x177   : > { %v5238_v58 = vpop.permute.xlu1 %971 }
 0x178   : > { %7992 = vst [vmem:[#allocation106_spill] sm:$0xff] %v5238_v58  ;;  %v5240_v2 = vpop.permute.xlu0 %975  ;;  %v8020_v58 = vld [vmem:[#allocation39_spill] sm:$0xff] }
 0x179   : > { %7993 = vst [vmem:[#allocation107_spill] sm:$0xff] %v5240_v2  ;;  %v5338_v2 = vld [vmem:[#allocation2 + $0x182] sm:$0xff] }
 0x17c   : > { %1191 = vrot.lane.b32.xlu2 %v4760_v13, %s4354_s28 }
 0x17d   : > { %1189 = vrot.lane.b32.xlu1 %v4734_v9, %s4354_s28 }
 0x17e   : > { %1193 = vrot.lane.b32.xlu0 %v4756_v12, %s4354_s28  ;;  %v5248_v7 = vpop.permute.xlu2 %1061 }
 0x17f   : > { %v5250_v4 = vpop.permute.xlu1 %977 }
 0x180   : > { %7994 = vst [vmem:[#allocation108_spill] sm:$0xff] %v5250_v4  ;;  %v5252_v6 = vpop.permute.xlu0 %981 }
 0x181   : > { %7995 = vst [vmem:[#allocation109_spill] sm:$0xff] %v5252_v6  ;;  %v8008_v6 = vld [vmem:[#allocation30_spill] sm:$0xff] }
 0x184   : > { %1197 = vrot.lane.b32.xlu2 %v4792_v20, %s4354_s28 }
 0x185   : > { %1195 = vrot.lane.b32.xlu1 %v4764_v14, %s4354_s28 }
 0x186   : > { %1199 = vrot.lane.b32.xlu0 %v4788_v18, %s4354_s28  ;;  %v5260_v13 = vpop.permute.xlu2 %1067 }
 0x187   : > { %v5262_v9 = vpop.permute.xlu1 %983 }
 0x188   : > { %7996 = vst [vmem:[#allocation110_spill] sm:$0xff] %v5262_v9  ;;  %v5264_v12 = vpop.permute.xlu0 %1051 }
 0x18c   : > { %1203 = vrot.lane.b32.xlu2 %v4818_v27, %s4354_s28 }
 0x18d   : > { %1201 = vrot.lane.b32.xlu1 %v4796_v22, %s4354_s28 }
 0x18e   : > { %1205 = vrot.lane.b32.xlu0 %v4816_v26, %s4354_s28  ;;  %v5272_v20 = vpop.permute.xlu2 %1073 }
 0x18f   : > { %7997 = vst [vmem:[#allocation111_spill] sm:$0xff] %v5272_v20  ;;  %v5274_v14 = vpop.permute.xlu1 %1053  ;;  %v575_v20 = vld [vmem:[#allocation2 + $0x61] sm:$0xff] }
 0x190   : > { %v5276_v18 = vpop.permute.xlu0 %1057 }
 0x194   : > { %1209 = vrot.lane.b32.xlu2 %v4836_v38, %s4354_s28 }
 0x195   : > { %1207 = vrot.lane.b32.xlu1 %v4820_v31, %s4354_s28 }
 0x196   : > { %1211 = vrot.lane.b32.xlu0 %v4834_v37, %s4354_s28  ;;  %v5284_v27 = vpop.permute.xlu2 %1079 }
 0x197   : > { %7998 = vst [vmem:[#allocation112_spill] sm:$0xff] %v5284_v27  ;;  %v5286_v22 = vpop.permute.xlu1 %1059 }
 0x198   : > { %v5288_v26 = vpop.permute.xlu0 %1063 }
 0x19c   : > { %1215 = vrot.lane.b32.xlu2 %v4854_v62, %s4354_s28 }
 0x19d   : > { %1213 = vrot.lane.b32.xlu1 %v4838_v39, %s4354_s28 }
 0x19e   : > { %1217 = vrot.lane.b32.xlu0 %v4852_v49, %s4354_s28  ;;  %v5296_v38 = vpop.permute.xlu2 %1085 }
 0x19f   : > { %v5298_v31 = vpop.permute.xlu1 %1065 }
 0x1a0   : > { %v5300_v37 = vpop.permute.xlu0 %1069 }
 0x1a1   : > { %7999 = vst [vmem:[#allocation113_spill] sm:$0xff] %v5300_v37  ;;  %v614_v37 = vld [vmem:[#allocation2 + $0xb2] sm:$0xff] }
 0x1a4   : > { %1221 = vrot.lane.b32.xlu2 %v4872_v44, %s4354_s28  ;;  %v8004_v44 = vld [vmem:[#allocation24_spill] sm:$0xff] }
 0x1a5   : > { %1219 = vrot.lane.b32.xlu1 %v4856_v1, %s4354_s28 }
 0x1a6   : > { %1223 = vrot.lane.b32.xlu0 %v4870_v15, %s4354_s28  ;;  %v5308_v62 = vpop.permute.xlu2 %1091 }
 0x1a7   : > { %8000 = vst [vmem:[#allocation114_spill] sm:$0xff] %v5308_v62  ;;  %v5310_v39 = vpop.permute.xlu1 %1071  ;;  %v590_v62 = vld [vmem:[#allocation2 + $0x111] sm:$0xff] }
 0x1a8   : > { %8001 = vst [vmem:[#allocation115_spill] sm:$0xff] %v5310_v39  ;;  %v5312_v49 = vpop.permute.xlu0 %1075  ;;  %v589_v39 = vld [vmem:[#allocation2 + $0x109] sm:$0xff] }
 0x1a9   : > { %8002 = vst [vmem:[#allocation116_spill] sm:$0xff] %v5312_v49  ;;  %v8042_v49 = vld [vmem:[#allocation67_spill] sm:$0xff] }
 0x1ac   : > { %1227 = vrot.lane.b32.xlu2 %v4890_v11, %s4354_s28  ;;  %v8010_v11 = vld [vmem:[#allocation29_spill] sm:$0xff] }
 0x1ad   : > { %1225 = vrot.lane.b32.xlu1 %v8003_v61, %s4354_s28 }
 0x1ae   : > { %1229 = vrot.lane.b32.xlu0 %v8004_v44, %s4354_s28  ;;  %v5320_v9 = vpop.permute.xlu2 %1097 }
 0x1af   : > { %8005 = vst [vmem:[#allocation20_spill] sm:$0xff] %v5320_v9  ;;  %v5322_v1 = vpop.permute.xlu1 %1077 }
 0x1b0   : > { %8006 = vst [vmem:[#allocation24_spill] sm:$0xff] %v5322_v1  ;;  %v5324_v15 = vpop.permute.xlu0 %1081  ;;  %v546_v1 = vld [vmem:[#allocation2 + $0x80] sm:$0xff] }
 0x1b1   : > { %8007 = vst [vmem:[#allocation117_spill] sm:$0xff] %v5324_v15  ;;  %v540_v15 = vld [vmem:[#allocation2 + $0x38] sm:$0xff] }
 0x1b4   : > { %1233 = vrot.lane.b32.xlu2 %v8008_v6, %s4354_s28  ;;  %v8013_v6 = vld [vmem:[#allocation31_spill] sm:$0xff] }
 0x1b5   : > { %1231 = vrot.lane.b32.xlu1 %v8009_v17, %s4354_s28 }
 0x1b6   : > { %1235 = vrot.lane.b32.xlu0 %v8010_v11, %s4354_s28  ;;  %v5332_v4 = vpop.permute.xlu2 %1103 }
 0x1b7   : > { %8011 = vst [vmem:[#allocation30_spill] sm:$0xff] %v5332_v4  ;;  %v5334_v61 = vpop.permute.xlu1 %1083 }
 0x1b8   : > { %v5336_v44 = vpop.permute.xlu0 %1087 }
 0x1b9   : > { %8012 = vst [vmem:[#allocation25_spill] sm:$0xff] %v5336_v44 }
 0x1bc   : > { %1239 = vrot.lane.b32.xlu2 %v5338_v2, %s4354_s28 }
 0x1bd   : > { %1237 = vrot.lane.b32.xlu1 %v8013_v6, %s4354_s28 }
 0x1be   : > { %1241 = vrot.lane.b32.xlu0 %v5340_v10, %s4354_s28  ;;  %v5348_v17 = vpop.permute.xlu2 %1109 }
 0x1bf   : > { %8014 = vst [vmem:[#allocation29_spill] sm:$0xff] %v5348_v17  ;;  %v5350_v11 = vpop.permute.xlu1 %1089  ;;  %v543_v17 = vld [vmem:[#allocation2 + $0x60] sm:$0xff] }
 0x1c0   : > { %8015 = vst [vmem:[#allocation31_spill] sm:$0xff] %v5350_v11  ;;  %v5352_v4 = vpop.permute.xlu0 %1093  ;;  %v611_v11 = vld [vmem:[#allocation2 + $0x92] sm:$0xff] }
 0x1c1   : > { %8016 = vst [vmem:[#allocation118_spill] sm:$0xff] %v5352_v4  ;;  %v574_v4 = vld [vmem:[#allocation2 + $0x51] sm:$0xff] }
 0x1c4   : > { %1309 = vrot.lane.b32.xlu2 %v540_v15, %s4355_s29 }
 0x1c5   : > { %1307 = vrot.lane.b32.xlu1 %v539_v54, %s4355_s29 }
 0x1c6   : > { %1311 = vrot.lane.b32.xlu0 %v8017_v55, %s4355_s29  ;;  %v5358_v6 = vpop.permute.xlu2 %1179 }
 0x1c7   : > { %v5360_v5 = vpop.permute.xlu1 %1095 }
 0x1c8   : > { %8018 = vst [vmem:[#allocation38_spill] sm:$0xff] %v5360_v5  ;;  %v5362_v27 = vpop.permute.xlu0 %1099 }
 0x1c9   : > { %8019 = vst [vmem:[#allocation119_spill] sm:$0xff] %v5362_v27  ;;  %v8024_v27 = vld [vmem:[#allocation44_spill] sm:$0xff] }
 0x1cc   : > { %1315 = vrot.lane.b32.xlu2 %v543_v17, %s4355_s29  ;;  %v8025_v17 = vld [vmem:[#allocation48_spill] sm:$0xff] }
 0x1cd   : > { %1313 = vrot.lane.b32.xlu1 %v8020_v58, %s4355_s29 }
 0x1ce   : > { %1317 = vrot.lane.b32.xlu0 %v8021_v53, %s4355_s29  ;;  %v5369_v15 = vpop.permute.xlu2 %1185 }
 0x1cf   : > { %v5371_v54 = vpop.permute.xlu1 %1101 }
 0x1d0   : > { %8022 = vst [vmem:[#allocation39_spill] sm:$0xff] %v5371_v54  ;;  %v5373_v55 = vpop.permute.xlu0 %1105 }
 0x1d1   : > { %8023 = vst [vmem:[#allocation43_spill] sm:$0xff] %v5373_v55  ;;  %v8028_v55 = vld [vmem:[#allocation49_spill] sm:$0xff] }
 0x1d4   : > { %1321 = vrot.lane.b32.xlu2 %v546_v1, %s4355_s29  ;;  %v8029_v1 = vld [vmem:[#allocation53_spill] sm:$0xff] }
 0x1d5   : > { %1319 = vrot.lane.b32.xlu1 %v8024_v27, %s4355_s29 }
 0x1d6   : > { %1323 = vrot.lane.b32.xlu0 %v8025_v17, %s4355_s29  ;;  %v5380_v9 = vpop.permute.xlu2 %1191 }
 0x1d7   : > { %v5382_v58 = vpop.permute.xlu1 %1107 }
 0x1d8   : > { %8026 = vst [vmem:[#allocation44_spill] sm:$0xff] %v5382_v58  ;;  %v5384_v53 = vpop.permute.xlu0 %1111  ;;  %v555_v58 = vld [vmem:[#allocation2 + $0xf0] sm:$0xff] }
 0x1d9   : > { %8027 = vst [vmem:[#allocation48_spill] sm:$0xff] %v5384_v53 }
 0x1dc   : > { %1327 = vrot.lane.b32.xlu2 %v549_v21, %s4355_s29  ;;  %v8032_v21 = vld [vmem:[#allocation57_spill] sm:$0xff] }
 0x1dd   : > { %1325 = vrot.lane.b32.xlu1 %v8028_v55, %s4355_s29 }
 0x1de   : > { %1329 = vrot.lane.b32.xlu0 %v8029_v1, %s4355_s29  ;;  %v5391_v54 = vpop.permute.xlu2 %1197 }
 0x1df   : > { %8030 = vst [vmem:[#allocation49_spill] sm:$0xff] %v5391_v54  ;;  %v5393_v27 = vpop.permute.xlu1 %1113  ;;  %v596_v54 = vld [vmem:[#allocation2 + $0x159] sm:$0xff] }
 0x1e0   : > { %8031 = vst [vmem:[#allocation53_spill] sm:$0xff] %v5393_v27  ;;  %v5395_v17 = vpop.permute.xlu0 %1181 }
 0x1e4   : > { %1333 = vrot.lane.b32.xlu2 %v552_v35, %s4355_s29  ;;  %v8034_v35 = vld [vmem:[#allocation61_spill] sm:$0xff] }
 0x1e5   : > { %1331 = vrot.lane.b32.xlu1 %v4982_v33, %s4355_s29 }
 0x1e6   : > { %1335 = vrot.lane.b32.xlu0 %v8032_v21, %s4355_s29  ;;  %v5402_v53 = vpop.permute.xlu2 %1203 }
 0x1e7   : > { %8033 = vst [vmem:[#allocation57_spill] sm:$0xff] %v5402_v53  ;;  %v5404_v55 = vpop.permute.xlu1 %1183  ;;  %v8036_v53 = vld [vmem:[#allocation62_spill] sm:$0xff] }
 0x1e8   : > { %v5406_v1 = vpop.permute.xlu0 %1187 }
 0x1ec   : > { %1339 = vrot.lane.b32.xlu2 %v555_v58, %s4355_s29  ;;  %v8037_v58 = vld [vmem:[#allocation66_spill] sm:$0xff] }
 0x1ed   : > { %1337 = vrot.lane.b32.xlu1 %v4999_v43, %s4355_s29 }
 0x1ee   : > { %1341 = vrot.lane.b32.xlu0 %v8034_v35, %s4355_s29  ;;  %v5413_v27 = vpop.permute.xlu2 %1209 }
 0x1ef   : > { %8035 = vst [vmem:[#allocation61_spill] sm:$0xff] %v5413_v27  ;;  %v5415_v33 = vpop.permute.xlu1 %1189  ;;  %v8041_v27 = vld [vmem:[#allocation72_spill] sm:$0xff] }
 0x1f0   : > { %v5417_v21 = vpop.permute.xlu0 %1193 }
 0x1f4   : > { %1345 = vrot.lane.b32.xlu2 %v558_v16, %s4355_s29  ;;  %v8043_v16 = vld [vmem:[#allocation71_spill] sm:$0xff] }
 0x1f5   : > { %1343 = vrot.lane.b32.xlu1 %v8036_v53, %s4355_s29 }
 0x1f6   : > { %1347 = vrot.lane.b32.xlu0 %v8037_v58, %s4355_s29  ;;  %v5424_v5 = vpop.permute.xlu2 %1215 }
 0x1f7   : > { %8038 = vst [vmem:[#allocation62_spill] sm:$0xff] %v5424_v5  ;;  %v5426_v43 = vpop.permute.xlu1 %1195  ;;  %v336_v5 = vld [vmem:[%s7831_s1] sm:$0xff] }
 0x1f8   : > { %8039 = vst [vmem:[#allocation66_spill] sm:$0xff] %v5426_v43  ;;  %v5428_v35 = vpop.permute.xlu0 %1199  ;;  %v625_v43 = vld [vmem:[#allocation2 + $0x13a] sm:$0xff] }
 0x1f9   : > { %8040 = vst [vmem:[#allocation120_spill] sm:$0xff] %v5428_v35  ;;  %v584_v35 = vld [vmem:[#allocation2 + $0xc9] sm:$0xff] }
 0x1fc   : > { %1351 = vrot.lane.b32.xlu2 %v8041_v27, %s4355_s29  ;;  %v8048_v27 = vld [vmem:[#allocation77_spill] sm:$0xff] }
 0x1fd   : > { %1349 = vrot.lane.b32.xlu1 %v8042_v49, %s4355_s29 }
 0x1fe   : > { %1353 = vrot.lane.b32.xlu0 %v8043_v16, %s4355_s29  ;;  %v5436_v52 = vpop.permute.xlu2 %1221 }
 0x1ff   : > { %8044 = vst [vmem:[#allocation72_spill] sm:$0xff] %v5436_v52  ;;  %v5438_v53 = vpop.permute.xlu1 %1201  ;;  %v572_v52 = vld [vmem:[#allocation2 + $0x39] sm:$0xff] }
 0x200   : > { %8045 = vst [vmem:[#allocation67_spill] sm:$0xff] %v5438_v53  ;;  %v5440_v58 = vpop.permute.xlu0 %1205  ;;  %v569_v53 = vld [vmem:[#allocation2 + $0x198] sm:$0xff] }
 0x201   : > { %8046 = vst [vmem:[#allocation71_spill] sm:$0xff] %v5440_v58 }
 0x204   : > { %1357 = vrot.lane.b32.xlu2 %v5062_v24, %s4355_s29  ;;  %v8051_v24 = vld [vmem:[#allocation81_spill] sm:$0xff] }
 0x205   : > { %1355 = vrot.lane.b32.xlu1 %v8047_v51, %s4355_s29 }
 0x206   : > { %1359 = vrot.lane.b32.xlu0 %v8048_v27, %s4355_s29  ;;  %v5448_v23 = vpop.permute.xlu2 %1227 }
 0x207   : > { %8049 = vst [vmem:[#allocation73_spill] sm:$0xff] %v5448_v23  ;;  %v5450_v49 = vpop.permute.xlu1 %1207  ;;  %v570_v23 = vld [vmem:[#allocation2 + $0x1a0] sm:$0xff] }
 0x208   : > { %8050 = vst [vmem:[#allocation77_spill] sm:$0xff] %v5450_v49  ;;  %v5452_v16 = vpop.permute.xlu0 %1211  ;;  %v571_v49 = vld [vmem:[#allocation2 + $0x31] sm:$0xff] }
 0x20c   : > { %1363 = vrot.lane.b32.xlu2 %v5080_v25, %s4355_s29 }
 0x20d   : > { %1361 = vrot.lane.b32.xlu1 %v5066_v32, %s4355_s29 }
 0x20e   : > { %1365 = vrot.lane.b32.xlu0 %v8051_v24, %s4355_s29  ;;  %v5460_v58 = vpop.permute.xlu2 %1233 }
 0x20f   : > { %8052 = vst [vmem:[#allocation81_spill] sm:$0xff] %v5460_v58  ;;  %v5462_v51 = vpop.permute.xlu1 %1213  ;;  %v573_v58 = vld [vmem:[#allocation2 + $0x49] sm:$0xff] }
 0x210   : > { %v5464_v27 = vpop.permute.xlu0 %1217 }
 0x211   : > { %8053 = vst [vmem:[#allocation121_spill] sm:$0xff] %v5464_v27  ;;  %v595_v27 = vld [vmem:[#allocation2 + $0x151] sm:$0xff] }
 0x214   : > { %1369 = vrot.lane.b32.xlu2 %v570_v23, %s4355_s29 }
 0x215   : > { %1367 = vrot.lane.b32.xlu1 %v569_v53, %s4355_s29 }
 0x216   : > { %1435 = vrot.lane.b32.xlu0 %v571_v49, %s4356_s30  ;;  %v5469_v32 = vpop.permute.xlu2 %1239 }
 0x217   : > { %8054 = vst [vmem:[#allocation122_spill] sm:$0xff] %v5469_v32  ;;  %v5471_v25 = vpop.permute.xlu1 %1219  ;;  %v576_v32 = vld [vmem:[#allocation2 + $0x69] sm:$0xff] }
 0x218   : > { %8055 = vst [vmem:[#allocation123_spill] sm:$0xff] %v5471_v25  ;;  %v5473_v24 = vpop.permute.xlu0 %1223  ;;  %v581_v25 = vld [vmem:[#allocation2 + $0xa9] sm:$0xff] }
 0x219   : > { %8056 = vst [vmem:[#allocation124_spill] sm:$0xff] %v5473_v24  ;;  %v579_v24 = vld [vmem:[#allocation2 + $0x91] sm:$0xff] }
 0x21c   : > { %1439 = vrot.lane.b32.xlu2 %v573_v58, %s4356_s30 }
 0x21d   : > { %1437 = vrot.lane.b32.xlu1 %v572_v52, %s4356_s30 }
 0x21e   : > { %1441 = vrot.lane.b32.xlu0 %v574_v4, %s4356_s30  ;;  %v5478_v23 = vpop.permute.xlu2 %1309 }
 0x21f   : > { %v5480_v53 = vpop.permute.xlu1 %1225 }
 0x220   : > { %8057 = vst [vmem:[#allocation125_spill] sm:$0xff] %v5480_v53  ;;  %v5482_v49 = vpop.permute.xlu0 %1229  ;;  %v580_v53 = vld [vmem:[#allocation2 + $0x99] sm:$0xff] }
 0x221   : > { %8058 = vst [vmem:[#allocation126_spill] sm:$0xff] %v5482_v49  ;;  %v582_v49 = vld [vmem:[#allocation2 + $0xb1] sm:$0xff] }
 0x224   : > { %1445 = vrot.lane.b32.xlu2 %v576_v32, %s4356_s30 }
 0x225   : > { %1443 = vrot.lane.b32.xlu1 %v575_v20, %s4356_s30 }
 0x226   : > { %1447 = vrot.lane.b32.xlu0 %v577_v63, %s4356_s30  ;;  %v5487_v58 = vpop.permute.xlu2 %1315 }
 0x227   : > { %v5489_v52 = vpop.permute.xlu1 %1231 }
 0x228   : > { %8059 = vst [vmem:[#allocation127_spill] sm:$0xff] %v5489_v52  ;;  %v5491_v4 = vpop.permute.xlu0 %1235  ;;  %v583_v52 = vld [vmem:[#allocation2 + $0xc1] sm:$0xff] }
 0x229   : > { %8060 = vst [vmem:[#allocation128_spill] sm:$0xff] %v5491_v4  ;;  %v585_v4 = vld [vmem:[#allocation2 + $0xd9] sm:$0xff] }
 0x22c   : > { %1451 = vrot.lane.b32.xlu2 %v579_v24, %s4356_s30 }
 0x22d   : > { %1449 = vrot.lane.b32.xlu1 %v578_v50, %s4356_s30 }
 0x22e   : > { %1453 = vrot.lane.b32.xlu0 %v580_v53, %s4356_s30  ;;  %v5496_v32 = vpop.permute.xlu2 %1321 }
 0x22f   : > { %v5498_v20 = vpop.permute.xlu1 %1237 }
 0x230   : > { %8061 = vst [vmem:[#allocation129_spill] sm:$0xff] %v5498_v20  ;;  %v5500_v63 = vpop.permute.xlu0 %1241  ;;  %v586_v20 = vld [vmem:[#allocation2 + $0xe1] sm:$0xff] }
 0x231   : > { %8062 = vst [vmem:[#allocation130_spill] sm:$0xff] %v5500_v63  ;;  %v588_v63 = vld [vmem:[#allocation2 + $0xf9] sm:$0xff] }
 0x234   : > { %1457 = vrot.lane.b32.xlu2 %v582_v49, %s4356_s30 }
 0x235   : > { %1455 = vrot.lane.b32.xlu1 %v581_v25, %s4356_s30 }
 0x236   : > { %1459 = vrot.lane.b32.xlu0 %v583_v52, %s4356_s30  ;;  %v5505_v24 = vpop.permute.xlu2 %1327 }
 0x237   : > { %8063 = vst [vmem:[#allocation131_spill] sm:$0xff] %v5505_v24  ;;  %v5507_v50 = vpop.permute.xlu1 %1307  ;;  %v587_v24 = vld [vmem:[#allocation2 + $0xf1] sm:$0xff] }
 0x238   : > { %v5509_v53 = vpop.permute.xlu0 %1311 }
 0x23c   : > { %1463 = vrot.lane.b32.xlu2 %v585_v4, %s4356_s30 }
 0x23d   : > { %1461 = vrot.lane.b32.xlu1 %v584_v35, %s4356_s30 }
 0x23e   : > { %1465 = vrot.lane.b32.xlu0 %v586_v20, %s4356_s30  ;;  %v5514_v49 = vpop.permute.xlu2 %1333 }
 0x23f   : > { %8064 = vst [vmem:[#allocation132_spill] sm:$0xff] %v5514_v49  ;;  %v5516_v25 = vpop.permute.xlu1 %1313  ;;  %v591_v49 = vld [vmem:[#allocation2 + $0x121] sm:$0xff] }
 0x240   : > { %v5518_v52 = vpop.permute.xlu0 %1317 }
 0x244   : > { %1469 = vrot.lane.b32.xlu2 %v588_v63, %s4356_s30 }
 0x245   : > { %1467 = vrot.lane.b32.xlu1 %v587_v24, %s4356_s30 }
 0x246   : > { %1471 = vrot.lane.b32.xlu0 %v589_v39, %s4356_s30  ;;  %v5523_v4 = vpop.permute.xlu2 %1339 }
 0x247   : > { %v5525_v35 = vpop.permute.xlu1 %1319 }
 0x248   : > { %v5527_v20 = vpop.permute.xlu0 %1323 }
 0x249   : > { %8065 = vst [vmem:[#allocation133_spill] sm:$0xff] %v5527_v20  ;;  %v623_v20 = vld [vmem:[#allocation2 + $0x122] sm:$0xff] }
 0x24c   : > { %1475 = vrot.lane.b32.xlu2 %v591_v49, %s4356_s30 }
 0x24d   : > { %1473 = vrot.lane.b32.xlu1 %v590_v62, %s4356_s30 }
 0x24e   : > { %1477 = vrot.lane.b32.xlu0 %v592_v60, %s4356_s30  ;;  %v5532_v63 = vpop.permute.xlu2 %1345 }
 0x24f   : > { %8066 = vst [vmem:[#allocation134_spill] sm:$0xff] %v5532_v63  ;;  %v5534_v24 = vpop.permute.xlu1 %1325  ;;  %v597_v63 = vld [vmem:[#allocation2 + $0x169] sm:$0xff] }
 0x250   : > { %8067 = vst [vmem:[#allocation135_spill] sm:$0xff] %v5534_v24  ;;  %v5536_v39 = vpop.permute.xlu0 %1329  ;;  %v598_v24 = vld [vmem:[#allocation2 + $0x171] sm:$0xff] }
 0x251   : > { %8068 = vst [vmem:[#allocation136_spill] sm:$0xff] %v5536_v39  ;;  %v607_v39 = vld [vmem:[#allocation2 + $0x62] sm:$0xff] }
 0x254   : > { %1481 = vrot.lane.b32.xlu2 %v594_v29, %s4356_s30 }
 0x255   : > { %1479 = vrot.lane.b32.xlu1 %v593_v45, %s4356_s30 }
 0x256   : > { %1483 = vrot.lane.b32.xlu0 %v595_v27, %s4356_s30  ;;  %v5541_v49 = vpop.permute.xlu2 %1351 }
 0x257   : > { %8069 = vst [vmem:[#allocation137_spill] sm:$0xff] %v5541_v49  ;;  %v5543_v62 = vpop.permute.xlu1 %1331  ;;  %v601_v49 = vld [vmem:[#allocation2 + $0x199] sm:$0xff] }
 0x258   : > { %8070 = vst [vmem:[#allocation138_spill] sm:$0xff] %v5543_v62  ;;  %v5545_v60 = vpop.permute.xlu0 %1335  ;;  %v605_v62 = vld [vmem:[#allocation2 + $0x4a] sm:$0xff] }
 0x259   : > { %8071 = vst [vmem:[#allocation139_spill] sm:$0xff] %v5545_v60  ;;  %v602_v60 = vld [vmem:[#allocation2 + $0x1a1] sm:$0xff] }
 0x25c   : > { %1487 = vrot.lane.b32.xlu2 %v597_v63, %s4356_s30 }
 0x25d   : > { %1485 = vrot.lane.b32.xlu1 %v596_v54, %s4356_s30 }
 0x25e   : > { %1489 = vrot.lane.b32.xlu0 %v598_v24, %s4356_s30  ;;  %v5550_v29 = vpop.permute.xlu2 %1357 }
 0x25f   : > { %8072 = vst [vmem:[#allocation140_spill] sm:$0xff] %v5550_v29  ;;  %v5552_v45 = vpop.permute.xlu1 %1337  ;;  %v603_v29 = vld [vmem:[#allocation2 + $0x32] sm:$0xff] }
 0x260   : > { %8073 = vst [vmem:[#allocation141_spill] sm:$0xff] %v5552_v45  ;;  %v5554_v27 = vpop.permute.xlu0 %1341  ;;  %v604_v45 = vld [vmem:[#allocation2 + $0x3a] sm:$0xff] }
 0x264   : > { %1493 = vrot.lane.b32.xlu2 %v5216_v28, %s4356_s30 }
 0x265   : > { %1491 = vrot.lane.b32.xlu1 %v5202_v57, %s4356_s30 }
 0x266   : > { %1495 = vrot.lane.b32.xlu0 %v601_v49, %s4356_s30  ;;  %v5561_v63 = vpop.permute.xlu2 %1363 }
 0x267   : > { %8074 = vst [vmem:[#allocation142_spill] sm:$0xff] %v5561_v63  ;;  %v5563_v54 = vpop.permute.xlu1 %1343  ;;  %v606_v63 = vld [vmem:[#allocation2 + $0x52] sm:$0xff] }
 0x268   : > { %8075 = vst [vmem:[#allocation143_spill] sm:$0xff] %v5563_v54  ;;  %v5565_v24 = vpop.permute.xlu0 %1347 }
 0x269   : > { %8076 = vst [vmem:[#allocation144_spill] sm:$0xff] %v5565_v24  ;;  %v608_v24 = vld [vmem:[#allocation2 + $0x6a] sm:$0xff] }
 0x26c   : > { %1563 = vrot.lane.b32.xlu2 %v603_v29, %s4357_s6 }
 0x26d   : > { %1497 = vrot.lane.b32.xlu1 %v602_v60, %s4356_s30 }
 0x26e   : > { %1565 = vrot.lane.b32.xlu0 %v604_v45, %s4357_s6  ;;  %v5570_v28 = vpop.permute.xlu2 %1369 }
 0x26f   : > { %8077 = vst [vmem:[#allocation145_spill] sm:$0xff] %v5570_v28  ;;  %v5572_v57 = vpop.permute.xlu1 %1349  ;;  %v609_v28 = vld [vmem:[#allocation2 + $0x7a] sm:$0xff] }
 0x270   : > { %8078 = vst [vmem:[#allocation146_spill] sm:$0xff] %v5572_v57  ;;  %v5574_v49 = vpop.permute.xlu0 %1353  ;;  %v610_v57 = vld [vmem:[#allocation2 + $0x82] sm:$0xff] }
 0x271   : > { %8079 = vst [vmem:[#allocation147_spill] sm:$0xff] %v5574_v49  ;;  %v612_v49 = vld [vmem:[#allocation2 + $0x9a] sm:$0xff] }
 0x274   : > { %1569 = vrot.lane.b32.xlu2 %v606_v63, %s4357_s6 }
 0x275   : > { %1567 = vrot.lane.b32.xlu1 %v605_v62, %s4357_s6 }
 0x276   : > { %1571 = vrot.lane.b32.xlu0 %v607_v39, %s4357_s6  ;;  %v5579_v29 = vpop.permute.xlu2 %1439 }
 0x277   : > { %v5581_v60 = vpop.permute.xlu1 %1355 }
 0x278   : > { %8080 = vst [vmem:[#allocation148_spill] sm:$0xff] %v5581_v60  ;;  %v5583_v45 = vpop.permute.xlu0 %1359  ;;  %v613_v60 = vld [vmem:[#allocation2 + $0xaa] sm:$0xff] }
 0x279   : > { %8081 = vst [vmem:[#allocation149_spill] sm:$0xff] %v5583_v45  ;;  %v615_v45 = vld [vmem:[#allocation2 + $0xc2] sm:$0xff] }
 0x27c   : > { %1575 = vrot.lane.b32.xlu2 %v609_v28, %s4357_s6 }
 0x27d   : > { %1573 = vrot.lane.b32.xlu1 %v608_v24, %s4357_s6 }
 0x27e   : > { %1577 = vrot.lane.b32.xlu0 %v610_v57, %s4357_s6  ;;  %v5588_v63 = vpop.permute.xlu2 %1445 }
 0x27f   : > { %v5590_v62 = vpop.permute.xlu1 %1361 }
 0x280   : > { %8082 = vst [vmem:[#allocation150_spill] sm:$0xff] %v5590_v62  ;;  %v5592_v39 = vpop.permute.xlu0 %1365  ;;  %v616_v62 = vld [vmem:[#allocation2 + $0xca] sm:$0xff] }
 0x281   : > { %8083 = vst [vmem:[#allocation151_spill] sm:$0xff] %v5592_v39  ;;  %v618_v39 = vld [vmem:[#allocation2 + $0xe2] sm:$0xff] }
 0x284   : > { %1581 = vrot.lane.b32.xlu2 %v612_v49, %s4357_s6 }
 0x285   : > { %1579 = vrot.lane.b32.xlu1 %v611_v11, %s4357_s6 }
 0x286   : > { %1583 = vrot.lane.b32.xlu0 %v613_v60, %s4357_s6  ;;  %v5597_v28 = vpop.permute.xlu2 %1451 }
 0x287   : > { %8084 = vst [vmem:[#allocation152_spill] sm:$0xff] %v5597_v28  ;;  %v5599_v24 = vpop.permute.xlu1 %1367 }
 0x288   : > { %8085 = vst [vmem:[#allocation153_spill] sm:$0xff] %v5599_v24  ;;  %v5601_v57 = vpop.permute.xlu0 %1435  ;;  %v619_v24 = vld [vmem:[#allocation2 + $0xf2] sm:$0xff] }
 0x28c   : > { %1587 = vrot.lane.b32.xlu2 %v615_v45, %s4357_s6 }
 0x28d   : > { %1585 = vrot.lane.b32.xlu1 %v614_v37, %s4357_s6 }
 0x28e   : > { %1589 = vrot.lane.b32.xlu0 %v616_v62, %s4357_s6  ;;  %v5606_v49 = vpop.permute.xlu2 %1457  ;;  %v344_v62 = vld [vmem:[%s7831_s1 + $0x40] sm:$0xff] }
 0x28f   : > { %8086 = vst [vmem:[#allocation154_spill] sm:$0xff] %v5606_v49  ;;  %v5608_v11 = vpop.permute.xlu1 %1437  ;;  %2029 = vmatpush.msra.mxu0 %v344_v62  ;;  %4262 = vmatpush.msra.mxu2 %v344_v62  ;;  %v341_v62 = vld [vmem:[%s7831_s1 + $0x28] sm:$0xff] }
 0x290   : > { %v5610_v60 = vpop.permute.xlu0 %1441 }
 0x294   : > { %1593 = vrot.lane.b32.xlu2 %v618_v39, %s4357_s6  ;;  %v343_v39 = vld [vmem:[%s7831_s1 + $0x38] sm:$0xff] }
 0x295   : > { %1591 = vrot.lane.b32.xlu1 %v617_v48, %s4357_s6  ;;  %v342_v48 = vld [vmem:[%s7831_s1 + $0x30] sm:$0xff]  ;;  %2030 = vmatpush.msra.mxu0 %v343_v39 }
 0x296   : > { %1595 = vrot.lane.b32.xlu0 %v619_v24, %s4357_s6  ;;  %v5615_v45 = vpop.permute.xlu2 %1463  ;;  %v620_v24 = vld [vmem:[#allocation2 + $0xfa] sm:$0xff]  ;;  %4263 = vmatpush.msra.mxu2 %v343_v39 }
 0x297   : > { %8087 = vst [vmem:[#allocation155_spill] sm:$0xff] %v5615_v45  ;;  %v5617_v37 = vpop.permute.xlu1 %1443  ;;  %v622_v45 = vld [vmem:[#allocation2 + $0x112] sm:$0xff]  ;;  %2031 = vmatpush.msra.mxu0 %v342_v48  ;;  %v340_v39 = vld [vmem:[%s7831_s1 + $0x20] sm:$0xff] }
 0x298   : > { %v5622_v49 = vpop.permute.xlu0 %1447  ;;  %4264 = vmatpush.msra.mxu2 %v342_v48  ;;  %v339_v48 = vld [vmem:[%s7831_s1 + $0x18] sm:$0xff] }
 0x299   : > { %2032 = vmatpush.msra.mxu0 %v341_v62 }
 0x29a   : > { %4265 = vmatpush.msra.mxu2 %v341_v62  ;;  %v337_v62 = vld [vmem:[%s7831_s1 + $0x8] sm:$0xff] }
 0x29b   : > { %2033 = vmatpush.msra.mxu0 %v340_v39 }
 0x29c   : > { %1599 = vrot.lane.b32.xlu2 %v621_v47, %s4357_s6  ;;  %4266 = vmatpush.msra.mxu2 %v340_v39 }
 0x29d   : > { %1597 = vrot.lane.b32.xlu1 %v620_v24, %s4357_s6  ;;  %v624_v24 = vld [vmem:[#allocation2 + $0x12a] sm:$0xff]  ;;  %2034 = vmatpush.msra.mxu0 %v339_v48 }
 0x29e   : > { %1601 = vrot.lane.b32.xlu0 %v622_v45, %s4357_s6  ;;  %v5636_v28 = vpop.permute.xlu2 %1469  ;;  %v338_v45 = vld [vmem:[%s7831_s1 + $0x10] sm:$0xff]  ;;  %4267 = vmatpush.msra.mxu2 %v339_v48  ;;  %v626_v48 = vld [vmem:[#allocation2 + $0x142] sm:$0xff] }
 0x29f   : > { %v5638_v54 = vpop.permute.xlu1 %1449  ;;  %2035 = vmatpush.msra.mxu0 %v338_v45 }
 0x2a0   : > { %v5643_v47 = vpop.permute.xlu0 %1453  ;;  %4268 = vmatpush.msra.mxu2 %v338_v45 }
 0x2a1   : > { %8088 = vst [vmem:[#allocation156_spill] sm:$0xff] %v5643_v47  ;;  %2036 = vmatpush.msra.mxu0 %v337_v62 }
 0x2a2   : > { %4269 = vmatpush.msra.mxu2 %v337_v62  ;;  %v630_v62 = vld [vmem:[#allocation2 + $0x172] sm:$0xff] }
 0x2a3   : > { %2037 = vmatpush.msra.mxu0 %v336_v5 }
 0x2a4   : > { %1605 = vrot.lane.b32.xlu2 %v624_v24, %s4357_s6  ;;  %v627_v24 = vld [vmem:[#allocation2 + $0x152] sm:$0xff]  ;;  %4270 = vmatpush.msra.mxu2 %v336_v5 }
 0x2a5   : > { %1603 = vrot.lane.b32.xlu1 %v623_v20, %s4357_s6  ;;  %v628_v20 = vld [vmem:[#allocation2 + $0x15a] sm:$0xff] }
 0x2a6   : > { %1607 = vrot.lane.b32.xlu0 %v625_v43, %s4357_s6  ;;  %v5657_v47 = vpop.permute.xlu2 %1475 }
 0x2a7   : > { %8089 = vst [vmem:[#allocation157_spill] sm:$0xff] %v5657_v47  ;;  %v5659_v39 = vpop.permute.xlu1 %1455  ;;  %v629_v47 = vld [vmem:[#allocation2 + $0x16a] sm:$0xff] }
 0x2a8   : > { %8090 = vst [vmem:[#allocation158_spill] sm:$0xff] %v5659_v39  ;;  %v5664_v44 = vpop.permute.xlu0 %1459 }
 0x2a9   : > { %8091 = vst [vmem:[#allocation159_spill] sm:$0xff] %v5664_v44  ;;  %v8099_v44 = vld [vmem:[#allocation35_spill] sm:$0xff] }
 0x2ac   : > { %1611 = vrot.lane.b32.xlu2 %v627_v24, %s4357_s6 }
 0x2ad   : > { %1609 = vrot.lane.b32.xlu1 %v626_v48, %s4357_s6 }
 0x2ae   : > { %1613 = vrot.lane.b32.xlu0 %v628_v20, %s4357_s6  ;;  %v5669_v43 = vpop.permute.xlu2 %1481  ;;  %v633_v20 = vld [vmem:[#allocation2 + $0x19a] sm:$0xff] }
 0x2af   : > { %8092 = vst [vmem:[#allocation160_spill] sm:$0xff] %v5669_v43  ;;  %v5671_v45 = vpop.permute.xlu1 %1461  ;;  %v634_v43 = vld [vmem:[#allocation2 + $0x1a2] sm:$0xff] }
 0x2b0   : > { %8093 = vst [vmem:[#allocation161_spill] sm:$0xff] %v5671_v45  ;;  %v5673_v39 = vpop.permute.xlu0 %1465 }
 0x2b1   : > { %8094 = vst [vmem:[#allocation162_spill] sm:$0xff] %v5673_v39  ;;  %v346_v39 = vld [vmem:[#allocation2] sm:$0xff] }
 0x2b4   : > { %1617 = vrot.lane.b32.xlu2 %v630_v62, %s4357_s6  ;;  %v8098_v62 = vld [vmem:[#allocation7_spill] sm:$0xff] }
 0x2b5   : > { %1615 = vrot.lane.b32.xlu1 %v629_v47, %s4357_s6 }
 0x2b6   : > { %1619 = vrot.lane.b32.xlu0 %v5338_v2, %s4357_s6  ;;  %v5679_v5 = vpop.permute.xlu2 %1487 }
 0x2b7   : > { %8095 = vst [vmem:[#allocation163_spill] sm:$0xff] %v5679_v5  ;;  %v5681_v24 = vpop.permute.xlu1 %1467  ;;  %v1659_v5 = vsel %vm225_vm0, %v346_v39, %v8098_v62 }
 0x2b8   : > { %v5683_v48 = vpop.permute.xlu0 %1471 }
 0x2b9   : > { %8096 = vst [vmem:[#allocation164_spill] sm:$0xff] %v5683_v48  ;;  %v1692_v48 = vsel %vm1691_vm3, %v1659_v5, %v8099_v44 }
 0x2bc   : > { %1623 = vrot.lane.b32.xlu2 %v633_v20, %s4357_s6 }
 0x2bd   : > { %1621 = vrot.lane.b32.xlu1 %v5340_v10, %s4357_s6  ;;  %v1725_v10 = vsel %vm1724_vm4, %v1692_v48, %v5138_v30 }
 0x2be   : > { %1625 = vrot.lane.b32.xlu0 %v634_v43, %s4357_s6  ;;  %v5689_v47 = vpop.permute.xlu2 %1493  ;;  %v1758_v43 = vsel %vm1757_vm6, %v1725_v10, %v5264_v12  ;;  %v347_v10 = vld [vmem:[#allocation2 + $0x8] sm:$0xff] }
 0x2bf   : > { %8097 = vst [vmem:[#allocation165_spill] sm:$0xff] %v5689_v47  ;;  %v5691_v2 = vpop.permute.xlu1 %1473  ;;  %v1791_v20 = vsel %vm1790_vm5, %v1758_v43, %v5358_v6 }
 0x2c0   : > { %v5695_v45 = vpop.permute.xlu0 %1477  ;;  %v1824_v39 = vsel %vm1823_vm7, %v1791_v20, %v5507_v50  ;;  %v8103_v20 = vld [vmem:[#allocation10_spill] sm:$0xff] }
 0x2c1   : > { %v1857_v44 = vsel %vm1856_vm9, %v1824_v39, %v5601_v57  ;;  %v1660_v57 = vsel %vm225_vm0, %v347_v10, %v8103_v20  ;;  %v8104_v39 = vld [vmem:[#allocation52_spill] sm:$0xff] }
 0x2c2   : > { %v1693_v47 = vsel %vm1691_vm3, %v1660_v57, %v8104_v39  ;;  %v4299_v39 = vld [vmem:[#allocation2 + $0x18] sm:$0xff] }
 0x2c6   : > { %v1564_v5 = vpop.permute.xlu2 %1563 }
 0x2c7   : > { %v5709_v62 = vpop.permute.xlu1 %1479  ;;  %v1890_v30 = vsel %vm1889_vm8, %v1857_v44, %v1564_v5  ;;  %v1726_v44 = vsel %vm1724_vm4, %v1693_v47, %v5100_v0 }
 0x2c8   : > { %v5712_v48 = vpop.permute.xlu0 %1483  ;;  %4194 = vmatmul.msk.f32.vlgmr.msra.gmra.mxu0 %vm1925_vm10, %v1890_v30  ;;  %v1759_v5 = vsel %vm1757_vm6, %v1726_v44, %v5274_v14  ;;  %v8106_v14 = vld [vmem:[#allocation55_spill] sm:$0xff] }
 0x2c9   : > { %v1792_v30 = vsel %vm1790_vm5, %v1759_v5, %v5395_v17 }
 0x2ce   : > { %v1570_v47 = vpop.permute.xlu2 %1569 }
 0x2cf   : > { %v5715_v12 = vpop.permute.xlu1 %1485 }
 0x2d0   : > { %v5717_v6 = vpop.permute.xlu0 %1489 }
 0x2d1   : > { %8100 = vst [vmem:[#allocation7_spill] sm:$0xff] %v5717_v6 }
 0x2d7   : > { %v5719_v50 = vpop.permute.xlu1 %1491 }
 0x2d8   : > { %8101 = vst [vmem:[#allocation35_spill] sm:$0xff] %v5719_v50  ;;  %v5721_v43 = vpop.permute.xlu0 %1495  ;;  %v1825_v50 = vsel %vm1823_vm7, %v1792_v30, %v5478_v23 }
 0x2d9   : > { %8102 = vst [vmem:[#allocation166_spill] sm:$0xff] %v5721_v43  ;;  %v1858_v10 = vsel %vm1856_vm9, %v1825_v50, %v5608_v11  ;;  %v8105_v43 = vld [vmem:[#allocation9_spill] sm:$0xff] }
 0x2da   : > { %v1661_v0 = vsel %vm225_vm0, %v4299_v39, %v8105_v43 }
 0x2db   : > { %v1694_v17 = vsel %vm1691_vm3, %v1661_v0, %v8106_v14  ;;  %v1576_v0 = vpop.permute.xlu2 %1575 }
 0x2dc   : > { %v1727_v23 = vsel %vm1724_vm4, %v1694_v17, %v5140_v34 }
 0x2dd   : > { %v1760_v44 = vsel %vm1757_vm6, %v1727_v23, %v5236_v3  ;;  %v8108_v3 = vld [vmem:[#allocation40_spill] sm:$0xff] }
 0x2de   : > { %v1793_v11 = vsel %vm1790_vm5, %v1760_v44, %v5404_v55 }
 0x2df   : > { %v5735_v6 = vpop.permute.xlu1 %1497  ;;  %v1826_v50 = vsel %vm1823_vm7, %v1793_v11, %v5509_v53 }
 0x2e0   : > { %v1566_v20 = vpop.permute.xlu0 %1565  ;;  %v1859_v43 = vsel %vm1856_vm9, %v1826_v50, %v5579_v29  ;;  %v4301_v50 = vld [vmem:[#allocation2 + $0x30] sm:$0xff] }
 0x2e1   : > { %v1891_v57 = vsel %vm1889_vm8, %v1858_v10, %v1566_v20  ;;  %v4300_v20 = vld [vmem:[#allocation2 + $0x20] sm:$0xff] }
 0x2e2   : > { %4195 = vmatmul.msk.f32.gmra.mxu0 %vm1925_vm10, %v1891_v57  ;;  %v8107_v57 = vld [vmem:[#allocation12_spill] sm:$0xff] }
 0x2e3   : > { %v1662_v34 = vsel %vm225_vm0, %v4300_v20, %v8107_v57  ;;  %v5791_v57 = vpop.permute.xlu2 %1581 }
 0x2e4   : > { %v1695_v39 = vsel %vm1691_vm3, %v1662_v34, %v8108_v3  ;;  %v4302_v3 = vld [vmem:[#allocation2 + $0x38] sm:$0xff] }
 0x2e5   : > { %v1728_v55 = vsel %vm1724_vm4, %v1695_v39, %v5150_v36  ;;  %v8109_v36 = vld [vmem:[#allocation4_spill] sm:$0xff]  ;;  %v8111_v39 = vld [vmem:[#allocation5_spill] sm:$0xff] }
 0x2e6   : > { %v1761_v53 = vsel %vm1757_vm6, %v1728_v55, %v5276_v18  ;;  %v8110_v18 = vld [vmem:[#allocation56_spill] sm:$0xff] }
 0x2e7   : > { %v1568_v5 = vpop.permute.xlu1 %1567  ;;  %v1794_v29 = vsel %vm1790_vm5, %v1761_v53, %v5369_v15 }
 0x2e8   : > { %v1572_v30 = vpop.permute.xlu0 %1571  ;;  %v1892_v10 = vsel %vm1889_vm8, %v1859_v43, %v1568_v5  ;;  %v1827_v14 = vsel %vm1823_vm7, %v1794_v29, %v5516_v25  ;;  %v1663_v5 = vsel %vm225_vm0, %v4301_v50, %v8109_v36  ;;  %v4303_v50 = vld [vmem:[#allocation2 + $0x48] sm:$0xff] }
 0x2e9   : > { %v1860_v23 = vsel %vm1856_vm9, %v1827_v14, %v5610_v60  ;;  %v1696_v15 = vsel %vm1691_vm3, %v1663_v5, %v8110_v18  ;;  %v8114_v5 = vld [vmem:[#allocation27_spill] sm:$0xff] }
 0x2ea   : > { %4196 = vmatmul.msk.f32.gmra.mxu0 %vm1925_vm10, %v1892_v10  ;;  %v1893_v11 = vsel %vm1889_vm8, %v1860_v23, %v1570_v47  ;;  %v1729_v25 = vsel %vm1724_vm4, %v1696_v15, %v5112_v8 }
 0x2eb   : > { %v1762_v43 = vsel %vm1757_vm6, %v1729_v25, %v5286_v22  ;;  %v1664_v22 = vsel %vm225_vm0, %v4302_v3, %v8111_v39  ;;  %v5820_v18 = vpop.permute.xlu2 %1587 }
 0x2ec   : > { %v1795_v60 = vsel %vm1790_vm5, %v1762_v43, %v5406_v1  ;;  %v8112_v1 = vld [vmem:[#allocation59_spill] sm:$0xff] }
 0x2ed   : > { %v1828_v47 = vsel %vm1823_vm7, %v1795_v60, %v5487_v58  ;;  %v1697_v58 = vsel %vm1691_vm3, %v1664_v22, %v8112_v1  ;;  %v8117_v1 = vld [vmem:[#allocation14_spill] sm:$0xff] }
 0x2ee   : > { %v1861_v20 = vsel %vm1856_vm9, %v1828_v47, %v5617_v37  ;;  %v1730_v55 = vsel %vm1724_vm4, %v1697_v58, %v5152_v40  ;;  %v8113_v40 = vld [vmem:[#allocation13_spill] sm:$0xff]  ;;  %v4306_v58 = vld [vmem:[#allocation2 + $0x50] sm:$0xff] }
 0x2ef   : > { %v1574_v17 = vpop.permute.xlu1 %1573  ;;  %v1894_v8 = vsel %vm1889_vm8, %v1861_v20, %v1572_v30  ;;  %v1763_v37 = vsel %vm1757_vm6, %v1730_v55, %v5248_v7  ;;  %v1665_v36 = vsel %vm225_vm0, %v4303_v50, %v8113_v40  ;;  %v4304_v7 = vld [vmem:[#allocation2 + $0xc0] sm:$0xff]  ;;  %v8118_v55 = vld [vmem:[#allocation15_spill] sm:$0xff] }
 0x2f0   : > { %v5771_v44 = vpop.permute.xlu0 %1577  ;;  %v1796_v53 = vsel %vm1790_vm5, %v1763_v37, %v5415_v33  ;;  %v1675_v33 = vsel %vm225_vm0, %v4304_v7, %v8114_v5  ;;  %v8120_v37 = vld [vmem:[#allocation79_spill] sm:$0xff] }
 0x2f1   : > { %v1829_v30 = vsel %vm1823_vm7, %v1796_v53, %v5518_v52  ;;  %v8115_v52 = vld [vmem:[#allocation45_spill] sm:$0xff] }
 0x2f2   : > { %4197 = vmatmul.msk.f32.gmra.mxu0 %vm1925_vm10, %v1893_v11  ;;  %v1862_v14 = vsel %vm1856_vm9, %v1829_v30, %v5588_v63  ;;  %v1698_v15 = vsel %vm1691_vm3, %v1665_v36, %v8115_v52  ;;  %v8116_v63 = vld [vmem:[#allocation76_spill] sm:$0xff] }
 0x2f3   : > { %v1895_v11 = vsel %vm1889_vm8, %v1862_v14, %v1574_v17  ;;  %v1708_v25 = vsel %vm1691_vm3, %v1675_v33, %v8116_v63  ;;  %v1731_v43 = vsel %vm1724_vm4, %v1698_v15, %v5162_v42  ;;  %v5865_v14 = vpop.permute.xlu2 %1593  ;;  %v4307_v33 = vld [vmem:[#allocation2 + $0x60] sm:$0xff] }
 0x2f4   : > { %v1741_v17 = vsel %vm1724_vm4, %v1708_v25, %v5160_v41  ;;  %v1764_v60 = vsel %vm1757_vm6, %v1731_v43, %v5288_v26  ;;  %v8122_v15 = vld [vmem:[#allocation28_spill] sm:$0xff] }
 0x2f5   : > { %v1774_v47 = vsel %vm1757_vm6, %v1741_v17, %v5334_v61  ;;  %v1797_v20 = vsel %vm1790_vm5, %v1764_v60, %v5380_v9  ;;  %v8124_v63 = vld [vmem:[#allocation64_spill] sm:$0xff]  ;;  %v8125_v60 = vld [vmem:[#allocation25_spill] sm:$0xff] }
 0x2f6   : > { %v1830_v41 = vsel %vm1823_vm7, %v1797_v20, %v5525_v35  ;;  %v1666_v35 = vsel %vm225_vm0, %v4306_v58, %v8118_v55  ;;  %v8126_v20 = vld [vmem:[#allocation62_spill] sm:$0xff]  ;;  %v4309_v58 = vld [vmem:[#allocation2 + $0x68] sm:$0xff]  ;;  %v8132_v55 = vld [vmem:[#allocation16_spill] sm:$0xff] }
 0x2f7   : > { %v5787_v10 = vpop.permute.xlu1 %1579  ;;  %v1863_v42 = vsel %vm1856_vm9, %v1830_v41, %v5622_v49  ;;  %v8119_v49 = vld [vmem:[#allocation60_spill] sm:$0xff] }
 0x2f8   : > { %v5793_v34 = vpop.permute.xlu0 %1583  ;;  %v1896_v9 = vsel %vm1889_vm8, %v1863_v42, %v1576_v0 }
 0x2fa   : > { %4198 = vmatmul.msk.f32.gmra.mxu0 %vm1925_vm10, %v1894_v8  ;;  %v1807_v8 = vsel %vm1790_vm5, %v1774_v47, %v5452_v16  ;;  %v4305_v16 = vld [vmem:[#allocation2 + $0xc8] sm:$0xff] }
 0x2fb   : > { %v1840_v3 = vsel %vm1823_vm7, %v1807_v8, %v5523_v4  ;;  %v1676_v4 = vsel %vm225_vm0, %v4305_v16, %v8117_v1  ;;  %v1600_v42 = vpop.permute.xlu2 %1599 }
 0x2fc   : > { %v1873_v26 = vsel %vm1856_vm9, %v1840_v3, %v5681_v24  ;;  %v1699_v24 = vsel %vm1691_vm3, %v1666_v35, %v8119_v49  ;;  %v1709_v0 = vsel %vm1691_vm3, %v1676_v4, %v8120_v37  ;;  %v8127_v3 = vld [vmem:[#allocation66_spill] sm:$0xff]  ;;  %v1668_v35 = vsel %vm225_vm0, %v4309_v58, %v8132_v55  ;;  %v4310_v49 = vld [vmem:[#allocation2 + $0xe0] sm:$0xff] }
 0x2fd   : > { %v1732_v53 = vsel %vm1724_vm4, %v1699_v24, %v5124_v19  ;;  %v1742_v30 = vsel %vm1724_vm4, %v1709_v0, %v5200_v56  ;;  %v8133_v24 = vld [vmem:[#allocation33_spill] sm:$0xff]  ;;  %v8134_v0 = vld [vmem:[#allocation50_spill] sm:$0xff] }
 0x2fe   : > { %v1765_v50 = vsel %vm1757_vm6, %v1732_v53, %v5298_v31  ;;  %v1678_v37 = vsel %vm225_vm0, %v4310_v49, %v8133_v24  ;;  %v1701_v53 = vsel %vm1691_vm3, %v1668_v35, %v8134_v0  ;;  %v8155_v35 = vld [vmem:[#allocation131_spill] sm:$0xff]  ;;  %v8156_v24 = vld [vmem:[#allocation144_spill] sm:$0xff]  ;;  %v8157_v0 = vld [vmem:[#allocation157_spill] sm:$0xff] }
 0x2ff   : > { %v5809_v29 = vpop.permute.xlu1 %1585  ;;  %v1798_v40 = vsel %vm1790_vm5, %v1765_v50, %v5417_v21 }
 0x300   : > { %v5813_v23 = vpop.permute.xlu0 %1589  ;;  %v1831_v19 = vsel %vm1823_vm7, %v1798_v40, %v5496_v32  ;;  %v4308_v32 = vld [vmem:[#allocation2 + $0xd8] sm:$0xff]  ;;  %v8137_v40 = vld [vmem:[#allocation94_spill] sm:$0xff] }
 0x302   : > { %4199 = vmatmul.msk.f32.gmra.mxu0 %vm1925_vm10, %v1895_v11  ;;  %v1775_v11 = vsel %vm1757_vm6, %v1742_v30, %v5296_v38  ;;  %v1864_v38 = vsel %vm1856_vm9, %v1831_v19, %v5638_v54  ;;  %v8135_v30 = vld [vmem:[#allocation80_spill] sm:$0xff]  ;;  %v8138_v19 = vld [vmem:[#allocation113_spill] sm:$0xff] }
 0x303   : > { %v1808_v36 = vsel %vm1790_vm5, %v1775_v11, %v5462_v51  ;;  %v1897_v31 = vsel %vm1889_vm8, %v1864_v38, %v5771_v44  ;;  %v8121_v51 = vld [vmem:[#allocation6_spill] sm:$0xff]  ;;  %v8136_v11 = vld [vmem:[#allocation93_spill] sm:$0xff] }
 0x304   : > { %v1841_v56 = vsel %vm1823_vm7, %v1808_v36, %v5554_v27  ;;  %v1667_v52 = vsel %vm225_vm0, %v4307_v33, %v8121_v51  ;;  %v1677_v27 = vsel %vm225_vm0, %v4308_v32, %v8122_v15  ;;  %v1734_v36 = vsel %vm1724_vm4, %v1701_v53, %v8137_v40  ;;  %v8140_v38 = vld [vmem:[#allocation49_spill] sm:$0xff]  ;;  %v8143_v15 = vld [vmem:[#allocation135_spill] sm:$0xff]  ;;  %v4313_v40 = vld [vmem:[#allocation2 + $0x80] sm:$0xff] }
 0x305   : > { %v1874_v5 = vsel %vm1856_vm9, %v1841_v56, %v5636_v28  ;;  %v8123_v28 = vld [vmem:[#allocation63_spill] sm:$0xff]  ;;  %v1700_v44 = vsel %vm1691_vm3, %v1667_v52, %v8124_v63  ;;  %v1767_v56 = vsel %vm1757_vm6, %v1734_v36, %v8138_v19  ;;  %v8142_v52 = vld [vmem:[#allocation134_spill] sm:$0xff]  ;;  %v8159_v36 = vld [vmem:[#allocation8_spill] sm:$0xff] }
 0x306   : > { %v1710_v54 = vsel %vm1691_vm3, %v1677_v27, %v8123_v28  ;;  %v1733_v25 = vsel %vm1724_vm4, %v1700_v44, %v5164_v46  ;;  %v8129_v46 = vld [vmem:[#allocation143_spill] sm:$0xff]  ;;  %v8144_v28 = vld [vmem:[#allocation156_spill] sm:$0xff]  ;;  %v1670_v19 = vsel %vm225_vm0, %v4313_v40, %v8159_v36  ;;  %v8183_v36 = vld [vmem:[#allocation138_spill] sm:$0xff] }
 0x307   : > { %v5843_v39 = vpop.permute.xlu1 %1591  ;;  %v1743_v17 = vsel %vm1724_vm4, %v1710_v54, %v5212_v59  ;;  %v1766_v43 = vsel %vm1757_vm6, %v1733_v25, %v5260_v13  ;;  %v8130_v59 = vld [vmem:[#allocation152_spill] sm:$0xff] }
 0x308   : > { %v1596_v61 = vpop.permute.xlu0 %1595  ;;  %v1776_v47 = vsel %vm1757_vm6, %v1743_v17, %v8125_v60  ;;  %v1799_v41 = vsel %vm1790_vm5, %v1766_v43, %v8127_v3  ;;  %v8131_v13 = vld [vmem:[#allocation164_spill] sm:$0xff]  ;;  %v4311_v17 = vld [vmem:[#allocation2 + $0xf0] sm:$0xff]  ;;  %v8145_v43 = vld [vmem:[#allocation17_spill] sm:$0xff] }
 0x309   : > { %v1906_v22 = vsel %vm1889_vm8, %v1873_v26, %v1596_v61  ;;  %v1809_v8 = vsel %vm1790_vm5, %v1776_v47, %v8126_v20  ;;  %v8128_v26 = vld [vmem:[#allocation133_spill] sm:$0xff]  ;;  %v1679_v60 = vsel %vm225_vm0, %v4311_v17, %v8145_v43  ;;  %v4312_v47 = vld [vmem:[#allocation2 + $0x78] sm:$0xff]  ;;  %v8146_v20 = vld [vmem:[#allocation18_spill] sm:$0xff]  ;;  %v1606_v43 = vpop.permute.xlu2 %1605 }
 0x30a   : > { %4200 = vmatmul.msk.f32.gmra.mxu0 %vm1925_vm10, %v1896_v9  ;;  %4210 = vmatmul.msk.f32.vlgmr.msra.gmra.mxu2 %vm1925_vm10, %v1906_v22  ;;  %v1832_v61 = vsel %vm1823_vm7, %v1799_v41, %v8128_v26  ;;  %v1842_v9 = vsel %vm1823_vm7, %v1809_v8, %v8129_v46  ;;  %v1669_v8 = vsel %vm225_vm0, %v4312_v47, %v8146_v20  ;;  %v8147_v3 = vld [vmem:[#allocation65_spill] sm:$0xff]  ;;  %v8148_v41 = vld [vmem:[#allocation83_spill] sm:$0xff]  ;;  %v8170_v20 = vld [vmem:[#allocation146_spill] sm:$0xff] }
 0x30b   : > { %v1865_v22 = vsel %vm1856_vm9, %v1832_v61, %v8130_v59  ;;  %v1875_v16 = vsel %vm1856_vm9, %v1842_v9, %v8131_v13  ;;  %v8150_v61 = vld [vmem:[#allocation102_spill] sm:$0xff] }
 0x30c   : > { %v1898_v1 = vsel %vm1889_vm8, %v1865_v22, %v5787_v10  ;;  %v1908_v4 = vsel %vm1889_vm8, %v1875_v16, %v1600_v42  ;;  %v1711_v10 = vsel %vm1691_vm3, %v1678_v37, %v8135_v30  ;;  %v8149_v42 = vld [vmem:[#allocation91_spill] sm:$0xff]  ;;  %v8151_v9 = vld [vmem:[#allocation114_spill] sm:$0xff]  ;;  %v8153_v16 = vld [vmem:[#allocation120_spill] sm:$0xff] }
 0x30d   : > { %v1744_v50 = vsel %vm1724_vm4, %v1711_v10, %v8136_v11  ;;  %v8152_v22 = vld [vmem:[#allocation115_spill] sm:$0xff]  ;;  %v8158_v30 = vld [vmem:[#allocation158_spill] sm:$0xff] }
 0x30f   : > { %v1598_v7 = vpop.permute.xlu1 %1597 }
 0x310   : > { %v1907_v21 = vsel %vm1889_vm8, %v1874_v5, %v1598_v7  ;;  %v8139_v7 = vld [vmem:[#allocation31_spill] sm:$0xff]  ;;  %v1602_v51 = vpop.permute.xlu0 %1601 }
 0x311   : > { %v1777_v5 = vsel %vm1757_vm6, %v1744_v50, %v8139_v7  ;;  %v8160_v7 = vld [vmem:[#allocation34_spill] sm:$0xff] }
 0x312   : > { %4201 = vmatmul.msk.f32.gmra.mxu0 %vm1925_vm10, %v1897_v31  ;;  %4211 = vmatmul.msk.f32.gmra.mxu2 %vm1925_vm10, %v1907_v21  ;;  %v1800_v31 = vsel %vm1790_vm5, %v1767_v56, %v8140_v38  ;;  %v8141_v21 = vld [vmem:[#allocation121_spill] sm:$0xff]  ;;  %v4314_v56 = vld [vmem:[#allocation2 + $0xf8] sm:$0xff]  ;;  %v8161_v38 = vld [vmem:[#allocation68_spill] sm:$0xff] }
 0x313   : > { %v1810_v33 = vsel %vm1790_vm5, %v1777_v5, %v8141_v21  ;;  %v1833_v27 = vsel %vm1823_vm7, %v1800_v31, %v8143_v15  ;;  %v1680_v5 = vsel %vm225_vm0, %v4314_v56, %v8160_v7  ;;  %v8162_v21 = vld [vmem:[#allocation69_spill] sm:$0xff]  ;;  %v8165_v15 = vld [vmem:[#allocation111_spill] sm:$0xff] }
 0x314   : > { %v1843_v32 = vsel %vm1823_vm7, %v1810_v33, %v8142_v52  ;;  %v1866_v54 = vsel %vm1856_vm9, %v1833_v27, %v8144_v28  ;;  %v1713_v31 = vsel %vm1691_vm3, %v1680_v5, %v8161_v38  ;;  %v8163_v33 = vld [vmem:[#allocation95_spill] sm:$0xff]  ;;  %v8164_v52 = vld [vmem:[#allocation104_spill] sm:$0xff]  ;;  %v8166_v28 = vld [vmem:[#allocation118_spill] sm:$0xff] }
 0x315   : > { %v1876_v63 = vsel %vm1856_vm9, %v1843_v32, %v5691_v2  ;;  %v1899_v44 = vsel %vm1889_vm8, %v1866_v54, %v5791_v57  ;;  %v1702_v2 = vsel %vm1691_vm3, %v1669_v8, %v8147_v3  ;;  %v1712_v57 = vsel %vm1691_vm3, %v1679_v60, %v8148_v41  ;;  %v8169_v60 = vld [vmem:[#allocation136_spill] sm:$0xff]  ;;  %v8171_v3 = vld [vmem:[#allocation154_spill] sm:$0xff]  ;;  %v8184_v56 = vld [vmem:[#allocation159_spill] sm:$0xff] }
 0x316   : > { %v1909_v25 = vsel %vm1889_vm8, %v1876_v63, %v1602_v51  ;;  %v1735_v26 = vsel %vm1724_vm4, %v1702_v2, %v8149_v42  ;;  %v1745_v46 = vsel %vm1724_vm4, %v1712_v57, %v8150_v61  ;;  %v1746_v32 = vsel %vm1724_vm4, %v1713_v31, %v8164_v52  ;;  %v8167_v63 = vld [vmem:[#allocation72_spill] sm:$0xff]  ;;  %v8172_v61 = vld [vmem:[#allocation19_spill] sm:$0xff]  ;;  %v8186_v52 = vld [vmem:[#allocation22_spill] sm:$0xff] }
 0x317   : > { %v1778_v59 = vsel %vm1757_vm6, %v1745_v46, %v8151_v9  ;;  %v1768_v13 = vsel %vm1757_vm6, %v1735_v26, %v8152_v22  ;;  %v1604_v55 = vpop.permute.xlu1 %1603  ;;  %v1779_v54 = vsel %vm1757_vm6, %v1746_v32, %v8166_v28  ;;  %v4315_v26 = vld [vmem:[#allocation2 + $0x90] sm:$0xff]  ;;  %v4316_v9 = vld [vmem:[#allocation2 + $0x108] sm:$0xff]  ;;  %v8189_v28 = vld [vmem:[#allocation92_spill] sm:$0xff] }
 0x318   : > { %v1671_v46 = vsel %vm225_vm0, %v4315_v26, %v8172_v61  ;;  %v8197_v61 = vld [vmem:[#allocation160_spill] sm:$0xff] }
 0x31a   : > { %4202 = vmatmul.msk.f32.gmra.mxu0 %vm1925_vm10, %v1898_v1  ;;  %4212 = vmatmul.msk.f32.gmra.mxu2 %vm1925_vm10, %v1908_v4  ;;  %v1801_v1 = vsel %vm1790_vm5, %v1768_v13, %v8153_v16  ;;  %v8154_v4 = vld [vmem:[#allocation123_spill] sm:$0xff]  ;;  %v8174_v13 = vld [vmem:[#allocation54_spill] sm:$0xff]  ;;  %v8175_v16 = vld [vmem:[#allocation84_spill] sm:$0xff] }
 0x31b   : > { %v1811_v58 = vsel %vm1790_vm5, %v1778_v59, %v8154_v4  ;;  %v1834_v49 = vsel %vm1823_vm7, %v1801_v1, %v8155_v35  ;;  %v8173_v59 = vld [vmem:[#allocation36_spill] sm:$0xff] }
 0x31c   : > { %v1844_v37 = vsel %vm1823_vm7, %v1811_v58, %v8156_v24  ;;  %v1867_v10 = vsel %vm1856_vm9, %v1834_v49, %v8158_v30  ;;  %v1681_v22 = vsel %vm225_vm0, %v4316_v9, %v8173_v59  ;;  %v8176_v1 = vld [vmem:[#allocation96_spill] sm:$0xff]  ;;  %v8177_v58 = vld [vmem:[#allocation97_spill] sm:$0xff]  ;;  %v8179_v24 = vld [vmem:[#allocation38_spill] sm:$0xff] }
 0x31d   : > { %v1877_v53 = vsel %vm1856_vm9, %v1844_v37, %v8157_v0  ;;  %v1900_v11 = vsel %vm1889_vm8, %v1867_v10, %v5793_v34  ;;  %v1703_v34 = vsel %vm1691_vm3, %v1670_v19, %v8162_v21  ;;  %v8178_v35 = vld [vmem:[#allocation116_spill] sm:$0xff]  ;;  %v8180_v0 = vld [vmem:[#allocation57_spill] sm:$0xff]  ;;  %v4317_v21 = vld [vmem:[#allocation2 + $0x110] sm:$0xff] }
 0x31e   : > { %v1910_v50 = vsel %vm1889_vm8, %v1877_v53, %v1604_v55  ;;  %v1736_v51 = vsel %vm1724_vm4, %v1703_v34, %v8163_v33  ;;  %v8181_v30 = vld [vmem:[#allocation124_spill] sm:$0xff]  ;;  %v8185_v34 = vld [vmem:[#allocation21_spill] sm:$0xff] }
 0x31f   : > { %v1769_v27 = vsel %vm1757_vm6, %v1736_v51, %v8165_v15  ;;  %v1682_v33 = vsel %vm225_vm0, %v4317_v21, %v8185_v34  ;;  %v4318_v51 = vld [vmem:[#allocation2 + $0x98] sm:$0xff]  ;;  %v8187_v15 = vld [vmem:[#allocation70_spill] sm:$0xff]  ;;  %v8198_v9 = vld [vmem:[#allocation161_spill] sm:$0xff] }
 0x320   : > { %v1672_v32 = vsel %vm225_vm0, %v4318_v51, %v8186_v52  ;;  %v8209_v34 = vld [vmem:[#allocation139_spill] sm:$0xff]  ;;  %v8210_v51 = vld [vmem:[#allocation148_spill] sm:$0xff] }
 0x322   : > { %4203 = vmatmul.msk.f32.gmra.mxu0 %vm1925_vm10, %v1899_v44  ;;  %4213 = vmatmul.msk.f32.gmra.mxu2 %vm1925_vm10, %v1909_v25  ;;  %v1812_v44 = vsel %vm1790_vm5, %v1779_v54, %v8167_v63  ;;  %v8168_v25 = vld [vmem:[#allocation67_spill] sm:$0xff]  ;;  %v8190_v63 = vld [vmem:[#allocation105_spill] sm:$0xff] }
 0x323   : > { %v1802_v17 = vsel %vm1790_vm5, %v1769_v27, %v8168_v25  ;;  %v1845_v8 = vsel %vm1823_vm7, %v1812_v44, %v8170_v20  ;;  %v8188_v27 = vld [vmem:[#allocation85_spill] sm:$0xff]  ;;  %v8191_v25 = vld [vmem:[#allocation20_spill] sm:$0xff] }
 0x324   : > { %v1835_v47 = vsel %vm1823_vm7, %v1802_v17, %v8169_v60  ;;  %v1878_v41 = vsel %vm1856_vm9, %v1845_v8, %v5695_v45  ;;  %v1704_v45 = vsel %vm1691_vm3, %v1671_v46, %v8174_v13  ;;  %v8194_v8 = vld [vmem:[#allocation125_spill] sm:$0xff] }
 0x325   : > { %v1868_v2 = vsel %vm1856_vm9, %v1835_v47, %v8171_v3  ;;  %v1911_v42 = vsel %vm1889_vm8, %v1878_v41, %v1606_v43  ;;  %v1737_v55 = vsel %vm1724_vm4, %v1704_v45, %v8177_v58  ;;  %v8192_v43 = vld [vmem:[#allocation24_spill] sm:$0xff]  ;;  %v8193_v47 = vld [vmem:[#allocation71_spill] sm:$0xff]  ;;  %v4319_v45 = vld [vmem:[#allocation2 + $0xa8] sm:$0xff] }
 0x326   : > { %v1901_v57 = vsel %vm1889_vm8, %v1868_v2, %v5809_v29  ;;  %v1714_v29 = vsel %vm1691_vm3, %v1681_v22, %v8175_v16  ;;  %v1770_v49 = vsel %vm1757_vm6, %v1737_v55, %v8178_v35  ;;  %v1610_v2 = vpop.permute.xlu1 %1609  ;;  %v8195_v41 = vld [vmem:[#allocation132_spill] sm:$0xff]  ;;  %v8199_v16 = vld [vmem:[#allocation11_spill] sm:$0xff] }
 0x327   : > { %v1747_v4 = vsel %vm1724_vm4, %v1714_v29, %v8176_v1  ;;  %v1803_v53 = vsel %vm1790_vm5, %v1770_v49, %v8180_v0  ;;  %v1673_v29 = vsel %vm225_vm0, %v4319_v45, %v8199_v16  ;;  %v4320_v1 = vld [vmem:[#allocation2 + $0x120] sm:$0xff]  ;;  %v8202_v49 = vld [vmem:[#allocation75_spill] sm:$0xff] }
 0x328   : > { %v1780_v37 = vsel %vm1757_vm6, %v1747_v4, %v8179_v24  ;;  %v1836_v19 = vsel %vm1823_vm7, %v1803_v53, %v8183_v36  ;;  %v8200_v4 = vld [vmem:[#allocation37_spill] sm:$0xff]  ;;  %v6093_v55 = vld [vmem:[%s7832_s2] ss:$0 sm:$0xff]  ;;  %v1706_v24 = vsel %vm1691_vm3, %v1673_v29, %v8202_v49  ;;  %v8204_v53 = vld [vmem:[#allocation106_spill] sm:$0xff] }
 0x329   : > { %v1813_v10 = vsel %vm1790_vm5, %v1780_v37, %v8181_v30  ;;  %v1869_v7 = vsel %vm1856_vm9, %v1836_v19, %v8184_v56  ;;  %v1683_v58 = vsel %vm225_vm0, %v4320_v1, %v8200_v4  ;;  %v8203_v37 = vld [vmem:[#allocation98_spill] sm:$0xff]  ;;  %v8207_v56 = vld [vmem:[#allocation73_spill] sm:$0xff]  ;;  %v8223_v29 = vld [vmem:[#allocation140_spill] sm:$0xff] }
 0x32a   : > { %4204 = vmatmul.msk.f32.gmra.mxu0 %vm1925_vm10, %v1900_v11  ;;  %4214 = vmatmul.msk.f32.gmra.mxu2 %vm1925_vm10, %v1910_v50  ;;  %v1608_v11 = vpop.permute.xlu0 %1607  ;;  %v8182_v50 = vld [vmem:[#allocation137_spill] sm:$0xff]  ;;  %v1902_v38 = vsel %vm1889_vm8, %v1869_v7, %v5820_v18  ;;  %v1715_v18 = vsel %vm1691_vm3, %v1682_v33, %v8188_v27  ;;  %v1739_v0 = vsel %vm1724_vm4, %v1706_v24, %v8203_v37  ;;  %v8224_v4 = vld [vmem:[#allocation162_spill] sm:$0xff]  ;;  %v4323_v37 = vld [vmem:[#allocation2 + $0x138] sm:$0xff] }
 0x32b   : > { %v1846_v40 = vsel %vm1823_vm7, %v1813_v10, %v8182_v50  ;;  %v1748_v44 = vsel %vm1724_vm4, %v1715_v18, %v8190_v63  ;;  %v2285_v10 = vld [vmem:[#allocation3 + $0x1] sm:$0xff] }
 0x32c   : > { %v1879_v5 = vsel %vm1856_vm9, %v1846_v40, %v5709_v62  ;;  %v1705_v62 = vsel %vm1691_vm3, %v1672_v32, %v8187_v15  ;;  %v1781_v17 = vsel %vm1757_vm6, %v1748_v44, %v8191_v25  ;;  %v8206_v40 = vld [vmem:[#allocation119_spill] sm:$0xff]  ;;  %2574 = vrot.lane.b32.xlu1 %v2285_v10, %s4350_s24  ;;  %v4322_v25 = vld [vmem:[#allocation2 + $0x128] sm:$0xff] }
 0x32d   : > { %v1912_v31 = vsel %vm1889_vm8, %v1879_v5, %v1608_v11  ;;  %v1738_v54 = vsel %vm1724_vm4, %v1705_v62, %v8189_v28  ;;  %v1814_v3 = vsel %vm1790_vm5, %v1781_v17, %v8194_v8  ;;  %v8205_v11 = vld [vmem:[#allocation112_spill] sm:$0xff]  ;;  %v8208_v5 = vld [vmem:[#allocation77_spill] sm:$0xff]  ;;  %v8211_v32 = vld [vmem:[#allocation155_spill] sm:$0xff] }
 0x32e   : > { %v1771_v60 = vsel %vm1757_vm6, %v1738_v54, %v8192_v43  ;;  %v1772_v50 = vsel %vm1757_vm6, %v1739_v0, %v8205_v11  ;;  %v4321_v54 = vld [vmem:[#allocation2 + $0xb0] sm:$0xff]  ;;  %v8212_v63 = vld [vmem:[#allocation23_spill] sm:$0xff]  ;;  %v8213_v17 = vld [vmem:[#allocation41_spill] sm:$0xff] }
 0x32f   : > { %v1804_v20 = vsel %vm1790_vm5, %v1771_v60, %v8193_v47  ;;  %v1674_v44 = vsel %vm225_vm0, %v4321_v54, %v8212_v63  ;;  %v8214_v43 = vld [vmem:[#allocation58_spill] sm:$0xff]  ;;  %v8227_v10 = vld [vmem:[#allocation107_spill] sm:$0xff] }
 0x330   : > { %v1707_v60 = vsel %vm1691_vm3, %v1674_v44, %v8214_v43  ;;  %v8225_v0 = vld [vmem:[#allocation26_spill] sm:$0xff] }
 0x331   : > { %v8237_v44 = vld [vmem:[#allocation150_spill] sm:$0xff] }
 0x332   : > { %4205 = vmatmul.msk.f32.gmra.mxu0 %vm1925_vm10, %v1901_v57  ;;  %4215 = vmatmul.msk.f32.gmra.mxu2 %vm1925_vm10, %v1911_v42  ;;  %v1837_v57 = vsel %vm1823_vm7, %v1804_v20, %v8195_v41  ;;  %v8196_v42 = vld [vmem:[#allocation147_spill] sm:$0xff]  ;;  %v8216_v20 = vld [vmem:[#allocation100_spill] sm:$0xff]  ;;  %v1614_v16 = vpop.permute.xlu0 %1613 }
 0x333   : > { %v1847_v26 = vsel %vm1823_vm7, %v1814_v3, %v8196_v42  ;;  %v1870_v59 = vsel %vm1856_vm9, %v1837_v57, %v8198_v9  ;;  %v1740_v8 = vsel %vm1724_vm4, %v1707_v60, %v8216_v20  ;;  %v2286_v3 = vld [vmem:[#allocation3 + $0x9] sm:$0xff]  ;;  %v8218_v57 = vld [vmem:[#allocation117_spill] sm:$0xff]  ;;  %v8239_v20 = vld [vmem:[#allocation46_spill] sm:$0xff] }
 0x334   : > { %v1880_v46 = vsel %vm1856_vm9, %v1847_v26, %v8197_v61  ;;  %v1903_v22 = vsel %vm1889_vm8, %v1870_v59, %v5813_v23  ;;  %v8201_v23 = vld [vmem:[#allocation74_spill] sm:$0xff]  ;;  %v1773_v42 = vsel %vm1757_vm6, %v1740_v8, %v8218_v57  ;;  %2576 = vrot.lane.b32.xlu2 %v2286_v3, %s4350_s24  ;;  %v8219_v26 = vld [vmem:[#allocation39_spill] sm:$0xff]  ;;  %v8240_v3 = vld [vmem:[#allocation88_spill] sm:$0xff] }
 0x335   : > { %v1913_v13 = vsel %vm1889_vm8, %v1880_v46, %v1610_v2  ;;  %v1716_v35 = vsel %vm1691_vm3, %v1683_v58, %v8201_v23  ;;  %v8217_v2 = vld [vmem:[#allocation99_spill] sm:$0xff]  ;;  %v8220_v46 = vld [vmem:[#allocation61_spill] sm:$0xff]  ;;  %v8221_v59 = vld [vmem:[#allocation126_spill] sm:$0xff] }
 0x336   : > { %v1749_v30 = vsel %vm1724_vm4, %v1716_v35, %v8204_v53  ;;  %v1806_v9 = vsel %vm1790_vm5, %v1773_v42, %v8220_v46  ;;  %v1685_v53 = vsel %vm225_vm0, %v4323_v37, %v8225_v0  ;;  %v8242_v42 = vld [vmem:[#allocation44_spill] sm:$0xff]  ;;  %v8247_v37 = vld [vmem:[#allocation89_spill] sm:$0xff] }
 0x337   : > { %v1782_v36 = vsel %vm1757_vm6, %v1749_v30, %v8206_v40  ;;  %v8226_v30 = vld [vmem:[#allocation87_spill] sm:$0xff] }
 0x338   : > { %v1815_v7 = vsel %vm1790_vm5, %v1782_v36, %v8207_v56  ;;  %v8229_v40 = vld [vmem:[#allocation127_spill] sm:$0xff]  ;;  %v8230_v56 = vld [vmem:[#allocation149_spill] sm:$0xff] }
 0x339   : > { %v1848_v52 = vsel %vm1823_vm7, %v1815_v7, %v8210_v51  ;;  %v8233_v51 = vld [vmem:[#allocation78_spill] sm:$0xff] }
 0x33a   : > { %4206 = vmatmul.msk.f32.gmra.mxu0 %vm1925_vm10, %v1902_v38  ;;  %4216 = vmatmul.msk.f32.gmra.mxu2 %vm1925_vm10, %v1912_v31  ;;  %v1805_v38 = vsel %vm1790_vm5, %v1772_v50, %v8208_v5  ;;  %v1612_v31 = vpop.permute.xlu2 %1611  ;;  %v1881_v62 = vsel %vm1856_vm9, %v1848_v52, %v5712_v48  ;;  %v1684_v48 = vsel %vm225_vm0, %v4322_v25, %v8213_v17  ;;  %v8231_v5 = vld [vmem:[#allocation163_spill] sm:$0xff] }
 0x33b   : > { %v1838_v33 = vsel %vm1823_vm7, %v1805_v38, %v8209_v34  ;;  %v1914_v28 = vsel %vm1889_vm8, %v1881_v62, %v1612_v31  ;;  %v8232_v34 = vld [vmem:[#allocation42_spill] sm:$0xff]  ;;  %v8235_v62 = vld [vmem:[#allocation43_spill] sm:$0xff] }
 0x33c   : > { %v1871_v15 = vsel %vm1856_vm9, %v1838_v33, %v8211_v32  ;;  %v8234_v32 = vld [vmem:[#allocation108_spill] sm:$0xff] }
 0x33d   : > { %v1904_v18 = vsel %vm1889_vm8, %v1871_v15, %v5843_v39  ;;  %v8215_v39 = vld [vmem:[#allocation86_spill] sm:$0xff] }
 0x33e   : > { %v1717_v47 = vsel %vm1691_vm3, %v1684_v48, %v8215_v39  ;;  %v8238_v48 = vld [vmem:[#allocation7_spill] sm:$0xff] }
 0x33f   : > { %v1750_v41 = vsel %vm1724_vm4, %v1717_v47, %v8217_v2  ;;  %v4325_v47 = vld [vmem:[#allocation2 + $0x150] sm:$0xff] }
 0x340   : > { %v1783_v61 = vsel %vm1757_vm6, %v1750_v41, %v8219_v26  ;;  %v1687_v8 = vsel %vm225_vm0, %v4325_v47, %v8239_v20  ;;  %v8241_v41 = vld [vmem:[#allocation101_spill] sm:$0xff]  ;;  %v4328_v20 = vld [vmem:[#allocation2 + $0x170] sm:$0xff] }
 0x341   : > { %v1720_v2 = vsel %vm1691_vm3, %v1687_v8, %v8240_v3  ;;  %v8260_v8 = vld [vmem:[#allocation51_spill] sm:$0xff] }
 0x342   : > { %4207 = vmatmul.msk.f32.gmra.mxu0 %vm1925_vm10, %v1903_v22  ;;  %4217 = vmatmul.msk.f32.gmra.mxu2 %vm1925_vm10, %v1913_v13  ;;  %v1816_v22 = vsel %vm1790_vm5, %v1783_v61, %v8221_v59  ;;  %v8222_v13 = vld [vmem:[#allocation141_spill] sm:$0xff]  ;;  %v1618_v54 = vpop.permute.xlu2 %1617  ;;  %v1753_v57 = vsel %vm1724_vm4, %v1720_v2, %v8241_v41  ;;  %v8243_v61 = vld [vmem:[#allocation128_spill] sm:$0xff]  ;;  %v1690_v3 = vsel %vm225_vm0, %v4328_v20, %v8260_v8  ;;  %v8261_v41 = vld [vmem:[#allocation90_spill] sm:$0xff] }
 0x343   : > { %v1839_v45 = vsel %vm1823_vm7, %v1806_v9, %v8222_v13  ;;  %v1849_v1 = vsel %vm1823_vm7, %v1816_v22, %v8223_v29  ;;  %v1786_v26 = vsel %vm1757_vm6, %v1753_v57, %v8242_v42  ;;  %v1620_v9 = vpop.permute.xlu0 %1619  ;;  %v8244_v22 = vld [vmem:[#allocation142_spill] sm:$0xff]  ;;  %v1723_v57 = vsel %vm1691_vm3, %v1690_v3, %v8261_v41  ;;  %v8262_v42 = vld [vmem:[#allocation103_spill] sm:$0xff] }
 0x344   : > { %v1872_v58 = vsel %vm1856_vm9, %v1839_v45, %v8224_v4  ;;  %v1882_v23 = vsel %vm1856_vm9, %v1849_v1, %v5715_v12  ;;  %v1718_v12 = vsel %vm1691_vm3, %v1685_v53, %v8226_v30  ;;  %v1819_v46 = vsel %vm1790_vm5, %v1786_v26, %v8243_v61  ;;  %v8248_v53 = vld [vmem:[#allocation109_spill] sm:$0xff] }
 0x345   : > { %v2039_v19 = vpop.f32.mrf.mxu0  ;;  %v1905_v49 = vsel %vm1889_vm8, %v1872_v58, %v5865_v14  ;;  %v1915_v24 = vsel %vm1889_vm8, %v1882_v23, %v1614_v16  ;;  %v1751_v11 = vsel %vm1724_vm4, %v1718_v12, %v8227_v10  ;;  %v8228_v14 = vld [vmem:[#allocation30_spill] sm:$0xff]  ;;  %v1852_v13 = vsel %vm1823_vm7, %v1819_v46, %v8244_v22  ;;  %v8245_v16 = vld [vmem:[#allocation35_spill] sm:$0xff]  ;;  %v8246_v23 = vld [vmem:[#allocation32_spill] sm:$0xff] }
 0x346   : > { %v2040_v21 = vadd.f32 %v6093_v55, %v2039_v19  ;;  %v1784_v50 = vsel %vm1757_vm6, %v1751_v11, %v8228_v14  ;;  %v1616_v19 = vpop.permute.xlu1 %1615  ;;  %v1885_v29 = vsel %vm1856_vm9, %v1852_v13, %v8245_v16  ;;  %v4326_v58 = vld [vmem:[#allocation2 + $0x158] sm:$0xff]  ;;  %v8249_v12 = vld [vmem:[#allocation29_spill] sm:$0xff]  ;;  %v1756_v26 = vsel %vm1724_vm4, %v1723_v57, %v8262_v42 }
 0x347   : > { %v1817_v36 = vsel %vm1790_vm5, %v1784_v50, %v8229_v40  ;;  %v1918_v4 = vsel %vm1889_vm8, %v1885_v29, %v1620_v9  ;;  %v8250_v11 = vld [vmem:[#allocation129_spill] sm:$0xff]  ;;  %v8264_v9 = vld [vmem:[#allocation130_spill] sm:$0xff] }
 0x348   : > { %v2135_v27 = vmax.f32 %v2040_v21, 0.0  ;;  %v1850_v7 = vsel %vm1823_vm7, %v1817_v36, %v8230_v56  ;;  %v4324_v21 = vld [vmem:[#allocation2 + $0x140] sm:$0xff]  ;;  %v8251_v36 = vld [vmem:[#allocation151_spill] sm:$0xff]  ;;  %v8263_v61 = vld [vmem:[#allocation53_spill] sm:$0xff] }
 0x349   : > { %v1883_v38 = vsel %vm1856_vm9, %v1850_v7, %v8231_v5  ;;  %v1686_v33 = vsel %vm225_vm0, %v4324_v21, %v8232_v34  ;;  %v8252_v7 = vld [vmem:[#allocation165_spill] sm:$0xff]  ;;  %v8253_v34 = vld [vmem:[#allocation47_spill] sm:$0xff]  ;;  %v1789_v46 = vsel %vm1757_vm6, %v1756_v26, %v8263_v61 }
 0x34a   : > { %2211 = vst.msk [vmem:[#allocation3 + $0x19] sm:$0xff] %vm225_vm0, %v2135_v27  ;;  %4208 = vmatmul.msk.f32.gmra.mxu0 %vm1925_vm10, %v1904_v18  ;;  %4218 = vmatmul.msk.f32.gmra.mxu2 %vm1925_vm10, %v1914_v28  ;;  %v1916_v31 = vsel %vm1889_vm8, %v1883_v38, %v1616_v19  ;;  %v1719_v52 = vsel %vm1691_vm3, %v1686_v33, %v8233_v51  ;;  %v8236_v18 = vld [vmem:[#allocation81_spill] sm:$0xff] }
 0x34b   : > { %v1752_v15 = vsel %vm1724_vm4, %v1719_v52, %v8234_v32  ;;  %v4327_v21 = vld [vmem:[#allocation2 + $0x168] sm:$0xff]  ;;  %v8254_v52 = vld [vmem:[#allocation82_spill] sm:$0xff]  ;;  %v1626_v22 = vpop.permute.xlu0 %1625 }
 0x34c   : > { %v1785_v27 = vsel %vm1757_vm6, %v1752_v15, %v8235_v62  ;;  %v1689_v33 = vsel %vm225_vm0, %v4327_v21, %v8253_v34  ;;  %v8255_v15 = vld [vmem:[#allocation110_spill] sm:$0xff] }
 0x34d   : > { %v1818_v28 = vsel %vm1790_vm5, %v1785_v27, %v8236_v18  ;;  %v1722_v32 = vsel %vm1691_vm3, %v1689_v33, %v8254_v52  ;;  %v8256_v27 = vld [vmem:[#allocation48_spill] sm:$0xff] }
 0x34e   : > { %v1851_v25 = vsel %vm1823_vm7, %v1818_v28, %v8237_v44  ;;  %v1622_v50 = vpop.permute.xlu1 %1621  ;;  %v1755_v62 = vsel %vm1724_vm4, %v1722_v32, %v8255_v15  ;;  %v8257_v28 = vld [vmem:[#allocation122_spill] sm:$0xff] }
 0x34f   : > { %v1884_v43 = vsel %vm1856_vm9, %v1851_v25, %v8238_v48  ;;  %v1788_v18 = vsel %vm1757_vm6, %v1755_v62, %v8256_v27  ;;  %v8258_v25 = vld [vmem:[#allocation153_spill] sm:$0xff] }
 0x350   : > { %v1917_v39 = vsel %vm1889_vm8, %v1884_v43, %v1618_v54  ;;  %v1821_v54 = vsel %vm1790_vm5, %v1788_v18, %v8257_v28  ;;  %v8259_v43 = vld [vmem:[#allocation166_spill] sm:$0xff] }
 0x351   : > { %v6156_v35 = vld [vmem:[#allocation3 + $0x19] sm:$0xff] }
 0x352   : > { %2578 = vrot.lane.b32.xlu0 %v6156_v35, %s4350_s24  ;;  %4209 = vmatmul.msk.f32.gmra.mxu0 %vm1925_vm10, %v1905_v49  ;;  %v1688_v49 = vsel %vm225_vm0, %v4326_v58, %v8246_v23 }
 0x353   : > { %4219 = vmatmul.msk.f32.gmra.mxu2 %vm1925_vm10, %v1915_v24  ;;  %v1721_v0 = vsel %vm1691_vm3, %v1688_v49, %v8247_v37 }
 0x354   : > { %v1754_v30 = vsel %vm1724_vm4, %v1721_v0, %v8248_v53 }
 0x355   : > { %v1787_v10 = vsel %vm1757_vm6, %v1754_v30, %v8249_v12 }
 0x356   : > { %v1820_v14 = vsel %vm1790_vm5, %v1787_v10, %v8250_v11 }
 0x357   : > { %v1853_v19 = vsel %vm1823_vm7, %v1820_v14, %v8251_v36 }
 0x358   : > { %v1886_v5 = vsel %vm1856_vm9, %v1853_v19, %v8252_v7 }
 0x35b   : > { %4220 = vmatmul.msk.f32.gmra.mxu2 %vm1925_vm10, %v1916_v31  ;;  %v1919_v31 = vsel %vm1889_vm8, %v1886_v5, %v1622_v50 }
 0x35f   : > { %v2042_v63 = vpop.f32.mrf.mxu0 }
 0x360   : > { %v2043_v17 = vadd.f32 %v6093_v55, %v2042_v63  ;;  %v1624_v63 = vpop.permute.xlu2 %1623 }
 0x362   : > { %v2136_v60 = vmax.f32 %v2043_v17, 0.0  ;;  %v1854_v17 = vsel %vm1823_vm7, %v1821_v54, %v8258_v25 }
 0x363   : > { %4221 = vmatmul.msk.f32.gmra.mxu2 %vm1925_vm10, %v1917_v39 }
 0x364   : > { %2212 = vst.msk [vmem:[#allocation3 + $0x21] sm:$0xff] %vm225_vm0, %v2136_v60  ;;  %v1887_v60 = vsel %vm1856_vm9, %v1854_v17, %v8259_v43 }
 0x365   : > { %v1920_v47 = vsel %vm1889_vm8, %v1887_v60, %v1624_v63 }
 0x367   : > { %v2045_v59 = vpop.f32.mrf.mxu0 }
 0x368   : > { %v2046_v45 = vadd.f32 %v6093_v55, %v2045_v59  ;;  %v1822_v59 = vsel %vm1790_vm5, %v1789_v46, %v8264_v9 }
 0x36a   : > { %v2137_v1 = vmax.f32 %v2046_v45, 0.0  ;;  %v8265_v45 = vld [vmem:[#allocation145_spill] sm:$0xff] }
 0x36b   : > { %4222 = vmatmul.msk.f32.gmra.mxu2 %vm1925_vm10, %v1918_v4  ;;  %v6218_v24 = vld [vmem:[#allocation3 + $0x21] sm:$0xff]  ;;  %v1855_v16 = vsel %vm1823_vm7, %v1822_v59, %v8265_v45 }
 0x36c   : > { %2213 = vst.msk [vmem:[#allocation3 + $0x31] sm:$0xff] %vm225_vm0, %v2137_v1  ;;  %2580 = vrot.lane.b32.xlu1 %v6218_v24, %s4350_s24  ;;  %v1888_v1 = vsel %vm1856_vm9, %v1855_v16, %v5735_v6 }
 0x36d   : > { %v1921_v58 = vsel %vm1889_vm8, %v1888_v1, %v1626_v22 }
 0x36f   : > { %v2048_v40 = vpop.f32.mrf.mxu0 }
 0x370   : > { %v2049_v56 = vadd.f32 %v6093_v55, %v2048_v40 }
 0x372   : > { %v2138_v38 = vmax.f32 %v2049_v56, 0.0 }
 0x373   : > { %4223 = vmatmul.msk.f32.gmra.mxu2 %vm1925_vm10, %v1919_v31  ;;  %v6240_v51 = vld [vmem:[#allocation3 + $0x31] sm:$0xff] }
 0x374   : > { %2214 = vst.msk [vmem:[#allocation3 + $0x39] sm:$0xff] %vm225_vm0, %v2138_v38  ;;  %2582 = vrot.lane.b32.xlu2 %v6240_v51, %s4350_s24 }
 0x377   : > { %v2051_v44 = vpop.f32.mrf.mxu0 }
 0x378   : > { %v2052_v48 = vadd.f32 %v6093_v55, %v2051_v44 }
 0x37a   : > { %v2139_v39 = vmax.f32 %v2052_v48, 0.0 }
 0x37b   : > { %4224 = vmatmul.msk.f32.gmra.mxu2 %vm1925_vm10, %v1920_v47  ;;  %v6262_v2 = vld [vmem:[#allocation3 + $0x39] sm:$0xff] }
 0x37c   : > { %2215 = vst.msk [vmem:[#allocation3 + $0x49] sm:$0xff] %vm225_vm0, %v2139_v39  ;;  %2584 = vrot.lane.b32.xlu0 %v6262_v2, %s4350_s24 }
 0x37f   : > { %v2054_v13 = vpop.f32.mrf.mxu0 }
 0x380   : > { %v2055_v29 = vadd.f32 %v6093_v55, %v2054_v13 }
 0x382   : > { %v2140_v4 = vmax.f32 %v2055_v29, 0.0 }
 0x383   : > { %4225 = vmatmul.msk.f32.gmra.mxu2 %vm1925_vm10, %v1921_v58  ;;  %v6282_v23 = vld [vmem:[#allocation3 + $0x49] sm:$0xff] }
 0x384   : > { %2216 = vst.msk [vmem:[#allocation3 + $0x51] sm:$0xff] %vm225_vm0, %v2140_v4  ;;  %2586 = vrot.lane.b32.xlu1 %v6282_v23, %s4350_s24 }
 0x387   : > { %v2057_v49 = vpop.f32.mrf.mxu0 }
 0x388   : > { %v2058_v37 = vadd.f32 %v6093_v55, %v2057_v49 }
 0x38a   : > { %v2141_v0 = vmax.f32 %v2058_v37, 0.0 }
 0x38b   : > { %v6288_v53 = vld [vmem:[#allocation3 + $0x51] sm:$0xff] }
 0x38c   : > { %2217 = vst.msk [vmem:[#allocation3 + $0x61] sm:$0xff] %vm225_vm0, %v2141_v0  ;;  %2588 = vrot.lane.b32.xlu2 %v6288_v53, %s4350_s24 }
 0x38d   : > { %v2087_v6 = vpop.f32.mrf.mxu2 }
 0x38e   : > { %v2088_v30 = vadd.f32 %v6093_v55, %v2087_v6 }
 0x38f   : > { %v2060_v12 = vpop.f32.mrf.mxu0 }
 0x390   : > { %v2151_v10 = vmax.f32 %v2088_v30, 0.0  ;;  %v2061_v11 = vadd.f32 %v6093_v55, %v2060_v12 }
 0x392   : > { %2227 = vst.msk [vmem:[#allocation3 + $0xd9] sm:$0xff] %vm225_vm0, %v2151_v10  ;;  %v2142_v14 = vmax.f32 %v2061_v11, 0.0 }
 0x393   : > { %v6296_v50 = vld [vmem:[#allocation3 + $0x61] sm:$0xff] }
 0x394   : > { %2218 = vst.msk [vmem:[#allocation3 + $0x69] sm:$0xff] %vm225_vm0, %v2142_v14  ;;  %2590 = vrot.lane.b32.xlu0 %v6296_v50, %s4350_s24 }
 0x395   : > { %v2090_v40 = vpop.f32.mrf.mxu2 }
 0x396   : > { %v2091_v36 = vadd.f32 %v6093_v55, %v2090_v40 }
 0x397   : > { %v2063_v19 = vpop.f32.mrf.mxu0 }
 0x398   : > { %v2152_v56 = vmax.f32 %v2091_v36, 0.0  ;;  %v2064_v7 = vadd.f32 %v6093_v55, %v2063_v19 }
 0x399   : > { %v6360_v14 = vld [vmem:[#allocation3 + $0xd9] sm:$0xff] }
 0x39a   : > { %2228 = vst.msk [vmem:[#allocation3 + $0xe1] sm:$0xff] %vm225_vm0, %v2152_v56  ;;  %v2143_v5 = vmax.f32 %v2064_v7, 0.0 }
 0x39b   : > { %v6304_v38 = vld [vmem:[#allocation3 + $0x69] sm:$0xff] }
 0x39c   : > { %2219 = vst.msk [vmem:[#allocation3 + $0x79] sm:$0xff] %vm225_vm0, %v2143_v5  ;;  %2592 = vrot.lane.b32.xlu1 %v6304_v38, %s4350_s24 }
 0x39d   : > { %v2093_v31 = vpop.f32.mrf.mxu2 }
 0x39e   : > { %v2094_v21 = vadd.f32 %v6093_v55, %v2093_v31 }
 0x39f   : > { %v2066_v34 = vpop.f32.mrf.mxu0 }
 0x3a0   : > { %v2153_v33 = vmax.f32 %v2094_v21, 0.0  ;;  %v2067_v52 = vadd.f32 %v6093_v55, %v2066_v34 }
 0x3a1   : > { %v6379_v31 = vld [vmem:[#allocation3 + $0xe1] sm:$0xff] }
 0x3a2   : > { %2229 = vst.msk [vmem:[#allocation3 + $0xf1] sm:$0xff] %vm225_vm0, %v2153_v33  ;;  %v2144_v32 = vmax.f32 %v2067_v52, 0.0 }
 0x3a3   : > { %v6312_v15 = vld [vmem:[#allocation3 + $0x79] sm:$0xff] }
 0x3a4   : > { %2220 = vst.msk [vmem:[#allocation3 + $0x81] sm:$0xff] %vm225_vm0, %v2144_v32  ;;  %2594 = vrot.lane.b32.xlu2 %v6312_v15, %s4350_s24 }
 0x3a5   : > { %v2096_v62 = vpop.f32.mrf.mxu2 }
 0x3a6   : > { %v2097_v27 = vadd.f32 %v6093_v55, %v2096_v62 }
 0x3a7   : > { %v2069_v18 = vpop.f32.mrf.mxu0 }
 0x3a8   : > { %v2154_v28 = vmax.f32 %v2097_v27, 0.0  ;;  %v2070_v54 = vadd.f32 %v6093_v55, %v2069_v18 }
 0x3a9   : > { %v6387_v32 = vld [vmem:[#allocation3 + $0xf1] sm:$0xff] }
 0x3aa   : > { %2230 = vst.msk [vmem:[#allocation3 + $0xf9] sm:$0xff] %vm225_vm0, %v2154_v28  ;;  %v2145_v63 = vmax.f32 %v2070_v54, 0.0 }
 0x3ab   : > { %v6320_v44 = vld [vmem:[#allocation3 + $0x81] sm:$0xff] }
 0x3ac   : > { %2221 = vst.msk [vmem:[#allocation3 + $0x91] sm:$0xff] %vm225_vm0, %v2145_v63  ;;  %2596 = vrot.lane.b32.xlu0 %v6320_v44, %s4350_s24 }
 0x3ad   : > { %v2099_v25 = vpop.f32.mrf.mxu2 }
 0x3ae   : > { %v2100_v17 = vadd.f32 %v6093_v55, %v2099_v25 }
 0x3af   : > { %v2072_v48 = vpop.f32.mrf.mxu0 }
 0x3b0   : > { %v2155_v43 = vmax.f32 %v2100_v17, 0.0  ;;  %v2073_v60 = vadd.f32 %v6093_v55, %v2072_v48 }
 0x3b1   : > { %v6371_v7 = vld [vmem:[#allocation3 + $0xf9] sm:$0xff] }
 0x3b2   : > { %2231 = vst.msk [vmem:[#allocation3 + $0x109] sm:$0xff] %vm225_vm0, %v2155_v43  ;;  %v2146_v39 = vmax.f32 %v2073_v60, 0.0 }
 0x3b3   : > { %v6328_v47 = vld [vmem:[#allocation3 + $0x91] sm:$0xff] }
 0x3b4   : > { %2222 = vst.msk [vmem:[#allocation3 + $0x99] sm:$0xff] %vm225_vm0, %v2146_v39  ;;  %2598 = vrot.lane.b32.xlu1 %v6328_v47, %s4350_s24 }
 0x3b5   : > { %v2102_v20 = vpop.f32.mrf.mxu2 }
 0x3b6   : > { %v2103_v8 = vadd.f32 %v6093_v55, %v2102_v20 }
 0x3b7   : > { %v2075_v3 = vpop.f32.mrf.mxu0 }
 0x3b8   : > { %v2156_v41 = vmax.f32 %v2103_v8, 0.0  ;;  %v2076_v57 = vadd.f32 %v6093_v55, %v2075_v3 }
 0x3b9   : > { %v6393_v62 = vld [vmem:[#allocation3 + $0x109] sm:$0xff] }
 0x3ba   : > { %2232 = vst.msk [vmem:[#allocation3 + $0x111] sm:$0xff] %vm225_vm0, %v2156_v41  ;;  %v2147_v42 = vmax.f32 %v2076_v57, 0.0 }
 0x3bb   : > { %v6336_v26 = vld [vmem:[#allocation3 + $0x99] sm:$0xff] }
 0x3bc   : > { %2223 = vst.msk [vmem:[#allocation3 + $0xa9] sm:$0xff] %vm225_vm0, %v2147_v42  ;;  %2600 = vrot.lane.b32.xlu2 %v6336_v26, %s4350_s24 }
 0x3bd   : > { %v2105_v61 = vpop.f32.mrf.mxu2 }
 0x3be   : > { %v2106_v46 = vadd.f32 %v6093_v55, %v2105_v61 }
 0x3bf   : > { %v2078_v9 = vpop.f32.mrf.mxu0 }
 0x3c0   : > { %v2157_v59 = vmax.f32 %v2106_v46, 0.0  ;;  %v2079_v22 = vadd.f32 %v6093_v55, %v2078_v9  ;;  %v2318_v46 = vld [vmem:[#allocation3 + $0xa] sm:$0xff] }
 0x3c1   : > { %v6401_v63 = vld [vmem:[#allocation3 + $0x111] sm:$0xff] }
 0x3c2   : > { %2233 = vst.msk [vmem:[#allocation3 + $0x121] sm:$0xff] %vm225_vm0, %v2157_v59  ;;  %v2148_v13 = vmax.f32 %v2079_v22, 0.0  ;;  %v2317_v59 = vld [vmem:[#allocation3 + $0x2] sm:$0xff] }
 0x3c3   : > { %v6344_v45 = vld [vmem:[#allocation3 + $0xa9] sm:$0xff] }
 0x3c4   : > { %2224 = vst.msk [vmem:[#allocation3 + $0xb1] sm:$0xff] %vm225_vm0, %v2148_v13  ;;  %2602 = vrot.lane.b32.xlu0 %v6344_v45, %s4350_s24  ;;  %v6438_v13 = vpop.permute.xlu2 %2576 }
 0x3c5   : > { %v2108_v16 = vpop.f32.mrf.mxu2  ;;  %8266 = vst [vmem:[#allocation10_spill] sm:$0xff] %v6438_v13 }
 0x3c6   : > { %v2109_v29 = vadd.f32 %v6093_v55, %v2108_v16 }
 0x3c7   : > { %v2081_v1 = vpop.f32.mrf.mxu0 }
 0x3c8   : > { %v2158_v4 = vmax.f32 %v2109_v29, 0.0  ;;  %v2082_v58 = vadd.f32 %v6093_v55, %v2081_v1 }
 0x3c9   : > { %v6385_v52 = vld [vmem:[#allocation3 + $0x121] sm:$0xff] }
 0x3ca   : > { %2234 = vst.msk [vmem:[#allocation3 + $0x129] sm:$0xff] %vm225_vm0, %v2158_v4  ;;  %v2149_v49 = vmax.f32 %v2082_v58, 0.0  ;;  %v6442_v4 = vld [vmem:[#allocation3 + $0x32] sm:$0xff]  ;;  %v6444_v58 = vld [vmem:[#allocation3 + $0x1a] sm:$0xff] }
 0x3cb   : > { %v6352_v37 = vld [vmem:[#allocation3 + $0xb1] sm:$0xff] }
 0x3cc   : > { %2225 = vst.msk [vmem:[#allocation3 + $0xc1] sm:$0xff] %vm225_vm0, %v2149_v49  ;;  %2604 = vrot.lane.b32.xlu1 %v6352_v37, %s4350_s24  ;;  %v6451_v49 = vld [vmem:[#allocation3 + $0x22] sm:$0xff] }
 0x3cd   : > { %v2111_v0 = vpop.f32.mrf.mxu2 }
 0x3ce   : > { %v2112_v6 = vadd.f32 %v6093_v55, %v2111_v0  ;;  %v6455_v0 = vpop.permute.xlu2 %2582 }
 0x3cf   : > { %v2084_v30 = vpop.f32.mrf.mxu0  ;;  %8267 = vst [vmem:[#allocation52_spill] sm:$0xff] %v6455_v0 }
 0x3d0   : > { %v2159_v12 = vmax.f32 %v2112_v6, 0.0  ;;  %v2085_v10 = vadd.f32 %v6093_v55, %v2084_v30  ;;  %v6459_v6 = vld [vmem:[#allocation3 + $0x3a] sm:$0xff]  ;;  %v6465_v30 = vld [vmem:[#allocation3 + $0x4a] sm:$0xff] }
 0x3d1   : > { %v6407_v25 = vld [vmem:[#allocation3 + $0x129] sm:$0xff] }
 0x3d2   : > { %2235 = vst.msk [vmem:[#allocation3 + $0x139] sm:$0xff] %vm225_vm0, %v2159_v12  ;;  %v2150_v11 = vmax.f32 %v2085_v10, 0.0  ;;  %v6467_v12 = vpop.permute.xlu1 %2574  ;;  %v6569_v0 = vld [vmem:[#allocation3 + $0x122] sm:$0xff] }
 0x3d3   : > { %v6362_v40 = vld [vmem:[#allocation3 + $0xc1] sm:$0xff]  ;;  %8268 = vst [vmem:[#allocation9_spill] sm:$0xff] %v6467_v12 }
 0x3d4   : > { %2226 = vst.msk [vmem:[#allocation3 + $0xc9] sm:$0xff] %vm225_vm0, %v2150_v11  ;;  %2610 = vrot.lane.b32.xlu1 %v6360_v14, %s4350_s24  ;;  %2606 = vrot.lane.b32.xlu2 %v6362_v40, %s4350_s24  ;;  %v6473_v11 = vld [vmem:[#allocation3 + $0x7a] sm:$0xff] }
 0x3d6   : > { %v2114_v36 = vpop.f32.mrf.mxu2 }
 0x3d7   : > { %v2115_v19 = vadd.f32 %v6093_v55, %v2114_v36  ;;  %v6475_v36 = vld [vmem:[#allocation3 + $0x62] sm:$0xff] }
 0x3d9   : > { %v2160_v56 = vmax.f32 %v2115_v19, 0.0  ;;  %v6413_v60 = vld [vmem:[#allocation3 + $0x139] sm:$0xff]  ;;  %v6481_v19 = vld [vmem:[#allocation3 + $0x6a] sm:$0xff] }
 0x3db   : > { %2236 = vst.msk [vmem:[#allocation3 + $0x141] sm:$0xff] %vm225_vm0, %v2160_v56  ;;  %v6373_v5 = vld [vmem:[#allocation3 + $0xc9] sm:$0xff] }
 0x3dc   : > { %2616 = vrot.lane.b32.xlu1 %v6371_v7, %s4350_s24  ;;  %2608 = vrot.lane.b32.xlu0 %v6373_v5, %s4350_s24 }
 0x3dd   : > { %2612 = vrot.lane.b32.xlu2 %v6379_v31, %s4350_s24 }
 0x3de   : > { %v2117_v21 = vpop.f32.mrf.mxu2  ;;  %v6485_v56 = vpop.permute.xlu1 %2580 }
 0x3df   : > { %v2118_v34 = vadd.f32 %v6093_v55, %v2117_v21  ;;  %8270 = vst [vmem:[#allocation12_spill] sm:$0xff] %v6485_v56 }
 0x3e1   : > { %v2161_v33 = vmax.f32 %v2118_v34, 0.0  ;;  %v6489_v34 = vld [vmem:[#allocation3 + $0x9a] sm:$0xff] }
 0x3e2   : > { %v6399_v54 = vld [vmem:[#allocation3 + $0x141] sm:$0xff] }
 0x3e3   : > { %2237 = vst.msk [vmem:[#allocation3 + $0x151] sm:$0xff] %vm225_vm0, %v2161_v33  ;;  %v6491_v33 = vld [vmem:[#allocation3 + $0x82] sm:$0xff]  ;;  %v6579_v13 = vld [vmem:[#allocation3 + $0x13a] sm:$0xff] }
 0x3e4   : > { %2622 = vrot.lane.b32.xlu1 %v6385_v52, %s4350_s24  ;;  %2614 = vrot.lane.b32.xlu0 %v6387_v32, %s4350_s24  ;;  %8287 = vst [vmem:[#allocation64_spill] sm:$0xff] %v6579_v13 }
 0x3e5   : > { %2618 = vrot.lane.b32.xlu2 %v6393_v62, %s4350_s24 }
 0x3e6   : > { %v2120_v27 = vpop.f32.mrf.mxu2  ;;  %v6471_v10 = vpop.permute.xlu2 %2588 }
 0x3e7   : > { %v2121_v18 = vadd.f32 %v6093_v55, %v2120_v27  ;;  %8269 = vst [vmem:[#allocation55_spill] sm:$0xff] %v6471_v10  ;;  %v6497_v27 = vld [vmem:[#allocation3 + $0x92] sm:$0xff] }
 0x3e9   : > { %v2162_v28 = vmax.f32 %v2121_v18, 0.0  ;;  %v6501_v18 = vpop.permute.xlu0 %2578 }
 0x3ea   : > { %v6417_v39 = vld [vmem:[#allocation3 + $0x151] sm:$0xff]  ;;  %8272 = vst [vmem:[#allocation4_spill] sm:$0xff] %v6501_v18 }
 0x3eb   : > { %2238 = vst.msk [vmem:[#allocation3 + $0x159] sm:$0xff] %vm225_vm0, %v2162_v28 }
 0x3ec   : > { %2628 = vrot.lane.b32.xlu1 %v6399_v54, %s4350_s24  ;;  %2620 = vrot.lane.b32.xlu0 %v6401_v63, %s4350_s24 }
 0x3ed   : > { %2624 = vrot.lane.b32.xlu2 %v6407_v25, %s4350_s24 }
 0x3ee   : > { %v2123_v17 = vpop.f32.mrf.mxu2 }
 0x3ef   : > { %v2124_v48 = vadd.f32 %v6093_v55, %v2123_v17 }
 0x3f1   : > { %v2163_v43 = vmax.f32 %v2124_v48, 0.0  ;;  %v6507_v48 = vld [vmem:[#allocation3 + $0xc2] sm:$0xff] }
 0x3f2   : > { %v6427_v57 = vld [vmem:[#allocation3 + $0x159] sm:$0xff] }
 0x3f3   : > { %2239 = vst.msk [vmem:[#allocation3 + $0x169] sm:$0xff] %vm225_vm0, %v2163_v43  ;;  %v6509_v43 = vld [vmem:[#allocation3 + $0xaa] sm:$0xff]  ;;  %v6577_v18 = vld [vmem:[#allocation3 + $0x152] sm:$0xff] }
 0x3f4   : > { %2626 = vrot.lane.b32.xlu0 %v6413_v60, %s4350_s24  ;;  %8286 = vst [vmem:[#allocation63_spill] sm:$0xff] %v6577_v18 }
 0x3f5   : > { %2630 = vrot.lane.b32.xlu2 %v6417_v39, %s4350_s24 }
 0x3f6   : > { %v2126_v20 = vpop.f32.mrf.mxu2  ;;  %v6503_v28 = vpop.permute.xlu1 %2586 }
 0x3f7   : > { %v2127_v8 = vadd.f32 %v6093_v55, %v2126_v20  ;;  %8273 = vst [vmem:[#allocation56_spill] sm:$0xff] %v6503_v28  ;;  %v6515_v20 = vld [vmem:[#allocation3 + $0xb2] sm:$0xff]  ;;  %v6561_v28 = vld [vmem:[#allocation3 + $0x12a] sm:$0xff] }
 0x3f8   : > { %8283 = vst [vmem:[#allocation79_spill] sm:$0xff] %v6561_v28 }
 0x3f9   : > { %v2164_v3 = vmax.f32 %v2127_v8, 0.0  ;;  %v6519_v8 = vpop.permute.xlu0 %2584 }
 0x3fa   : > { %v6422_v41 = vld [vmem:[#allocation3 + $0x169] sm:$0xff]  ;;  %8275 = vst [vmem:[#allocation59_spill] sm:$0xff] %v6519_v8  ;;  %v6563_v8 = vld [vmem:[#allocation3 + $0x112] sm:$0xff] }
 0x3fb   : > { %2240 = vst.msk [vmem:[#allocation3 + $0x171] sm:$0xff] %vm225_vm0, %v2164_v3  ;;  %2634 = vrot.lane.b32.xlu1 %v6422_v41, %s4350_s24 }
 0x3fc   : > { %2632 = vrot.lane.b32.xlu0 %v6427_v57, %s4350_s24 }
 0x3fe   : > { %v2129_v42 = vpop.f32.mrf.mxu2  ;;  %v6487_v21 = vpop.permute.xlu2 %2594 }
 0x3ff   : > { %v2130_v61 = vadd.f32 %v6093_v55, %v2129_v42  ;;  %8271 = vst [vmem:[#allocation40_spill] sm:$0xff] %v6487_v21  ;;  %v6545_v21 = vld [vmem:[#allocation3 + $0xf2] sm:$0xff] }
 0x401   : > { %v2165_v9 = vmax.f32 %v2130_v61, 0.0  ;;  %v6525_v61 = vld [vmem:[#allocation3 + $0xe2] sm:$0xff] }
 0x402   : > { %v6432_v22 = vld [vmem:[#allocation3 + $0x171] sm:$0xff] }
 0x403   : > { %2241 = vst.msk [vmem:[#allocation3 + $0x181] sm:$0xff] %vm225_vm0, %v2165_v9  ;;  %2704 = vrot.lane.b32.xlu1 %v2318_v46, %s4351_s25  ;;  %2636 = vrot.lane.b32.xlu2 %v6432_v22, %s4350_s24  ;;  %v6527_v46 = vld [vmem:[#allocation3 + $0xca] sm:$0xff]  ;;  %v6533_v9 = vld [vmem:[#allocation3 + $0xda] sm:$0xff] }
 0x404   : > { %2702 = vrot.lane.b32.xlu0 %v2317_v59, %s4351_s25 }
 0x406   : > { %v2132_v16 = vpop.f32.mrf.mxu2  ;;  %v6537_v59 = vpop.permute.xlu0 %2590 }
 0x407   : > { %v2133_v29 = vadd.f32 %v6093_v55, %v2132_v16  ;;  %v6457_v55 = vld [vmem:[#allocation3 + $0x52] sm:$0xff]  ;;  %8278 = vst [vmem:[#allocation45_spill] sm:$0xff] %v6537_v59 }
 0x409   : > { %v2166_v1 = vmax.f32 %v2133_v29, 0.0 }
 0x40b   : > { %2242 = vst.msk [vmem:[#allocation3 + $0x189] sm:$0xff] %vm225_vm0, %v2166_v1  ;;  %2710 = vrot.lane.b32.xlu1 %v6442_v4, %s4351_s25  ;;  %2706 = vrot.lane.b32.xlu2 %v6444_v58, %s4351_s25  ;;  %v6543_v1 = vld [vmem:[#allocation3 + $0x10a] sm:$0xff] }
 0x40c   : > { %2708 = vrot.lane.b32.xlu0 %v6451_v49, %s4351_s25 }
 0x40e   : > { %v6521_v3 = vpop.permute.xlu1 %2592 }
 0x40f   : > { %8276 = vst [vmem:[#allocation13_spill] sm:$0xff] %v6521_v3  ;;  %v6551_v3 = vld [vmem:[#allocation3 + $0xfa] sm:$0xff] }
 0x413   : > { %2716 = vrot.lane.b32.xlu1 %v6457_v55, %s4351_s25  ;;  %2712 = vrot.lane.b32.xlu2 %v6459_v6, %s4351_s25 }
 0x414   : > { %2714 = vrot.lane.b32.xlu0 %v6465_v30, %s4351_s25 }
 0x416   : > { %v6505_v17 = vpop.permute.xlu2 %2600 }
 0x417   : > { %8274 = vst [vmem:[#allocation5_spill] sm:$0xff] %v6505_v17  ;;  %v2348_v17 = vld [vmem:[#allocation3 + $0x172] sm:$0xff] }
 0x41b   : > { %2722 = vrot.lane.b32.xlu1 %v6473_v11, %s4351_s25  ;;  %2718 = vrot.lane.b32.xlu2 %v6475_v36, %s4351_s25 }
 0x41c   : > { %2720 = vrot.lane.b32.xlu0 %v6481_v19, %s4351_s25 }
 0x41e   : > { %v6555_v59 = vpop.permute.xlu0 %2596 }
 0x41f   : > { %8281 = vst [vmem:[#allocation15_spill] sm:$0xff] %v6555_v59 }
 0x423   : > { %2728 = vrot.lane.b32.xlu1 %v6489_v34, %s4351_s25  ;;  %2724 = vrot.lane.b32.xlu2 %v6491_v33, %s4351_s25 }
 0x424   : > { %2726 = vrot.lane.b32.xlu0 %v6497_v27, %s4351_s25 }
 0x426   : > { %v6539_v16 = vpop.permute.xlu1 %2598 }
 0x427   : > { %8279 = vst [vmem:[#allocation76_spill] sm:$0xff] %v6539_v16 }
 0x42b   : > { %2734 = vrot.lane.b32.xlu1 %v6507_v48, %s4351_s25  ;;  %2730 = vrot.lane.b32.xlu2 %v6509_v43, %s4351_s25 }
 0x42c   : > { %2732 = vrot.lane.b32.xlu0 %v6515_v20, %s4351_s25 }
 0x42e   : > { %v6523_v42 = vpop.permute.xlu2 %2606 }
 0x42f   : > { %8277 = vst [vmem:[#allocation27_spill] sm:$0xff] %v6523_v42  ;;  %v6587_v42 = vld [vmem:[#allocation3 + $0x142] sm:$0xff] }
 0x430   : > { %8289 = vst [vmem:[#allocation62_spill] sm:$0xff] %v6587_v42 }
 0x433   : > { %2740 = vrot.lane.b32.xlu1 %v6525_v61, %s4351_s25  ;;  %2736 = vrot.lane.b32.xlu2 %v6527_v46, %s4351_s25 }
 0x434   : > { %2738 = vrot.lane.b32.xlu0 %v6533_v9, %s4351_s25 }
 0x436   : > { %v6573_v59 = vpop.permute.xlu0 %2602 }
 0x437   : > { %v6541_v29 = vpop.permute.xlu2 %2612  ;;  %8284 = vst [vmem:[#allocation6_spill] sm:$0xff] %v6573_v59  ;;  %v6595_v59 = vld [vmem:[#allocation3 + $0x15a] sm:$0xff] }
 0x438   : > { %8280 = vst [vmem:[#allocation14_spill] sm:$0xff] %v6541_v29 }
 0x439   : > { %8292 = vst [vmem:[#allocation143_spill] sm:$0xff] %v6595_v59 }
 0x43b   : > { %2746 = vrot.lane.b32.xlu1 %v6543_v1, %s4351_s25  ;;  %2742 = vrot.lane.b32.xlu2 %v6545_v21, %s4351_s25 }
 0x43c   : > { %2744 = vrot.lane.b32.xlu0 %v6551_v3, %s4351_s25 }
 0x43e   : > { %v6557_v16 = vpop.permute.xlu1 %2604 }
 0x43f   : > { %v6559_v10 = vpop.permute.xlu2 %2618 }
 0x440   : > { %8282 = vst [vmem:[#allocation60_spill] sm:$0xff] %v6559_v10 }
 0x443   : > { %2752 = vrot.lane.b32.xlu1 %v6561_v28, %s4351_s25  ;;  %2748 = vrot.lane.b32.xlu2 %v6563_v8, %s4351_s25 }
 0x444   : > { %2750 = vrot.lane.b32.xlu0 %v6569_v0, %s4351_s25 }
 0x446   : > { %v6575_v56 = vpop.permute.xlu1 %2610 }
 0x447   : > { %8285 = vst [vmem:[#allocation28_spill] sm:$0xff] %v6575_v56  ;;  %v6581_v12 = vpop.permute.xlu2 %2624 }
 0x448   : > { %8288 = vst [vmem:[#allocation25_spill] sm:$0xff] %v6581_v12  ;;  %v6600_v12 = vld [vmem:[#allocation3 + $0x16a] sm:$0xff] }
 0x449   : > { %8293 = vst [vmem:[#allocation152_spill] sm:$0xff] %v6600_v12 }
 0x44b   : > { %2758 = vrot.lane.b32.xlu1 %v6577_v18, %s4351_s25  ;;  %2754 = vrot.lane.b32.xlu2 %v6579_v13, %s4351_s25  ;;  %v2257_v13 = vld [vmem:[#allocation3 + $0x30] sm:$0xff] }
 0x44c   : > { %2756 = vrot.lane.b32.xlu0 %v6587_v42, %s4351_s25  ;;  %v2258_v42 = vld [vmem:[#allocation3 + $0x38] sm:$0xff] }
 0x44e   : > { %v6591_v10 = vpop.permute.xlu0 %2608  ;;  %v6593_v29 = vpop.permute.xlu1 %2616 }
 0x44f   : > { %8290 = vst [vmem:[#allocation66_spill] sm:$0xff] %v6591_v10  ;;  %v6604_v18 = vpop.permute.xlu2 %2630  ;;  %v2255_v10 = vld [vmem:[#allocation3 + $0x18] sm:$0xff] }
 0x450   : > { %8291 = vst [vmem:[#allocation133_spill] sm:$0xff] %v6593_v29  ;;  %v2256_v29 = vld [vmem:[#allocation3 + $0x20] sm:$0xff] }
 0x451   : > { %8294 = vst [vmem:[#allocation164_spill] sm:$0xff] %v6604_v18  ;;  %v2259_v18 = vld [vmem:[#allocation3 + $0x48] sm:$0xff] }
 0x453   : > { %2764 = vrot.lane.b32.xlu1 %v2348_v17, %s4351_s25  ;;  %2760 = vrot.lane.b32.xlu2 %v6595_v59, %s4351_s25 }
 0x454   : > { %2762 = vrot.lane.b32.xlu0 %v6600_v12, %s4351_s25  ;;  %v2260_v12 = vld [vmem:[#allocation3 + $0x50] sm:$0xff] }
 0x456   : > { %v6606_v56 = vpop.permute.xlu0 %2614  ;;  %v6608_v28 = vpop.permute.xlu1 %2622 }
 0x457   : > { %8295 = vst [vmem:[#allocation16_spill] sm:$0xff] %v6606_v56  ;;  %v2261_v56 = vld [vmem:[#allocation3 + $0x60] sm:$0xff] }
 0x458   : > { %8296 = vst [vmem:[#allocation33_spill] sm:$0xff] %v6608_v28 }
 0x45b   : > { %2834 = vrot.lane.b32.xlu1 %v2257_v13, %s4352_s26  ;;  %2830 = vrot.lane.b32.xlu2 %v2255_v10, %s4352_s26 }
 0x45c   : > { %2832 = vrot.lane.b32.xlu0 %v2256_v29, %s4352_s26  ;;  %v2263_v29 = vld [vmem:[#allocation3 + $0x78] sm:$0xff] }
 0x45d   : > { %v6613_v17 = vpop.permute.xlu2 %2636 }
 0x45e   : > { %8297 = vst [vmem:[#allocation50_spill] sm:$0xff] %v6613_v17  ;;  %v6615_v59 = vpop.permute.xlu0 %2620  ;;  %v6620_v28 = vpop.permute.xlu1 %2628  ;;  %v2262_v17 = vld [vmem:[#allocation3 + $0x68] sm:$0xff] }
 0x45f   : > { %8298 = vst [vmem:[#allocation80_spill] sm:$0xff] %v6615_v59  ;;  %v6635_v59 = vld [vmem:[#allocation3 + $0x98] sm:$0xff] }
 0x460   : > { %8299 = vst [vmem:[#allocation93_spill] sm:$0xff] %v6620_v28  ;;  %v2265_v28 = vld [vmem:[#allocation3 + $0x90] sm:$0xff] }
 0x461   : > { %8305 = vst [vmem:[#allocation134_spill] sm:$0xff] %v6635_v59 }
 0x463   : > { %2840 = vrot.lane.b32.xlu1 %v2260_v12, %s4352_s26  ;;  %2836 = vrot.lane.b32.xlu2 %v2258_v42, %s4352_s26 }
 0x464   : > { %2838 = vrot.lane.b32.xlu0 %v2259_v18, %s4352_s26 }
 0x465   : > { %v6622_v13 = vpop.permute.xlu2 %2706 }
 0x466   : > { %8300 = vst [vmem:[#allocation94_spill] sm:$0xff] %v6622_v13  ;;  %v6624_v10 = vpop.permute.xlu0 %2626  ;;  %v2264_v13 = vld [vmem:[#allocation3 + $0x80] sm:$0xff] }
 0x467   : > { %8301 = vst [vmem:[#allocation113_spill] sm:$0xff] %v6624_v10  ;;  %v6649_v10 = vld [vmem:[#allocation3 + $0xa8] sm:$0xff] }
 0x468   : > { %8310 = vst [vmem:[#allocation65_spill] sm:$0xff] %v6649_v10 }
 0x46b   : > { %2846 = vrot.lane.b32.xlu1 %v2263_v29, %s4352_s26  ;;  %2842 = vrot.lane.b32.xlu2 %v2261_v56, %s4352_s26 }
 0x46c   : > { %2844 = vrot.lane.b32.xlu0 %v2262_v17, %s4352_s26 }
 0x46d   : > { %v6629_v12 = vpop.permute.xlu1 %2634  ;;  %v6631_v42 = vpop.permute.xlu2 %2712 }
 0x46e   : > { %8302 = vst [vmem:[#allocation31_spill] sm:$0xff] %v6629_v12  ;;  %v6633_v18 = vpop.permute.xlu0 %2632  ;;  %v6687_v12 = vld [vmem:[#allocation3 + $0xf8] sm:$0xff] }
 0x46f   : > { %8303 = vst [vmem:[#allocation49_spill] sm:$0xff] %v6631_v42  ;;  %v6647_v42 = vld [vmem:[#allocation3 + $0xc0] sm:$0xff] }
 0x470   : > { %8304 = vst [vmem:[#allocation121_spill] sm:$0xff] %v6633_v18  ;;  %v6651_v18 = vld [vmem:[#allocation3 + $0xb0] sm:$0xff] }
 0x471   : > { %8309 = vst [vmem:[#allocation18_spill] sm:$0xff] %v6647_v42 }
 0x472   : > { %8322 = vst [vmem:[#allocation8_spill] sm:$0xff] %v6687_v12 }
 0x473   : > { %2852 = vrot.lane.b32.xlu1 %v6635_v59, %s4352_s26  ;;  %2848 = vrot.lane.b32.xlu2 %v2264_v13, %s4352_s26  ;;  %v6669_v59 = vld [vmem:[#allocation3 + $0xd8] sm:$0xff] }
 0x474   : > { %2850 = vrot.lane.b32.xlu0 %v2265_v28, %s4352_s26  ;;  %8316 = vst [vmem:[#allocation120_spill] sm:$0xff] %v6669_v59 }
 0x475   : > { %v6641_v56 = vpop.permute.xlu1 %2704  ;;  %v6643_v17 = vpop.permute.xlu2 %2718 }
 0x476   : > { %8306 = vst [vmem:[#allocation135_spill] sm:$0xff] %v6641_v56  ;;  %v6645_v29 = vpop.permute.xlu0 %2702  ;;  %v6665_v56 = vld [vmem:[#allocation3 + $0xe0] sm:$0xff] }
 0x477   : > { %8307 = vst [vmem:[#allocation156_spill] sm:$0xff] %v6643_v17 }
 0x478   : > { %8308 = vst [vmem:[#allocation17_spill] sm:$0xff] %v6645_v29  ;;  %v6667_v29 = vld [vmem:[#allocation3 + $0xc8] sm:$0xff] }
 0x479   : > { %8314 = vst [vmem:[#allocation114_spill] sm:$0xff] %v6665_v56 }
 0x47a   : > { %8315 = vst [vmem:[#allocation115_spill] sm:$0xff] %v6667_v29 }
 0x47b   : > { %2858 = vrot.lane.b32.xlu1 %v6647_v42, %s4352_s26  ;;  %2854 = vrot.lane.b32.xlu2 %v6649_v10, %s4352_s26  ;;  %v6683_v42 = vld [vmem:[#allocation3 + $0x108] sm:$0xff]  ;;  %v6685_v10 = vld [vmem:[#allocation3 + $0xf0] sm:$0xff] }
 0x47c   : > { %2856 = vrot.lane.b32.xlu0 %v6651_v18, %s4352_s26  ;;  %8320 = vst [vmem:[#allocation157_spill] sm:$0xff] %v6683_v42 }
 0x47d   : > { %v6659_v28 = vpop.permute.xlu1 %2710  ;;  %v6661_v13 = vpop.permute.xlu2 %2724  ;;  %8321 = vst [vmem:[#allocation158_spill] sm:$0xff] %v6685_v10 }
 0x47e   : > { %8311 = vst [vmem:[#allocation83_spill] sm:$0xff] %v6659_v28  ;;  %v6663_v17 = vpop.permute.xlu0 %2708 }
 0x47f   : > { %8312 = vst [vmem:[#allocation91_spill] sm:$0xff] %v6661_v13 }
 0x480   : > { %8313 = vst [vmem:[#allocation102_spill] sm:$0xff] %v6663_v17 }
 0x483   : > { %2864 = vrot.lane.b32.xlu1 %v6665_v56, %s4352_s26  ;;  %2860 = vrot.lane.b32.xlu2 %v6667_v29, %s4352_s26  ;;  %v6703_v29 = vld [vmem:[#allocation3 + $0x110] sm:$0xff] }
 0x484   : > { %2862 = vrot.lane.b32.xlu0 %v6669_v59, %s4352_s26  ;;  %8327 = vst [vmem:[#allocation104_spill] sm:$0xff] %v6703_v29  ;;  %v6705_v59 = vld [vmem:[#allocation3 + $0x120] sm:$0xff] }
 0x485   : > { %v6677_v28 = vpop.permute.xlu1 %2716  ;;  %v6679_v13 = vpop.permute.xlu2 %2730  ;;  %8328 = vst [vmem:[#allocation111_spill] sm:$0xff] %v6705_v59 }
 0x486   : > { %8317 = vst [vmem:[#allocation123_spill] sm:$0xff] %v6677_v28  ;;  %v6681_v17 = vpop.permute.xlu0 %2714 }
 0x487   : > { %8318 = vst [vmem:[#allocation131_spill] sm:$0xff] %v6679_v13  ;;  %v6701_v13 = vld [vmem:[#allocation3 + $0x128] sm:$0xff] }
 0x488   : > { %8319 = vst [vmem:[#allocation144_spill] sm:$0xff] %v6681_v17 }
 0x489   : > { %8326 = vst [vmem:[#allocation95_spill] sm:$0xff] %v6701_v13 }
 0x48b   : > { %2870 = vrot.lane.b32.xlu1 %v6683_v42, %s4352_s26  ;;  %2866 = vrot.lane.b32.xlu2 %v6685_v10, %s4352_s26  ;;  %v6721_v10 = vld [vmem:[#allocation3 + $0x138] sm:$0xff] }
 0x48c   : > { %2868 = vrot.lane.b32.xlu0 %v6687_v12, %s4352_s26  ;;  %v6719_v12 = vld [vmem:[#allocation3 + $0x150] sm:$0xff]  ;;  %8333 = vst [vmem:[#allocation146_spill] sm:$0xff] %v6721_v10 }
 0x48d   : > { %v6695_v28 = vpop.permute.xlu1 %2722  ;;  %v6697_v56 = vpop.permute.xlu2 %2736  ;;  %8332 = vst [vmem:[#allocation136_spill] sm:$0xff] %v6719_v12 }
 0x48e   : > { %8323 = vst [vmem:[#allocation34_spill] sm:$0xff] %v6695_v28  ;;  %v6699_v17 = vpop.permute.xlu0 %2720 }
 0x48f   : > { %8324 = vst [vmem:[#allocation68_spill] sm:$0xff] %v6697_v56  ;;  %v6723_v56 = vld [vmem:[#allocation3 + $0x140] sm:$0xff] }
 0x490   : > { %8325 = vst [vmem:[#allocation69_spill] sm:$0xff] %v6699_v17 }
 0x491   : > { %8334 = vst [vmem:[#allocation154_spill] sm:$0xff] %v6723_v56 }
 0x493   : > { %2876 = vrot.lane.b32.xlu1 %v6701_v13, %s4352_s26  ;;  %2872 = vrot.lane.b32.xlu2 %v6703_v29, %s4352_s26  ;;  %v6739_v29 = vld [vmem:[#allocation3 + $0x168] sm:$0xff] }
 0x494   : > { %2874 = vrot.lane.b32.xlu0 %v6705_v59, %s4352_s26  ;;  %v6737_v59 = vld [vmem:[#allocation3 + $0x158] sm:$0xff]  ;;  %8338 = vst [vmem:[#allocation84_spill] sm:$0xff] %v6739_v29 }
 0x495   : > { %v6713_v28 = vpop.permute.xlu1 %2728  ;;  %v6715_v42 = vpop.permute.xlu2 %2742  ;;  %8337 = vst [vmem:[#allocation54_spill] sm:$0xff] %v6737_v59 }
 0x496   : > { %8329 = vst [vmem:[#allocation118_spill] sm:$0xff] %v6713_v28  ;;  %v6717_v17 = vpop.permute.xlu0 %2726  ;;  %v2284_v28 = vld [vmem:[#allocation3 + $0x170] sm:$0xff] }
 0x497   : > { %8330 = vst [vmem:[#allocation72_spill] sm:$0xff] %v6715_v42 }
 0x498   : > { %8331 = vst [vmem:[#allocation67_spill] sm:$0xff] %v6717_v17 }
 0x49b   : > { %2882 = vrot.lane.b32.xlu1 %v6719_v12, %s4352_s26  ;;  %2878 = vrot.lane.b32.xlu2 %v6721_v10, %s4352_s26 }
 0x49c   : > { %2880 = vrot.lane.b32.xlu0 %v6723_v56, %s4352_s26  ;;  %v2380_v56 = vld [vmem:[#allocation3 + $0x188] sm:$0xff] }
 0x49d   : > { %v6731_v13 = vpop.permute.xlu1 %2734  ;;  %v6733_v42 = vpop.permute.xlu2 %2748 }
 0x49e   : > { %8335 = vst [vmem:[#allocation19_spill] sm:$0xff] %v6731_v13  ;;  %v6735_v17 = vpop.permute.xlu0 %2732 }
 0x49f   : > { %8336 = vst [vmem:[#allocation36_spill] sm:$0xff] %v6733_v42  ;;  %v2379_v42 = vld [vmem:[#allocation3 + $0x180] sm:$0xff] }
 0x4a3   : > { %2888 = vrot.lane.b32.xlu1 %v2284_v28, %s4352_s26  ;;  %2884 = vrot.lane.b32.xlu2 %v6737_v59, %s4352_s26 }
 0x4a4   : > { %2886 = vrot.lane.b32.xlu0 %v6739_v29, %s4352_s26 }
 0x4a5   : > { %v6746_v12 = vpop.permute.xlu1 %2740  ;;  %v6748_v13 = vpop.permute.xlu2 %2754 }
 0x4a6   : > { %v6750_v10 = vpop.permute.xlu0 %2738 }
 0x4ab   : > { %2958 = vrot.lane.b32.xlu1 %v6156_v35, %s4353_s27  ;;  %2890 = vrot.lane.b32.xlu2 %v2379_v42, %s4352_s26 }
 0x4ac   : > { %2892 = vrot.lane.b32.xlu0 %v2380_v56, %s4352_s26 }
 0x4ad   : > { %v6756_v28 = vpop.permute.xlu1 %2746  ;;  %v6758_v59 = vpop.permute.xlu2 %2760 }
 0x4ae   : > { %v6760_v29 = vpop.permute.xlu0 %2744 }
 0x4b3   : > { %2964 = vrot.lane.b32.xlu1 %v6262_v2, %s4353_s27  ;;  %2960 = vrot.lane.b32.xlu2 %v6218_v24, %s4353_s27 }
 0x4b4   : > { %2962 = vrot.lane.b32.xlu0 %v6240_v51, %s4353_s27 }
 0x4b5   : > { %v6768_v35 = vpop.permute.xlu1 %2752  ;;  %v6770_v42 = vpop.permute.xlu2 %2830 }
 0x4b6   : > { %v6772_v56 = vpop.permute.xlu0 %2750 }
 0x4bb   : > { %2970 = vrot.lane.b32.xlu1 %v6296_v50, %s4353_s27  ;;  %2966 = vrot.lane.b32.xlu2 %v6282_v23, %s4353_s27 }
 0x4bc   : > { %2968 = vrot.lane.b32.xlu0 %v6288_v53, %s4353_s27 }
 0x4bd   : > { %v6780_v2 = vpop.permute.xlu1 %2758  ;;  %v6782_v24 = vpop.permute.xlu2 %2836 }
 0x4be   : > { %8339 = vst [vmem:[#allocation96_spill] sm:$0xff] %v6782_v24  ;;  %v6784_v51 = vpop.permute.xlu0 %2756 }
 0x4c3   : > { %2976 = vrot.lane.b32.xlu1 %v6320_v44, %s4353_s27  ;;  %2972 = vrot.lane.b32.xlu2 %v6304_v38, %s4353_s27 }
 0x4c4   : > { %2974 = vrot.lane.b32.xlu0 %v6312_v15, %s4353_s27 }
 0x4c5   : > { %v6792_v50 = vpop.permute.xlu1 %2764  ;;  %v6794_v23 = vpop.permute.xlu2 %2842 }
 0x4c6   : > { %8340 = vst [vmem:[#allocation97_spill] sm:$0xff] %v6792_v50  ;;  %v6796_v53 = vpop.permute.xlu0 %2762  ;;  %v6870_v50 = vld [vmem:[#allocation3 + $0x181] sm:$0xff] }
 0x4c7   : > { %8341 = vst [vmem:[#allocation116_spill] sm:$0xff] %v6794_v23  ;;  %v8367_v23 = vld [vmem:[#allocation120_spill] sm:$0xff] }
 0x4c8   : > { %8350 = vst [vmem:[#allocation70_spill] sm:$0xff] %v6870_v50 }
 0x4cb   : > { %2982 = vrot.lane.b32.xlu1 %v6344_v45, %s4353_s27  ;;  %2978 = vrot.lane.b32.xlu2 %v6328_v47, %s4353_s27 }
 0x4cc   : > { %2980 = vrot.lane.b32.xlu0 %v6336_v26, %s4353_s27 }
 0x4cd   : > { %v6804_v44 = vpop.permute.xlu1 %2834  ;;  %v6806_v38 = vpop.permute.xlu2 %2848 }
 0x4ce   : > { %8342 = vst [vmem:[#allocation38_spill] sm:$0xff] %v6806_v38  ;;  %v6808_v15 = vpop.permute.xlu0 %2832 }
 0x4d3   : > { %2988 = vrot.lane.b32.xlu1 %v6373_v5, %s4353_s27  ;;  %2984 = vrot.lane.b32.xlu2 %v6352_v37, %s4353_s27 }
 0x4d4   : > { %2986 = vrot.lane.b32.xlu0 %v6362_v40, %s4353_s27 }
 0x4d5   : > { %v6816_v45 = vpop.permute.xlu1 %2840  ;;  %v6818_v47 = vpop.permute.xlu2 %2854 }
 0x4d6   : > { %8343 = vst [vmem:[#allocation57_spill] sm:$0xff] %v6816_v45  ;;  %v6820_v26 = vpop.permute.xlu0 %2838 }
 0x4d7   : > { %8344 = vst [vmem:[#allocation124_spill] sm:$0xff] %v6818_v47  ;;  %v6884_v47 = vld [vmem:[#allocation3 + $0x189] sm:$0xff] }
 0x4d8   : > { %8345 = vst [vmem:[#allocation137_spill] sm:$0xff] %v6820_v26 }
 0x4d9   : > { %8351 = vst [vmem:[#allocation85_spill] sm:$0xff] %v6884_v47 }
 0x4db   : > { %2994 = vrot.lane.b32.xlu1 %v6387_v32, %s4353_s27  ;;  %2990 = vrot.lane.b32.xlu2 %v6360_v14, %s4353_s27 }
 0x4dc   : > { %2992 = vrot.lane.b32.xlu0 %v6379_v31, %s4353_s27 }
 0x4dd   : > { %v6828_v5 = vpop.permute.xlu1 %2846  ;;  %v6830_v37 = vpop.permute.xlu2 %2860 }
 0x4de   : > { %8346 = vst [vmem:[#allocation138_spill] sm:$0xff] %v6828_v5  ;;  %v6832_v40 = vpop.permute.xlu0 %2844  ;;  %v8364_v5 = vld [vmem:[#allocation79_spill] sm:$0xff] }
 0x4df   : > { %8347 = vst [vmem:[#allocation159_spill] sm:$0xff] %v6832_v40  ;;  %v8365_v40 = vld [vmem:[#allocation64_spill] sm:$0xff] }
 0x4e3   : > { %3000 = vrot.lane.b32.xlu1 %v6401_v63, %s4353_s27  ;;  %2996 = vrot.lane.b32.xlu2 %v6371_v7, %s4353_s27 }
 0x4e4   : > { %2998 = vrot.lane.b32.xlu0 %v6393_v62, %s4353_s27 }
 0x4e5   : > { %v6840_v32 = vpop.permute.xlu1 %2852  ;;  %v6842_v14 = vpop.permute.xlu2 %2866 }
 0x4e6   : > { %8348 = vst [vmem:[#allocation21_spill] sm:$0xff] %v6840_v32  ;;  %v6844_v31 = vpop.permute.xlu0 %2850 }
 0x4e7   : > { %8349 = vst [vmem:[#allocation22_spill] sm:$0xff] %v6844_v31 }
 0x4eb   : > { %3006 = vrot.lane.b32.xlu1 %v6413_v60, %s4353_s27  ;;  %3002 = vrot.lane.b32.xlu2 %v6385_v52, %s4353_s27 }
 0x4ec   : > { %3004 = vrot.lane.b32.xlu0 %v6407_v25, %s4353_s27 }
 0x4ed   : > { %v6852_v63 = vpop.permute.xlu1 %2858  ;;  %v6854_v7 = vpop.permute.xlu2 %2872 }
 0x4ee   : > { %v6856_v62 = vpop.permute.xlu0 %2856 }
 0x4f3   : > { %3012 = vrot.lane.b32.xlu1 %v6427_v57, %s4353_s27  ;;  %3008 = vrot.lane.b32.xlu2 %v6399_v54, %s4353_s27 }
 0x4f4   : > { %3010 = vrot.lane.b32.xlu0 %v6417_v39, %s4353_s27 }
 0x4f5   : > { %v6864_v60 = vpop.permute.xlu1 %2864  ;;  %v6866_v52 = vpop.permute.xlu2 %2878 }
 0x4f6   : > { %v6868_v25 = vpop.permute.xlu0 %2862 }
 0x4fb   : > { %3018 = vrot.lane.b32.xlu1 %v6870_v50, %s4353_s27  ;;  %3014 = vrot.lane.b32.xlu2 %v6422_v41, %s4353_s27 }
 0x4fc   : > { %3016 = vrot.lane.b32.xlu0 %v6432_v22, %s4353_s27 }
 0x4fd   : > { %v6878_v54 = vpop.permute.xlu1 %2870  ;;  %v6880_v39 = vpop.permute.xlu2 %2884 }
 0x4fe   : > { %v6882_v57 = vpop.permute.xlu0 %2868 }
 0x503   : > { %3088 = vrot.lane.b32.xlu1 %v6451_v49, %s4354_s28  ;;  %3020 = vrot.lane.b32.xlu2 %v6884_v47, %s4353_s27  ;;  %v8373_v47 = vld [vmem:[#allocation68_spill] sm:$0xff] }
 0x504   : > { %3086 = vrot.lane.b32.xlu0 %v6444_v58, %s4354_s28 }
 0x505   : > { %v6892_v41 = vpop.permute.xlu1 %2876  ;;  %v6894_v22 = vpop.permute.xlu2 %2890 }
 0x506   : > { %v6896_v32 = vpop.permute.xlu0 %2874 }
 0x50b   : > { %3094 = vrot.lane.b32.xlu1 %v6465_v30, %s4354_s28  ;;  %3090 = vrot.lane.b32.xlu2 %v6442_v4, %s4354_s28 }
 0x50c   : > { %3092 = vrot.lane.b32.xlu0 %v6459_v6, %s4354_s28 }
 0x50d   : > { %v6904_v49 = vpop.permute.xlu1 %2882  ;;  %v6906_v31 = vpop.permute.xlu2 %2960 }
 0x50e   : > { %v6908_v58 = vpop.permute.xlu0 %2880 }
 0x513   : > { %3100 = vrot.lane.b32.xlu1 %v6481_v19, %s4354_s28  ;;  %3096 = vrot.lane.b32.xlu2 %v6457_v55, %s4354_s28 }
 0x514   : > { %3098 = vrot.lane.b32.xlu0 %v6475_v36, %s4354_s28 }
 0x515   : > { %v6916_v30 = vpop.permute.xlu1 %2888  ;;  %v6918_v38 = vpop.permute.xlu2 %2966 }
 0x516   : > { %8352 = vst [vmem:[#allocation92_spill] sm:$0xff] %v6918_v38  ;;  %v6920_v6 = vpop.permute.xlu0 %2886  ;;  %v8379_v38 = vld [vmem:[#allocation31_spill] sm:$0xff] }
 0x51b   : > { %3106 = vrot.lane.b32.xlu1 %v6497_v27, %s4354_s28  ;;  %3102 = vrot.lane.b32.xlu2 %v6473_v11, %s4354_s28 }
 0x51c   : > { %3104 = vrot.lane.b32.xlu0 %v6491_v33, %s4354_s28 }
 0x51d   : > { %v6928_v19 = vpop.permute.xlu1 %2958  ;;  %v6930_v55 = vpop.permute.xlu2 %2972 }
 0x51e   : > { %8353 = vst [vmem:[#allocation105_spill] sm:$0xff] %v6930_v55  ;;  %v6932_v36 = vpop.permute.xlu0 %2892 }
 0x51f   : > { %8354 = vst [vmem:[#allocation20_spill] sm:$0xff] %v6932_v36 }
 0x523   : > { %3112 = vrot.lane.b32.xlu1 %v6515_v20, %s4354_s28  ;;  %3108 = vrot.lane.b32.xlu2 %v6489_v34, %s4354_s28 }
 0x524   : > { %3110 = vrot.lane.b32.xlu0 %v6509_v43, %s4354_s28 }
 0x525   : > { %v6940_v27 = vpop.permute.xlu1 %2964  ;;  %v6942_v11 = vpop.permute.xlu2 %2978 }
 0x526   : > { %8355 = vst [vmem:[#allocation24_spill] sm:$0xff] %v6940_v27  ;;  %v6944_v33 = vpop.permute.xlu0 %2962 }
 0x527   : > { %8356 = vst [vmem:[#allocation71_spill] sm:$0xff] %v6942_v11 }
 0x52b   : > { %3118 = vrot.lane.b32.xlu1 %v6533_v9, %s4354_s28  ;;  %3114 = vrot.lane.b32.xlu2 %v6507_v48, %s4354_s28 }
 0x52c   : > { %3116 = vrot.lane.b32.xlu0 %v6527_v46, %s4354_s28 }
 0x52d   : > { %v6952_v20 = vpop.permute.xlu1 %2970  ;;  %v6954_v34 = vpop.permute.xlu2 %2984 }
 0x52e   : > { %8357 = vst [vmem:[#allocation125_spill] sm:$0xff] %v6952_v20  ;;  %v6956_v43 = vpop.permute.xlu0 %2968 }
 0x52f   : > { %8358 = vst [vmem:[#allocation132_spill] sm:$0xff] %v6956_v43 }
 0x533   : > { %3124 = vrot.lane.b32.xlu1 %v6551_v3, %s4354_s28  ;;  %3120 = vrot.lane.b32.xlu2 %v6525_v61, %s4354_s28 }
 0x534   : > { %3122 = vrot.lane.b32.xlu0 %v6545_v21, %s4354_s28 }
 0x535   : > { %v6964_v9 = vpop.permute.xlu1 %2976  ;;  %v6966_v48 = vpop.permute.xlu2 %2990 }
 0x536   : > { %8359 = vst [vmem:[#allocation147_spill] sm:$0xff] %v6964_v9  ;;  %v6968_v46 = vpop.permute.xlu0 %2974  ;;  %v3581_v9 = vsel %vm225_vm0, %v6651_v18, %v6557_v16 }
 0x537   : > { %8360 = vst [vmem:[#allocation160_spill] sm:$0xff] %v6968_v46  ;;  %v8363_v46 = vld [vmem:[#allocation62_spill] sm:$0xff]  ;;  %v3613_v55 = vsel %vm1691_vm3, %v3581_v9, %v6735_v17  ;;  %v8368_v17 = vld [vmem:[#allocation152_spill] sm:$0xff] }
 0x538   : > { %v8370_v9 = vld [vmem:[#allocation66_spill] sm:$0xff] }
 0x53b   : > { %3130 = vrot.lane.b32.xlu1 %v6569_v0, %s4354_s28  ;;  %3126 = vrot.lane.b32.xlu2 %v6543_v1, %s4354_s28 }
 0x53c   : > { %3128 = vrot.lane.b32.xlu0 %v6563_v8, %s4354_s28 }
 0x53d   : > { %v6976_v36 = vpop.permute.xlu1 %2982  ;;  %v6978_v61 = vpop.permute.xlu2 %2996 }
 0x53e   : > { %8361 = vst [vmem:[#allocation161_spill] sm:$0xff] %v6976_v36  ;;  %v6980_v11 = vpop.permute.xlu0 %2980  ;;  %v3645_v36 = vsel %vm1724_vm4, %v3613_v55, %v6830_v37  ;;  %v8371_v37 = vld [vmem:[#allocation115_spill] sm:$0xff] }
 0x53f   : > { %8362 = vst [vmem:[#allocation11_spill] sm:$0xff] %v6980_v11  ;;  %v3583_v55 = vsel %vm225_vm0, %v8371_v37, %v8370_v9 }
 0x540   : > { %v3615_v43 = vsel %vm1691_vm3, %v3583_v55, %v8373_v47  ;;  %v8374_v47 = vld [vmem:[#allocation158_spill] sm:$0xff] }
 0x543   : > { %3136 = vrot.lane.b32.xlu1 %v8363_v46, %s4354_s28  ;;  %3132 = vrot.lane.b32.xlu2 %v8364_v5, %s4354_s28  ;;  %v8366_v46 = vld [vmem:[#allocation28_spill] sm:$0xff] }
 0x544   : > { %3134 = vrot.lane.b32.xlu0 %v8365_v40, %s4354_s28  ;;  %v3584_v5 = vsel %vm225_vm0, %v8367_v23, %v8366_v46  ;;  %v8369_v40 = vld [vmem:[#allocation63_spill] sm:$0xff] }
 0x545   : > { %v2989_v11 = vpop.permute.xlu1 %2988  ;;  %v6995_v20 = vpop.permute.xlu2 %3002 }
 0x546   : > { %v6998_v16 = vsel %vm1757_vm6, %v3645_v36, %v2989_v11  ;;  %v7000_v18 = vpop.permute.xlu0 %2986  ;;  %v3616_v36 = vsel %vm1691_vm3, %v3584_v5, %v6750_v10  ;;  %v8372_v11 = vld [vmem:[#allocation143_spill] sm:$0xff] }
 0x547   : > { %v3648_v23 = vsel %vm1724_vm4, %v3616_v36, %v6842_v14  ;;  %v2494_v14 = vld [vmem:[#allocation3 + $0xf1] sm:$0xff] }
 0x548   : > { %v8375_v36 = vld [vmem:[#allocation8_spill] sm:$0xff] }
 0x54b   : > { %3142 = vrot.lane.b32.xlu1 %v8368_v17, %s4354_s28  ;;  %3138 = vrot.lane.b32.xlu2 %v8369_v40, %s4354_s28  ;;  %v3647_v40 = vsel %vm1724_vm4, %v3615_v43, %v6864_v60  ;;  %v2446_v43 = vld [vmem:[#allocation3 + $0x30] sm:$0xff] }
 0x54c   : > { %3140 = vrot.lane.b32.xlu0 %v8372_v11, %s4354_s28  ;;  %v2478_v11 = vld [vmem:[#allocation3 + $0x31] sm:$0xff] }
 0x54d   : > { %v2995_v46 = vpop.permute.xlu1 %2994  ;;  %v7020_v17 = vpop.permute.xlu2 %3008 }
 0x54e   : > { %v7025_v9 = vsel %vm1757_vm6, %v3648_v23, %v2995_v46  ;;  %v2993_v37 = vpop.permute.xlu0 %2992 }
 0x54f   : > { %v7028_v10 = vsel %vm1757_vm6, %v3647_v40, %v2993_v37  ;;  %v8377_v40 = vld [vmem:[#allocation93_spill] sm:$0xff]  ;;  %v8378_v37 = vld [vmem:[#allocation154_spill] sm:$0xff] }
 0x553   : > { %3502 = vrot.lane.b32.xlu1 %v6545_v21, %s4357_s6  ;;  %3246 = vrot.lane.b32.xlu2 %v8374_v47, %s4355_s29 }
 0x554   : > { %3374 = vrot.lane.b32.xlu0 %v2494_v14, %s4356_s30  ;;  %v3593_v14 = vsel %vm225_vm0, %v8378_v37, %v8377_v40 }
 0x555   : > { %v7035_v5 = vpop.permute.xlu1 %3000  ;;  %v7037_v55 = vpop.permute.xlu2 %3014 }
 0x556   : > { %v7039_v60 = vpop.permute.xlu0 %2998 }
 0x55b   : > { %3248 = vrot.lane.b32.xlu1 %v8375_v36, %s4355_s29  ;;  %3214 = vrot.lane.b32.xlu2 %v2446_v43, %s4355_s29  ;;  %v2495_v43 = vld [vmem:[#allocation3 + $0xf9] sm:$0xff] }
 0x55c   : > { %3342 = vrot.lane.b32.xlu0 %v2478_v11, %s4356_s30  ;;  %v3625_v11 = vsel %vm1691_vm3, %v3593_v14, %v6784_v51  ;;  %v8381_v51 = vld [vmem:[#allocation157_spill] sm:$0xff] }
 0x55d   : > { %v7045_v21 = vpop.permute.xlu1 %3006  ;;  %v7047_v23 = vpop.permute.xlu2 %3020  ;;  %v2479_v14 = vld [vmem:[#allocation3 + $0x39] sm:$0xff] }
 0x55e   : > { %8376 = vst [vmem:[#allocation37_spill] sm:$0xff] %v7047_v23  ;;  %v7049_v46 = vpop.permute.xlu0 %3004  ;;  %v3657_v23 = vsel %vm1724_vm4, %v3625_v11, %v6880_v39  ;;  %v8382_v39 = vld [vmem:[#allocation121_spill] sm:$0xff] }
 0x563   : > { %3504 = vrot.lane.b32.xlu1 %v6551_v3, %s4357_s6  ;;  %3470 = vrot.lane.b32.xlu2 %v6442_v4, %s4357_s6  ;;  %v2447_v3 = vld [vmem:[#allocation3 + $0x38] sm:$0xff]  ;;  %v8380_v4 = vld [vmem:[#allocation84_spill] sm:$0xff] }
 0x564   : > { %3376 = vrot.lane.b32.xlu0 %v2495_v43, %s4356_s30  ;;  %v3596_v26 = vsel %vm225_vm0, %v8380_v4, %v8379_v38  ;;  %v8383_v43 = vld [vmem:[#allocation54_spill] sm:$0xff] }
 0x565   : > { %v3013_v45 = vpop.permute.xlu1 %3012  ;;  %v7063_v50 = vpop.permute.xlu2 %3090  ;;  %v3595_v11 = vsel %vm225_vm0, %v8383_v43, %v8382_v39  ;;  %v2448_v43 = vld [vmem:[#allocation3 + $0x48] sm:$0xff] }
 0x566   : > { %v7066_v40 = vsel %vm1757_vm6, %v3657_v23, %v3013_v45  ;;  %v7068_v37 = vpop.permute.xlu0 %3010  ;;  %v3628_v45 = vsel %vm1691_vm3, %v3596_v26, %v6796_v53  ;;  %v3627_v23 = vsel %vm1691_vm3, %v3595_v11, %v6758_v59  ;;  %v2511_v26 = vld [vmem:[#allocation3 + $0x3a] sm:$0xff]  ;;  %v2496_v59 = vld [vmem:[#allocation3 + $0x109] sm:$0xff] }
 0x567   : > { %v3660_v38 = vsel %vm1724_vm4, %v3628_v45, %v6894_v22  ;;  %v8387_v11 = vld [vmem:[#allocation104_spill] sm:$0xff] }
 0x568   : > { %v2480_v45 = vld [vmem:[#allocation3 + $0x49] sm:$0xff] }
 0x56b   : > { %3250 = vrot.lane.b32.xlu1 %v8381_v51, %s4355_s29  ;;  %3216 = vrot.lane.b32.xlu2 %v2447_v3, %s4355_s29  ;;  %v3659_v3 = vsel %vm1724_vm4, %v3627_v23, %v6916_v30 }
 0x56c   : > { %3344 = vrot.lane.b32.xlu0 %v2479_v14, %s4356_s30 }
 0x56d   : > { %v3019_v4 = vpop.permute.xlu1 %3018  ;;  %v7086_v27 = vpop.permute.xlu2 %3096 }
 0x56e   : > { %v7091_v24 = vsel %vm1757_vm6, %v3660_v38, %v3019_v4  ;;  %v3017_v39 = vpop.permute.xlu0 %3016  ;;  %v8389_v4 = vld [vmem:[#allocation6_spill] sm:$0xff] }
 0x56f   : > { %8384 = vst [vmem:[#allocation74_spill] sm:$0xff] %v7091_v24  ;;  %v7094_v53 = vsel %vm1757_vm6, %v3659_v3, %v3017_v39  ;;  %v8390_v3 = vld [vmem:[#allocation65_spill] sm:$0xff] }
 0x570   : > { %8385 = vst [vmem:[#allocation75_spill] sm:$0xff] %v7094_v53  ;;  %v3580_v39 = vsel %vm225_vm0, %v8390_v3, %v8389_v4 }
 0x573   : > { %3506 = vrot.lane.b32.xlu1 %v6543_v1, %s4357_s6  ;;  %3472 = vrot.lane.b32.xlu2 %v2511_v26, %s4357_s6  ;;  %v2512_v26 = vld [vmem:[#allocation3 + $0x4a] sm:$0xff] }
 0x574   : > { %3378 = vrot.lane.b32.xlu0 %v2496_v59, %s4356_s30  ;;  %v8391_v59 = vld [vmem:[#allocation131_spill] sm:$0xff] }
 0x575   : > { %v7100_v22 = vpop.permute.xlu1 %3088  ;;  %v7102_v14 = vpop.permute.xlu2 %3102  ;;  %v3612_v24 = vsel %vm1691_vm3, %v3580_v39, %v8391_v59 }
 0x576   : > { %8386 = vst [vmem:[#allocation98_spill] sm:$0xff] %v7102_v14  ;;  %v7104_v30 = vpop.permute.xlu0 %3086  ;;  %v2513_v14 = vld [vmem:[#allocation3 + $0x52] sm:$0xff] }
 0x57b   : > { %3252 = vrot.lane.b32.xlu1 %v8387_v11, %s4355_s29  ;;  %3218 = vrot.lane.b32.xlu2 %v2448_v43, %s4355_s29  ;;  %v2497_v43 = vld [vmem:[#allocation3 + $0x111] sm:$0xff] }
 0x57c   : > { %3346 = vrot.lane.b32.xlu0 %v2480_v45, %s4356_s30  ;;  %v3644_v45 = vsel %vm1724_vm4, %v3612_v24, %v6852_v63  ;;  %v2481_v24 = vld [vmem:[#allocation3 + $0x51] sm:$0xff] }
 0x57d   : > { %v7110_v1 = vpop.permute.xlu1 %3094  ;;  %v7112_v23 = vpop.permute.xlu2 %3108  ;;  %v3676_v53 = vsel %vm1757_vm6, %v3644_v45, %v7000_v18 }
 0x57e   : > { %8388 = vst [vmem:[#allocation106_spill] sm:$0xff] %v7112_v23  ;;  %v7114_v38 = vpop.permute.xlu0 %3092 }
 0x583   : > { %3508 = vrot.lane.b32.xlu1 %v6563_v8, %s4357_s6  ;;  %3474 = vrot.lane.b32.xlu2 %v2512_v26, %s4357_s6  ;;  %v2449_v8 = vld [vmem:[#allocation3 + $0x50] sm:$0xff]  ;;  %v8395_v26 = vld [vmem:[#allocation111_spill] sm:$0xff] }
 0x584   : > { %3380 = vrot.lane.b32.xlu0 %v2497_v43, %s4356_s30  ;;  %v8397_v43 = vld [vmem:[#allocation5_spill] sm:$0xff] }
 0x585   : > { %v7129_v23 = vpop.permute.xlu1 %3100  ;;  %v3115_v4 = vpop.permute.xlu2 %3114 }
 0x586   : > { %8392 = vst [vmem:[#allocation112_spill] sm:$0xff] %v7129_v23  ;;  %v7132_v3 = vsel %vm1790_vm5, %v3676_v53, %v3115_v4  ;;  %v7134_v39 = vpop.permute.xlu0 %3098  ;;  %v8398_v53 = vld [vmem:[#allocation134_spill] sm:$0xff]  ;;  %v8399_v4 = vld [vmem:[#allocation16_spill] sm:$0xff] }
 0x587   : > { %8393 = vst [vmem:[#allocation119_spill] sm:$0xff] %v7132_v3  ;;  %v3579_v45 = vsel %vm225_vm0, %v8398_v53, %v8397_v43  ;;  %v3586_v3 = vsel %vm225_vm0, %v8374_v47, %v8399_v4  ;;  %v8400_v23 = vld [vmem:[#allocation118_spill] sm:$0xff] }
 0x588   : > { %8394 = vst [vmem:[#allocation73_spill] sm:$0xff] %v7134_v39  ;;  %v8401_v39 = vld [vmem:[#allocation72_spill] sm:$0xff]  ;;  %v2450_v4 = vld [vmem:[#allocation3 + $0x60] sm:$0xff] }
 0x58b   : > { %3254 = vrot.lane.b32.xlu1 %v8395_v26, %s4355_s29  ;;  %3220 = vrot.lane.b32.xlu2 %v2449_v8, %s4355_s29  ;;  %v3611_v8 = vsel %vm1691_vm3, %v3579_v45, %v8400_v23  ;;  %v2467_v45 = vld [vmem:[#allocation3 + $0x128] sm:$0xff] }
 0x58c   : > { %3348 = vrot.lane.b32.xlu0 %v2481_v24, %s4356_s30  ;;  %v3618_v24 = vsel %vm1691_vm3, %v3586_v3, %v8401_v39  ;;  %v3643_v43 = vsel %vm1724_vm4, %v3611_v8, %v6856_v62  ;;  %v8403_v8 = vld [vmem:[#allocation36_spill] sm:$0xff] }
 0x58d   : > { %v7140_v63 = vpop.permute.xlu1 %3106  ;;  %v7142_v18 = vpop.permute.xlu2 %3120  ;;  %v3650_v53 = vsel %vm1724_vm4, %v3618_v24, %v6878_v54  ;;  %v3675_v47 = vsel %vm1757_vm6, %v3643_v43, %v6954_v34  ;;  %v2251_v54 = vld [vmem:[%s7833_s3 + $0x40] sm:$0xff]  ;;  %v2250_v34 = vld [vmem:[%s7833_s3 + $0x38] sm:$0xff] }
 0x58e   : > { %8396 = vst [vmem:[#allocation77_spill] sm:$0xff] %v7140_v63  ;;  %v7144_v59 = vpop.permute.xlu0 %3104  ;;  %v2498_v63 = vld [vmem:[#allocation3 + $0x121] sm:$0xff]  ;;  %v3682_v23 = vsel %vm1757_vm6, %v3650_v53, %v7039_v60  ;;  %4271 = vmatpush.msra.mxu3 %v2251_v54  ;;  %3928 = vmatpush.msra.mxu1 %v2251_v54  ;;  %v8402_v60 = vld [vmem:[#allocation80_spill] sm:$0xff] }
 0x58f   : > { %v2482_v43 = vld [vmem:[#allocation3 + $0x61] sm:$0xff] }
 0x590   : > { %4272 = vmatpush.msra.mxu3 %v2250_v34  ;;  %3929 = vmatpush.msra.mxu1 %v2250_v34  ;;  %v2249_v53 = vld [vmem:[%s7833_s3 + $0x30] sm:$0xff]  ;;  %v2248_v34 = vld [vmem:[%s7833_s3 + $0x28] sm:$0xff] }
 0x592   : > { %4273 = vmatpush.msra.mxu3 %v2249_v53  ;;  %3930 = vmatpush.msra.mxu1 %v2249_v53  ;;  %v2514_v53 = vld [vmem:[#allocation3 + $0x62] sm:$0xff] }
 0x593   : > { %3510 = vrot.lane.b32.xlu1 %v6569_v0, %s4357_s6  ;;  %3476 = vrot.lane.b32.xlu2 %v2513_v14, %s4357_s6 }
 0x594   : > { %3382 = vrot.lane.b32.xlu0 %v2498_v63, %s4356_s30  ;;  %v3589_v63 = vsel %vm225_vm0, %v8387_v11, %v8402_v60  ;;  %4274 = vmatpush.msra.mxu3 %v2248_v34  ;;  %v2246_v60 = vld [vmem:[%s7833_s3 + $0x18] sm:$0xff] }
 0x595   : > { %v3113_v3 = vpop.permute.xlu1 %3112  ;;  %v3127_v39 = vpop.permute.xlu2 %3126  ;;  %v3621_v24 = vsel %vm1691_vm3, %v3589_v63, %v8403_v8  ;;  %3931 = vmatpush.msra.mxu1 %v2248_v34  ;;  %v8404_v63 = vld [vmem:[#allocation14_spill] sm:$0xff]  ;;  %v8406_v8 = vld [vmem:[#allocation113_spill] sm:$0xff] }
 0x596   : > { %v7169_v0 = vsel %vm1790_vm5, %v3675_v47, %v3113_v3  ;;  %v7172_v14 = vsel %vm1790_vm5, %v3682_v23, %v3127_v39  ;;  %v7174_v62 = vpop.permute.xlu0 %3110  ;;  %v3653_v47 = vsel %vm1724_vm4, %v3621_v24, %v6892_v41  ;;  %v8407_v24 = vld [vmem:[#allocation146_spill] sm:$0xff] }
 0x597   : > { %v3685_v11 = vsel %vm1757_vm6, %v3653_v47, %v7049_v46  ;;  %v2247_v46 = vld [vmem:[%s7833_s3 + $0x20] sm:$0xff] }
 0x598   : > { %4275 = vmatpush.msra.mxu3 %v2247_v46  ;;  %3932 = vmatpush.msra.mxu1 %v2247_v46 }
 0x59a   : > { %4276 = vmatpush.msra.mxu3 %v2246_v60  ;;  %3933 = vmatpush.msra.mxu1 %v2246_v60 }
 0x59b   : > { %3256 = vrot.lane.b32.xlu1 %v2467_v45, %s4355_s29  ;;  %3222 = vrot.lane.b32.xlu2 %v2450_v4, %s4355_s29  ;;  %v8405_v45 = vld [vmem:[#allocation114_spill] sm:$0xff] }
 0x59c   : > { %3350 = vrot.lane.b32.xlu0 %v2482_v43, %s4356_s30  ;;  %v3585_v4 = vsel %vm225_vm0, %v8405_v45, %v8404_v63  ;;  %v2531_v43 = vld [vmem:[#allocation3 + $0x12a] sm:$0xff] }
 0x59d   : > { %v7197_v23 = vpop.permute.xlu1 %3118  ;;  %v3133_v3 = vpop.permute.xlu2 %3132  ;;  %v3617_v47 = vsel %vm1691_vm3, %v3585_v4, %v6746_v12 }
 0x59e   : > { %v7200_v39 = vsel %vm1790_vm5, %v3685_v11, %v3133_v3  ;;  %v3117_v54 = vpop.permute.xlu0 %3116  ;;  %v2499_v3 = vld [vmem:[#allocation3 + $0x129] sm:$0xff]  ;;  %v3649_v34 = vsel %vm1724_vm4, %v3617_v47, %v6882_v57 }
 0x59f   : > { %v7207_v41 = vsel %vm1790_vm5, %v6998_v16, %v3117_v54  ;;  %v3592_v16 = vsel %vm225_vm0, %v8407_v24, %v8406_v8  ;;  %v2245_v54 = vld [vmem:[%s7833_s3 + $0x10] sm:$0xff]  ;;  %v3681_v12 = vsel %vm1757_vm6, %v3649_v34, %v6978_v61  ;;  %v2243_v61 = vld [vmem:[%s7833_s3] sm:$0xff] }
 0x5a0   : > { %v3624_v11 = vsel %vm1691_vm3, %v3592_v16, %v6748_v13  ;;  %4277 = vmatpush.msra.mxu3 %v2245_v54  ;;  %3934 = vmatpush.msra.mxu1 %v2245_v54  ;;  %v2451_v16 = vld [vmem:[#allocation3 + $0x68] sm:$0xff] }
 0x5a1   : > { %v3656_v46 = vsel %vm1724_vm4, %v3624_v11, %v6904_v49  ;;  %v2244_v49 = vld [vmem:[%s7833_s3 + $0x8] sm:$0xff]  ;;  %v2483_v11 = vld [vmem:[#allocation3 + $0x69] sm:$0xff] }
 0x5a2   : > { %v3688_v13 = vsel %vm1757_vm6, %v3656_v46, %v7068_v37  ;;  %4278 = vmatpush.msra.mxu3 %v2244_v49  ;;  %3935 = vmatpush.msra.mxu1 %v2244_v49  ;;  %v8408_v37 = vld [vmem:[#allocation60_spill] sm:$0xff]  ;;  %v8412_v49 = vld [vmem:[#allocation33_spill] sm:$0xff] }
 0x5a3   : > { %3512 = vrot.lane.b32.xlu1 %v2531_v43, %s4357_s6  ;;  %3478 = vrot.lane.b32.xlu2 %v2514_v53, %s4357_s6  ;;  %v3588_v60 = vsel %vm225_vm0, %v8381_v51, %v8408_v37  ;;  %v8409_v43 = vld [vmem:[#allocation133_spill] sm:$0xff] }
 0x5a4   : > { %3384 = vrot.lane.b32.xlu0 %v2499_v3, %s4356_s30  ;;  %4279 = vmatpush.msra.mxu3 %v2243_v61  ;;  %v3587_v53 = vsel %vm225_vm0, %v8375_v36, %v8409_v43  ;;  %v3620_v47 = vsel %vm1691_vm3, %v3588_v60, %v6756_v28 }
 0x5a5   : > { %v3125_v63 = vpop.permute.xlu1 %3124  ;;  %v3139_v45 = vpop.permute.xlu2 %3138  ;;  %v3619_v3 = vsel %vm1691_vm3, %v3587_v53, %v6760_v29  ;;  %v3652_v51 = vsel %vm1724_vm4, %v3620_v47, %v6896_v32  ;;  %3936 = vmatpush.msra.mxu1 %v2243_v61  ;;  %v2500_v61 = vld [vmem:[#allocation3 + $0x139] sm:$0xff] }
 0x5a6   : > { %v7240_v4 = vsel %vm1790_vm5, %v3681_v12, %v3125_v63  ;;  %v7243_v57 = vsel %vm1790_vm5, %v3688_v13, %v3139_v45  ;;  %v7245_v8 = vpop.permute.xlu0 %3122  ;;  %v3651_v36 = vsel %vm1724_vm4, %v3619_v3, %v6854_v7  ;;  %v3684_v28 = vsel %vm1757_vm6, %v3652_v51, %v6995_v20  ;;  %v8410_v12 = vld [vmem:[#allocation25_spill] sm:$0xff]  ;;  %v8411_v13 = vld [vmem:[#allocation95_spill] sm:$0xff]  ;;  %v8414_v3 = vld [vmem:[#allocation136_spill] sm:$0xff] }
 0x5a7   : > { %v3683_v34 = vsel %vm1757_vm6, %v3651_v36, %v7035_v5  ;;  %v3591_v63 = vsel %vm225_vm0, %v8411_v13, %v8410_v12  ;;  %v2532_v7 = vld [vmem:[#allocation3 + $0x13a] sm:$0xff]  ;;  %v2515_v45 = vld [vmem:[#allocation3 + $0x6a] sm:$0xff]  ;;  %v3590_v20 = vsel %vm225_vm0, %v8395_v26, %v8412_v49 }
 0x5a8   : > { %v3623_v5 = vsel %vm1691_vm3, %v3591_v63, %v6768_v35  ;;  %v3622_v37 = vsel %vm1691_vm3, %v3590_v20, %v6772_v56  ;;  %v2452_v36 = vld [vmem:[#allocation3 + $0x78] sm:$0xff]  ;;  %v8415_v63 = vld [vmem:[#allocation27_spill] sm:$0xff] }
 0x5a9   : > { %v3655_v60 = vsel %vm1724_vm4, %v3623_v5, %v6908_v58  ;;  %v8413_v58 = vld [vmem:[#allocation164_spill] sm:$0xff]  ;;  %v2533_v20 = vld [vmem:[#allocation3 + $0x142] sm:$0xff]  ;;  %v2516_v5 = vld [vmem:[#allocation3 + $0x7a] sm:$0xff] }
 0x5aa   : > { %v3687_v26 = vsel %vm1757_vm6, %v3655_v60, %v7020_v17  ;;  %v3594_v51 = vsel %vm225_vm0, %v8414_v3, %v8413_v58  ;;  %v8418_v58 = vld [vmem:[#allocation9_spill] sm:$0xff] }
 0x5ab   : > { %3258 = vrot.lane.b32.xlu1 %v8407_v24, %s4355_s29  ;;  %3224 = vrot.lane.b32.xlu2 %v2451_v16, %s4355_s29  ;;  %v3654_v16 = vsel %vm1724_vm4, %v3622_v37, %v6866_v52  ;;  %v2469_v52 = vld [vmem:[#allocation3 + $0x140] sm:$0xff]  ;;  %v3626_v17 = vsel %vm1691_vm3, %v3594_v51, %v6780_v2 }
 0x5ac   : > { %3352 = vrot.lane.b32.xlu0 %v2483_v11, %s4356_s30  ;;  %v3686_v53 = vsel %vm1757_vm6, %v3654_v16, %v7045_v21  ;;  %v2484_v21 = vld [vmem:[#allocation3 + $0x79] sm:$0xff] }
 0x5ad   : > { %v3131_v54 = vpop.permute.xlu1 %3130  ;;  %v3247_v24 = vpop.permute.xlu2 %3246 }
 0x5ae   : > { %v7276_v46 = vsel %vm1790_vm5, %v3684_v28, %v3131_v54  ;;  %v3129_v29 = vpop.permute.xlu0 %3128  ;;  %v3658_v28 = vsel %vm1724_vm4, %v3626_v17, %v6920_v6  ;;  %v8417_v6 = vld [vmem:[#allocation19_spill] sm:$0xff] }
 0x5af   : > { %v7279_v32 = vsel %vm1790_vm5, %v3683_v34, %v3129_v29  ;;  %v3690_v54 = vsel %vm1757_vm6, %v3658_v28, %v7037_v55 }
 0x5b3   : > { %3514 = vrot.lane.b32.xlu1 %v2532_v7, %s4357_s6  ;;  %3480 = vrot.lane.b32.xlu2 %v2515_v45, %s4357_s6  ;;  %v8416_v7 = vld [vmem:[#allocation18_spill] sm:$0xff] }
 0x5b4   : > { %3386 = vrot.lane.b32.xlu0 %v2500_v61, %s4356_s30  ;;  %v3582_v45 = vsel %vm225_vm0, %v8416_v7, %v8415_v63  ;;  %v2501_v61 = vld [vmem:[#allocation3 + $0x141] sm:$0xff]  ;;  %v2534_v7 = vld [vmem:[#allocation3 + $0x152] sm:$0xff] }
 0x5b5   : > { %v3137_v35 = vpop.permute.xlu1 %3136  ;;  %v3215_v43 = vpop.permute.xlu2 %3214  ;;  %v3614_v49 = vsel %vm1691_vm3, %v3582_v45, %v8417_v6  ;;  %v2517_v45 = vld [vmem:[#allocation3 + $0x82] sm:$0xff] }
 0x5b6   : > { %v7303_v47 = vsel %vm1790_vm5, %v3687_v26, %v3137_v35  ;;  %v3135_v56 = vpop.permute.xlu0 %3134  ;;  %v3646_v55 = vsel %vm1724_vm4, %v3614_v49, %v6868_v25  ;;  %v2253_v26 = vld [vmem:[#allocation3] sm:$0xff]  ;;  %v2254_v49 = vld [vmem:[#allocation3 + $0x8] sm:$0xff] }
 0x5b7   : > { %v7306_v11 = vsel %vm1790_vm5, %v3686_v53, %v3135_v56  ;;  %v3566_v3 = vsel %vm225_vm0, %v2253_v26, %v8418_v58  ;;  %v2471_v26 = vld [vmem:[#allocation3 + $0x158] sm:$0xff] }
 0x5bb   : > { %3260 = vrot.lane.b32.xlu1 %v2469_v52, %s4355_s29  ;;  %3226 = vrot.lane.b32.xlu2 %v2452_v36, %s4355_s29  ;;  %v2470_v52 = vld [vmem:[#allocation3 + $0x150] sm:$0xff] }
 0x5bc   : > { %3354 = vrot.lane.b32.xlu0 %v2484_v21, %s4356_s30 }
 0x5bd   : > { %v3143_v34 = vpop.permute.xlu1 %3142  ;;  %v3471_v29 = vpop.permute.xlu2 %3470 }
 0x5be   : > { %v7321_v12 = vsel %vm1790_vm5, %v3690_v54, %v3143_v34  ;;  %v3141_v13 = vpop.permute.xlu0 %3140 }
 0x5bf   : > { %v7325_v2 = vsel %vm1790_vm5, %v7066_v40, %v3141_v13  ;;  %v3678_v40 = vsel %vm1757_vm6, %v3646_v55, %v6966_v48  ;;  %v8419_v48 = vld [vmem:[#allocation17_spill] sm:$0xff] }
 0x5c0   : > { %v3710_v37 = vsel %vm1790_vm5, %v3678_v40, %v7197_v23  ;;  %v3598_v51 = vsel %vm1691_vm3, %v3566_v3, %v8419_v48  ;;  %v2453_v23 = vld [vmem:[#allocation3 + $0x80] sm:$0xff] }
 0x5c1   : > { %v3742_v35 = vsel %vm1823_vm7, %v3710_v37, %v3247_v24  ;;  %v3630_v36 = vsel %vm1724_vm4, %v3598_v51, %v6770_v42  ;;  %v2485_v24 = vld [vmem:[#allocation3 + $0x81] sm:$0xff] }
 0x5c2   : > { %v3662_v17 = vsel %vm1757_vm6, %v3630_v36, %v6928_v19  ;;  %v2502_v19 = vld [vmem:[#allocation3 + $0x151] sm:$0xff]  ;;  %v8421_v37 = vld [vmem:[#allocation135_spill] sm:$0xff] }
 0x5c3   : > { %3516 = vrot.lane.b32.xlu1 %v2533_v20, %s4357_s6  ;;  %3482 = vrot.lane.b32.xlu2 %v2516_v5, %s4357_s6  ;;  %v3694_v21 = vsel %vm1790_vm5, %v3662_v17, %v7104_v30  ;;  %v3711_v30 = vsel %vm1790_vm5, %v7028_v10, %v7142_v18  ;;  %v2454_v10 = vld [vmem:[#allocation3 + $0x90] sm:$0xff] }
 0x5c4   : > { %3388 = vrot.lane.b32.xlu0 %v2501_v61, %s4356_s30  ;;  %v3726_v34 = vsel %vm1823_vm7, %v3694_v21, %v3215_v43  ;;  %v8420_v61 = vld [vmem:[#allocation10_spill] sm:$0xff] }
 0x5c5   : > { %v3503_v60 = vpop.permute.xlu1 %3502  ;;  %v3217_v16 = vpop.permute.xlu2 %3216  ;;  %v3567_v40 = vsel %vm225_vm0, %v2254_v49, %v8420_v61  ;;  %v2519_v61 = vld [vmem:[#allocation3 + $0x9a] sm:$0xff] }
 0x5c6   : > { %v3375_v53 = vpop.permute.xlu0 %3374 }
 0x5c7   : > { %v3774_v25 = vsel %vm1856_vm9, %v3742_v35, %v3375_v53  ;;  %v2486_v35 = vld [vmem:[#allocation3 + $0x91] sm:$0xff] }
 0x5c8   : > { %v3806_v56 = vsel %vm1889_vm8, %v3774_v25, %v3503_v60  ;;  %v3599_v60 = vsel %vm1691_vm3, %v3567_v40, %v8421_v37 }
 0x5c9   : > { %4242 = vmatmul.msk.f32.vlgmr.msra.gmra.mxu3 %vm1925_vm10, %v3806_v56  ;;  %v3631_v18 = vsel %vm1724_vm4, %v3599_v60, %v6808_v15 }
 0x5ca   : > { %v3663_v53 = vsel %vm1757_vm6, %v3631_v18, %v6906_v31  ;;  %v2503_v31 = vld [vmem:[#allocation3 + $0x159] sm:$0xff]  ;;  %v8424_v18 = vld [vmem:[#allocation12_spill] sm:$0xff] }
 0x5cb   : > { %3262 = vrot.lane.b32.xlu1 %v2470_v52, %s4355_s29  ;;  %3228 = vrot.lane.b32.xlu2 %v2453_v23, %s4355_s29  ;;  %v3695_v25 = vsel %vm1790_vm5, %v3663_v53, %v7100_v22  ;;  %v2535_v52 = vld [vmem:[#allocation3 + $0x15a] sm:$0xff]  ;;  %v2518_v23 = vld [vmem:[#allocation3 + $0x92] sm:$0xff]  ;;  %v3712_v22 = vsel %vm1790_vm5, %v7025_v9, %v7245_v8 }
 0x5cc   : > { %3356 = vrot.lane.b32.xlu0 %v2485_v24, %s4356_s30  ;;  %v3727_v3 = vsel %vm1823_vm7, %v3695_v25, %v3217_v16  ;;  %v2455_v9 = vld [vmem:[#allocation3 + $0x98] sm:$0xff]  ;;  %v8425_v53 = vld [vmem:[#allocation102_spill] sm:$0xff] }
 0x5cd   : > { %v3249_v28 = vpop.permute.xlu1 %3248  ;;  %v3473_v54 = vpop.permute.xlu2 %3472 }
 0x5ce   : > { %v3343_v13 = vpop.permute.xlu0 %3342 }
 0x5cf   : > { %v3758_v42 = vsel %vm1856_vm9, %v3726_v34, %v3343_v13  ;;  %v8422_v34 = vld [vmem:[#allocation4_spill] sm:$0xff] }
 0x5d0   : > { %v3790_v63 = vsel %vm1889_vm8, %v3758_v42, %v3471_v29  ;;  %v3743_v29 = vsel %vm1823_vm7, %v3711_v30, %v3249_v28  ;;  %v8423_v42 = vld [vmem:[#allocation94_spill] sm:$0xff] }
 0x5d1   : > { %4226 = vmatmul.msk.f32.vlgmr.msra.gmra.mxu1 %vm1925_vm10, %v3790_v63 }
 0x5d3   : > { %3518 = vrot.lane.b32.xlu1 %v2534_v7, %s4357_s6  ;;  %3484 = vrot.lane.b32.xlu2 %v2517_v45, %s4357_s6  ;;  %v2472_v7 = vld [vmem:[#allocation3 + $0x168] sm:$0xff]  ;;  %v2487_v45 = vld [vmem:[#allocation3 + $0x99] sm:$0xff] }
 0x5d4   : > { %3390 = vrot.lane.b32.xlu0 %v2502_v19, %s4356_s30 }
 0x5d5   : > { %v3505_v43 = vpop.permute.xlu1 %3504  ;;  %v3219_v6 = vpop.permute.xlu2 %3218 }
 0x5d6   : > { %v3377_v20 = vpop.permute.xlu0 %3376 }
 0x5d7   : > { %v3775_v5 = vsel %vm1856_vm9, %v3743_v29, %v3377_v20 }
 0x5d8   : > { %v3807_v55 = vsel %vm1889_vm8, %v3775_v5, %v3505_v43 }
 0x5d9   : > { %4243 = vmatmul.msk.f32.gmra.mxu3 %vm1925_vm10, %v3807_v55  ;;  %v2536_v55 = vld [vmem:[#allocation3 + $0x16a] sm:$0xff] }
 0x5db   : > { %3264 = vrot.lane.b32.xlu1 %v2471_v26, %s4355_s29  ;;  %3230 = vrot.lane.b32.xlu2 %v2454_v10, %s4355_s29  ;;  %v4330_v10 = vld [vmem:[#allocation3 + $0x20] sm:$0xff] }
 0x5dc   : > { %3358 = vrot.lane.b32.xlu0 %v2486_v35, %s4356_s30  ;;  %v3569_v35 = vsel %vm225_vm0, %v4330_v10, %v8424_v18  ;;  %v8432_v10 = vld [vmem:[#allocation70_spill] sm:$0xff] }
 0x5dd   : > { %v3251_v56 = vpop.permute.xlu1 %3250  ;;  %v3475_v58 = vpop.permute.xlu2 %3474  ;;  %v3601_v25 = vsel %vm1691_vm3, %v3569_v35, %v8425_v53 }
 0x5de   : > { %v3345_v48 = vpop.permute.xlu0 %3344  ;;  %v3744_v24 = vsel %vm1823_vm7, %v3712_v22, %v3251_v56  ;;  %v2473_v56 = vld [vmem:[#allocation3 + $0x170] sm:$0xff] }
 0x5df   : > { %v3759_v15 = vsel %vm1856_vm9, %v3727_v3, %v3345_v48  ;;  %v8426_v3 = vld [vmem:[#allocation96_spill] sm:$0xff] }
 0x5e0   : > { %v3791_v51 = vsel %vm1889_vm8, %v3759_v15, %v3473_v54  ;;  %v4329_v54 = vld [vmem:[#allocation3 + $0x18] sm:$0xff]  ;;  %v3633_v48 = vsel %vm1724_vm4, %v3601_v25, %v8426_v3  ;;  %v8427_v15 = vld [vmem:[#allocation24_spill] sm:$0xff] }
 0x5e1   : > { %4227 = vmatmul.msk.f32.gmra.mxu1 %vm1925_vm10, %v3791_v51  ;;  %v3568_v13 = vsel %vm225_vm0, %v4329_v54, %v8422_v34  ;;  %v3665_v51 = vsel %vm1757_vm6, %v3633_v48, %v8427_v15  ;;  %v2505_v54 = vld [vmem:[#allocation3 + $0x171] sm:$0xff]  ;;  %v2490_v15 = vld [vmem:[#allocation3 + $0xc1] sm:$0xff] }
 0x5e2   : > { %v3600_v63 = vsel %vm1691_vm3, %v3568_v13, %v8423_v42  ;;  %v8434_v48 = vld [vmem:[#allocation49_spill] sm:$0xff] }
 0x5e3   : > { %3520 = vrot.lane.b32.xlu1 %v2535_v52, %s4357_s6  ;;  %3486 = vrot.lane.b32.xlu2 %v2518_v23, %s4357_s6  ;;  %v3632_v8 = vsel %vm1724_vm4, %v3600_v63, %v6804_v44  ;;  %v3697_v52 = vsel %vm1790_vm5, %v3665_v51, %v7114_v38  ;;  %v2458_v51 = vld [vmem:[#allocation3 + $0xc0] sm:$0xff] }
 0x5e4   : > { %3392 = vrot.lane.b32.xlu0 %v2503_v31, %s4356_s30  ;;  %v3664_v19 = vsel %vm1757_vm6, %v3632_v8, %v6944_v33  ;;  %v2504_v33 = vld [vmem:[#allocation3 + $0x169] sm:$0xff] }
 0x5e5   : > { %v3507_v16 = vpop.permute.xlu1 %3506  ;;  %v3221_v36 = vpop.permute.xlu2 %3220  ;;  %v3696_v30 = vsel %vm1790_vm5, %v3664_v19, %v7063_v50 }
 0x5e6   : > { %v3379_v17 = vpop.permute.xlu0 %3378  ;;  %v3728_v29 = vsel %vm1823_vm7, %v3696_v30, %v3219_v6  ;;  %v3729_v22 = vsel %vm1823_vm7, %v3697_v52, %v3221_v36  ;;  %v2474_v30 = vld [vmem:[#allocation3 + $0x180] sm:$0xff]  ;;  %v8435_v52 = vld [vmem:[#allocation57_spill] sm:$0xff] }
 0x5e7   : > { %v3776_v21 = vsel %vm1856_vm9, %v3744_v24, %v3379_v17 }
 0x5e8   : > { %v3808_v28 = vsel %vm1889_vm8, %v3776_v21, %v3507_v16  ;;  %v2537_v21 = vld [vmem:[#allocation3 + $0x172] sm:$0xff] }
 0x5e9   : > { %4244 = vmatmul.msk.f32.gmra.mxu3 %vm1925_vm10, %v3808_v28  ;;  %v2520_v28 = vld [vmem:[#allocation3 + $0xaa] sm:$0xff] }
 0x5eb   : > { %3266 = vrot.lane.b32.xlu1 %v2472_v7, %s4355_s29  ;;  %3232 = vrot.lane.b32.xlu2 %v2455_v9, %s4355_s29  ;;  %v4331_v7 = vld [vmem:[#allocation3 + $0x30] sm:$0xff] }
 0x5ec   : > { %3360 = vrot.lane.b32.xlu0 %v2487_v45, %s4356_s30  ;;  %v8428_v9 = vld [vmem:[#allocation52_spill] sm:$0xff]  ;;  %v8429_v45 = vld [vmem:[#allocation83_spill] sm:$0xff] }
 0x5ed   : > { %v3253_v43 = vpop.permute.xlu1 %3252  ;;  %v3477_v49 = vpop.permute.xlu2 %3476  ;;  %v3570_v8 = vsel %vm225_vm0, %v4331_v7, %v8428_v9 }
 0x5ee   : > { %v3347_v20 = vpop.permute.xlu0 %3346  ;;  %v3745_v6 = vsel %vm1823_vm7, %v7240_v4, %v3253_v43  ;;  %v2488_v4 = vld [vmem:[#allocation3 + $0xa9] sm:$0xff]  ;;  %v3602_v19 = vsel %vm1691_vm3, %v3570_v8, %v8429_v45 }
 0x5ef   : > { %v3760_v44 = vsel %vm1856_vm9, %v3728_v29, %v3347_v20  ;;  %v2457_v43 = vld [vmem:[#allocation3 + $0xb0] sm:$0xff]  ;;  %v4333_v8 = vld [vmem:[#allocation3 + $0x48] sm:$0xff] }
 0x5f0   : > { %v3792_v5 = vsel %vm1889_vm8, %v3760_v44, %v3475_v58  ;;  %v2456_v58 = vld [vmem:[#allocation3 + $0xa8] sm:$0xff]  ;;  %v8431_v20 = vld [vmem:[#allocation92_spill] sm:$0xff] }
 0x5f1   : > { %4228 = vmatmul.msk.f32.gmra.mxu1 %vm1925_vm10, %v3792_v5  ;;  %v8438_v45 = vld [vmem:[#allocation56_spill] sm:$0xff] }
 0x5f3   : > { %3522 = vrot.lane.b32.xlu1 %v2536_v55, %s4357_s6  ;;  %3488 = vrot.lane.b32.xlu2 %v2519_v61, %s4357_s6 }
 0x5f4   : > { %3394 = vrot.lane.b32.xlu0 %v2504_v33, %s4356_s30 }
 0x5f5   : > { %v3509_v50 = vpop.permute.xlu1 %3508  ;;  %v3223_v40 = vpop.permute.xlu2 %3222 }
 0x5f6   : > { %v3381_v37 = vpop.permute.xlu0 %3380 }
 0x5f7   : > { %v3777_v60 = vsel %vm1856_vm9, %v3745_v6, %v3381_v37 }
 0x5f8   : > { %v3809_v26 = vsel %vm1889_vm8, %v3777_v60, %v3509_v50  ;;  %v2538_v60 = vld [vmem:[#allocation3 + $0x182] sm:$0xff] }
 0x5f9   : > { %4245 = vmatmul.msk.f32.gmra.mxu3 %vm1925_vm10, %v3809_v26  ;;  %v2521_v26 = vld [vmem:[#allocation3 + $0xb2] sm:$0xff] }
 0x5fb   : > { %3268 = vrot.lane.b32.xlu1 %v2473_v56, %s4355_s29  ;;  %3234 = vrot.lane.b32.xlu2 %v2456_v58, %s4355_s29  ;;  %v4332_v56 = vld [vmem:[#allocation3 + $0x38] sm:$0xff]  ;;  %v8433_v58 = vld [vmem:[#allocation59_spill] sm:$0xff] }
 0x5fc   : > { %3362 = vrot.lane.b32.xlu0 %v2488_v4, %s4356_s30  ;;  %v3571_v3 = vsel %vm225_vm0, %v4332_v56, %v8433_v58  ;;  %v2508_v58 = vld [vmem:[#allocation3 + $0x199] sm:$0xff] }
 0x5fd   : > { %v3255_v23 = vpop.permute.xlu1 %3254  ;;  %v3479_v31 = vpop.permute.xlu2 %3478  ;;  %v3603_v4 = vsel %vm1691_vm3, %v3571_v3, %v8434_v48  ;;  %v4334_v3 = vld [vmem:[#allocation3 + $0x50] sm:$0xff]  ;;  %v8443_v48 = vld [vmem:[#allocation55_spill] sm:$0xff] }
 0x5fe   : > { %v3349_v16 = vpop.permute.xlu0 %3348  ;;  %v3746_v36 = vsel %vm1823_vm7, %v7172_v14, %v3255_v23  ;;  %v2489_v14 = vld [vmem:[#allocation3 + $0xb1] sm:$0xff]  ;;  %v3635_v23 = vsel %vm1724_vm4, %v3603_v4, %v8435_v52  ;;  %v3573_v4 = vsel %vm225_vm0, %v4334_v3, %v8443_v48  ;;  %v2525_v3 = vld [vmem:[#allocation3 + $0xe2] sm:$0xff] }
 0x5ff   : > { %v3761_v24 = vsel %vm1856_vm9, %v3729_v22, %v3349_v16  ;;  %v2461_v48 = vld [vmem:[#allocation3 + $0xe0] sm:$0xff] }
 0x600   : > { %v3793_v17 = vsel %vm1889_vm8, %v3761_v24, %v3477_v49  ;;  %v8430_v49 = vld [vmem:[#allocation137_spill] sm:$0xff] }
 0x601   : > { %4229 = vmatmul.msk.f32.gmra.mxu1 %vm1925_vm10, %v3793_v17  ;;  %v3634_v29 = vsel %vm1724_vm4, %v3602_v19, %v8430_v49  ;;  %v3572_v19 = vsel %vm225_vm0, %v4333_v8, %v8438_v45  ;;  %v2539_v49 = vld [vmem:[#allocation3 + $0x18a] sm:$0xff]  ;;  %v2541_v45 = vld [vmem:[#allocation3 + $0x1a2] sm:$0xff] }
 0x602   : > { %v3666_v44 = vsel %vm1757_vm6, %v3634_v29, %v8431_v20  ;;  %v8440_v29 = vld [vmem:[#allocation116_spill] sm:$0xff]  ;;  %v8441_v20 = vld [vmem:[#allocation125_spill] sm:$0xff] }
 0x603   : > { %3524 = vrot.lane.b32.xlu1 %v2537_v21, %s4357_s6  ;;  %3490 = vrot.lane.b32.xlu2 %v2520_v28, %s4357_s6  ;;  %v3698_v5 = vsel %vm1790_vm5, %v3666_v44, %v7110_v1 }
 0x604   : > { %3396 = vrot.lane.b32.xlu0 %v2505_v54, %s4356_s30  ;;  %v3730_v33 = vsel %vm1823_vm7, %v3698_v5, %v3223_v40  ;;  %v8442_v5 = vld [vmem:[#allocation73_spill] sm:$0xff] }
 0x605   : > { %v3511_v38 = vpop.permute.xlu1 %3510  ;;  %v3225_v34 = vpop.permute.xlu2 %3224 }
 0x606   : > { %v3383_v13 = vpop.permute.xlu0 %3382 }
 0x607   : > { %v3778_v42 = vsel %vm1856_vm9, %v3746_v36, %v3383_v13  ;;  %v2475_v36 = vld [vmem:[#allocation3 + $0x188] sm:$0xff]  ;;  %v8437_v13 = vld [vmem:[#allocation85_spill] sm:$0xff] }
 0x608   : > { %v3810_v63 = vsel %vm1889_vm8, %v3778_v42, %v3511_v38 }
 0x609   : > { %4246 = vmatmul.msk.f32.gmra.mxu3 %vm1925_vm10, %v3810_v63 }
 0x60b   : > { %3270 = vrot.lane.b32.xlu1 %v2474_v30, %s4355_s29  ;;  %3236 = vrot.lane.b32.xlu2 %v2457_v43, %s4355_s29  ;;  %v8439_v30 = vld [vmem:[#allocation144_spill] sm:$0xff] }
 0x60c   : > { %3364 = vrot.lane.b32.xlu0 %v2489_v14, %s4356_s30  ;;  %v3604_v43 = vsel %vm1691_vm3, %v3572_v19, %v8439_v30  ;;  %v4335_v19 = vld [vmem:[#allocation3 + $0x60] sm:$0xff]  ;;  %v8448_v30 = vld [vmem:[#allocation45_spill] sm:$0xff] }
 0x60d   : > { %v3257_v55 = vpop.permute.xlu1 %3256  ;;  %v3481_v61 = vpop.permute.xlu2 %3480  ;;  %v3636_v14 = vsel %vm1724_vm4, %v3604_v43, %v8440_v29  ;;  %v3574_v43 = vsel %vm225_vm0, %v4335_v19, %v8448_v30  ;;  %v7556_v29 = vld [vmem:[%s7834_s4] ss:$0 sm:$0xff] }
 0x60e   : > { %v3351_v50 = vpop.permute.xlu0 %3350  ;;  %v3747_v40 = vsel %vm1823_vm7, %v7279_v32, %v3257_v55  ;;  %v8436_v32 = vld [vmem:[#allocation132_spill] sm:$0xff]  ;;  %v3668_v44 = vsel %vm1757_vm6, %v3636_v14, %v8441_v20  ;;  %v8450_v20 = vld [vmem:[#allocation138_spill] sm:$0xff] }
 0x60f   : > { %v3762_v6 = vsel %vm1856_vm9, %v3730_v33, %v3351_v50  ;;  %v3700_v55 = vsel %vm1790_vm5, %v3668_v44, %v8442_v5  ;;  %v8451_v5 = vld [vmem:[#allocation160_spill] sm:$0xff] }
 0x610   : > { %v3794_v37 = vsel %vm1889_vm8, %v3762_v6, %v3479_v31  ;;  %v3667_v31 = vsel %vm1757_vm6, %v3635_v23, %v8436_v32  ;;  %v2460_v23 = vld [vmem:[#allocation3 + $0xd8] sm:$0xff]  ;;  %v8445_v32 = vld [vmem:[#allocation159_spill] sm:$0xff] }
 0x611   : > { %4230 = vmatmul.msk.f32.gmra.mxu1 %vm1925_vm10, %v3794_v37  ;;  %v3699_v22 = vsel %vm1790_vm5, %v3667_v31, %v7086_v27  ;;  %v8446_v31 = vld [vmem:[#allocation105_spill] sm:$0xff] }
 0x612   : > { %v3731_v17 = vsel %vm1823_vm7, %v3699_v22, %v3225_v34 }
 0x613   : > { %3526 = vrot.lane.b32.xlu1 %v2538_v60, %s4357_s6  ;;  %3492 = vrot.lane.b32.xlu2 %v2521_v26, %s4357_s6  ;;  %v2476_v26 = vld [vmem:[#allocation3 + $0x198] sm:$0xff] }
 0x614   : > { %3398 = vrot.lane.b32.xlu0 %v8432_v10, %s4356_s30  ;;  %v2523_v10 = vld [vmem:[#allocation3 + $0xca] sm:$0xff] }
 0x615   : > { %v3513_v1 = vpop.permute.xlu1 %3512  ;;  %v3227_v18 = vpop.permute.xlu2 %3226 }
 0x616   : > { %v3385_v35 = vpop.permute.xlu0 %3384  ;;  %v3732_v50 = vsel %vm1823_vm7, %v3700_v55, %v3227_v18 }
 0x617   : > { %v3779_v53 = vsel %vm1856_vm9, %v3747_v40, %v3385_v35 }
 0x618   : > { %v3811_v25 = vsel %vm1889_vm8, %v3779_v53, %v3513_v1  ;;  %v2491_v1 = vld [vmem:[#allocation3 + $0xc9] sm:$0xff] }
 0x619   : > { %4247 = vmatmul.msk.f32.gmra.mxu3 %vm1925_vm10, %v3811_v25 }
 0x61b   : > { %3366 = vrot.lane.b32.xlu1 %v2490_v15, %s4356_s30  ;;  %3238 = vrot.lane.b32.xlu2 %v2458_v51, %s4355_s29  ;;  %v2540_v15 = vld [vmem:[#allocation3 + $0x19a] sm:$0xff]  ;;  %v8444_v51 = vld [vmem:[#allocation123_spill] sm:$0xff] }
 0x61c   : > { %3144 = vrot.lane.b32.xlu0 %v2537_v21, %s4354_s28  ;;  %v2522_v21 = vld [vmem:[#allocation3 + $0xc2] sm:$0xff]  ;;  %v3605_v52 = vsel %vm1691_vm3, %v3573_v4, %v8444_v51 }
 0x61d   : > { %v3259_v16 = vpop.permute.xlu1 %3258  ;;  %v3483_v24 = vpop.permute.xlu2 %3482  ;;  %v2493_v4 = vld [vmem:[#allocation3 + $0xe1] sm:$0xff] }
 0x61e   : > { %v3353_v28 = vpop.permute.xlu0 %3352  ;;  %v3748_v34 = vsel %vm1823_vm7, %v7276_v46, %v3259_v16  ;;  %v2459_v46 = vld [vmem:[#allocation3 + $0xc8] sm:$0xff]  ;;  %v8447_v16 = vld [vmem:[#allocation112_spill] sm:$0xff] }
 0x61f   : > { %v3763_v54 = vsel %vm1856_vm9, %v3731_v17, %v3353_v28 }
 0x620   : > { %v3795_v38 = vsel %vm1889_vm8, %v3763_v54, %v3481_v61 }
 0x621   : > { %4231 = vmatmul.msk.f32.gmra.mxu1 %vm1925_vm10, %v3795_v38 }
 0x623   : > { %3400 = vrot.lane.b32.xlu1 %v8437_v13, %s4356_s30  ;;  %3272 = vrot.lane.b32.xlu2 %v2475_v36, %s4355_s29 }
 0x624   : > { %3494 = vrot.lane.b32.xlu0 %v2522_v21, %s4357_s6  ;;  %v2477_v21 = vld [vmem:[#allocation3 + $0x1a0] sm:$0xff] }
 0x625   : > { %v3515_v27 = vpop.permute.xlu1 %3514  ;;  %v3229_v42 = vpop.permute.xlu2 %3228 }
 0x626   : > { %v3387_v63 = vpop.permute.xlu0 %3386 }
 0x627   : > { %v3780_v7 = vsel %vm1856_vm9, %v3748_v34, %v3387_v63 }
 0x628   : > { %v3812_v9 = vsel %vm1889_vm8, %v3780_v7, %v3515_v27  ;;  %v2492_v27 = vld [vmem:[#allocation3 + $0xd9] sm:$0xff] }
 0x629   : > { %4248 = vmatmul.msk.f32.gmra.mxu3 %vm1925_vm10, %v3812_v9 }
 0x62b   : > { %3146 = vrot.lane.b32.xlu1 %v2538_v60, %s4354_s28  ;;  %3528 = vrot.lane.b32.xlu2 %v2539_v49, %s4357_s6 }
 0x62c   : > { %3240 = vrot.lane.b32.xlu0 %v2459_v46, %s4355_s29  ;;  %v2524_v46 = vld [vmem:[#allocation3 + $0xda] sm:$0xff] }
 0x62d   : > { %v3261_v61 = vpop.permute.xlu1 %3260  ;;  %v3485_v33 = vpop.permute.xlu2 %3484 }
 0x62e   : > { %v3355_v6 = vpop.permute.xlu0 %3354  ;;  %v3749_v18 = vsel %vm1823_vm7, %v7200_v39, %v3261_v61  ;;  %v3637_v39 = vsel %vm1724_vm4, %v3605_v52, %v8445_v32 }
 0x62f   : > { %v3764_v37 = vsel %vm1856_vm9, %v3732_v50, %v3355_v6  ;;  %v3669_v22 = vsel %vm1757_vm6, %v3637_v39, %v8446_v31  ;;  %v8452_v50 = vld [vmem:[#allocation98_spill] sm:$0xff]  ;;  %v4336_v31 = vld [vmem:[#allocation3 + $0x68] sm:$0xff] }
 0x630   : > { %v3796_v60 = vsel %vm1889_vm8, %v3764_v37, %v3483_v24  ;;  %v3701_v24 = vsel %vm1790_vm5, %v3669_v22, %v8447_v16  ;;  %v8453_v22 = vld [vmem:[#allocation13_spill] sm:$0xff] }
 0x631   : > { %4232 = vmatmul.msk.f32.gmra.mxu1 %vm1925_vm10, %v3796_v60  ;;  %v3733_v54 = vsel %vm1823_vm7, %v3701_v24, %v3229_v42  ;;  %v3575_v16 = vsel %vm225_vm0, %v4336_v31, %v8453_v22  ;;  %v8454_v24 = vld [vmem:[#allocation69_spill] sm:$0xff] }
 0x633   : > { %3496 = vrot.lane.b32.xlu1 %v2523_v10, %s4357_s6  ;;  %3368 = vrot.lane.b32.xlu2 %v2491_v1, %s4356_s30 }
 0x634   : > { %3274 = vrot.lane.b32.xlu0 %v2476_v26, %s4355_s29 }
 0x635   : > { %v3517_v40 = vpop.permute.xlu1 %3516  ;;  %v3231_v35 = vpop.permute.xlu2 %3230 }
 0x636   : > { %v3389_v53 = vpop.permute.xlu0 %3388 }
 0x637   : > { %v3781_v25 = vsel %vm1856_vm9, %v3749_v18, %v3389_v53  ;;  %v4034_v18 = vld [vmem:[%s4414_s23] sm:$0xff] }
 0x638   : > { %v3813_v56 = vsel %vm1889_vm8, %v3781_v25, %v3517_v40 }
 0x639   : > { %4249 = vmatmul.msk.f32.gmra.mxu3 %vm1925_vm10, %v3813_v56 }
 0x63b   : > { %3242 = vrot.lane.b32.xlu1 %v2460_v23, %s4355_s29  ;;  %3402 = vrot.lane.b32.xlu2 %v2508_v58, %s4356_s30 }
 0x63c   : > { %3530 = vrot.lane.b32.xlu0 %v2540_v15, %s4357_s6 }
 0x63d   : > { %v3263_v17 = vpop.permute.xlu1 %3262  ;;  %v3487_v28 = vpop.permute.xlu2 %3486 }
 0x63e   : > { %v3357_v38 = vpop.permute.xlu0 %3356  ;;  %v3750_v42 = vsel %vm1823_vm7, %v7306_v11, %v3263_v17  ;;  %v8449_v11 = vld [vmem:[#allocation156_spill] sm:$0xff]  ;;  %v3607_v17 = vsel %vm1691_vm3, %v3575_v16, %v8454_v24  ;;  %v4338_v16 = vld [vmem:[#allocation3 + $0x80] sm:$0xff]  ;;  %v8462_v24 = vld [vmem:[#allocation15_spill] sm:$0xff] }
 0x63f   : > { %v3765_v36 = vsel %vm1856_vm9, %v3733_v54, %v3357_v38  ;;  %v3606_v14 = vsel %vm1691_vm3, %v3574_v43, %v8449_v11  ;;  %v8456_v38 = vld [vmem:[#allocation147_spill] sm:$0xff] }
 0x640   : > { %v3797_v13 = vsel %vm1889_vm8, %v3765_v36, %v3485_v33  ;;  %v3638_v44 = vsel %vm1724_vm4, %v3606_v14, %v8450_v20  ;;  %v4050_v33 = vld [vmem:[%s4414_s23 + $0x80] sm:$0xff] }
 0x641   : > { %4233 = vmatmul.msk.f32.gmra.mxu1 %vm1925_vm10, %v3797_v13  ;;  %v3670_v55 = vsel %vm1757_vm6, %v3638_v44, %v8451_v5  ;;  %v4051_v13 = vld [vmem:[%s4414_s23 + $0x88] sm:$0xff] }
 0x642   : > { %v3702_v6 = vsel %vm1790_vm5, %v3670_v55, %v8452_v50  ;;  %v4337_v5 = vld [vmem:[#allocation3 + $0x78] sm:$0xff]  ;;  %v8457_v55 = vld [vmem:[#allocation40_spill] sm:$0xff] }
 0x643   : > { %3276 = vrot.lane.b32.xlu1 %v2477_v21, %s4355_s29  ;;  %3148 = vrot.lane.b32.xlu2 %v2539_v49, %s4354_s28  ;;  %v2509_v49 = vld [vmem:[#allocation3 + $0x1a1] sm:$0xff]  ;;  %v3734_v10 = vsel %vm1823_vm7, %v3702_v6, %v3231_v35 }
 0x644   : > { %3370 = vrot.lane.b32.xlu0 %v2492_v27, %s4356_s30  ;;  %v8459_v6 = vld [vmem:[#allocation22_spill] sm:$0xff] }
 0x645   : > { %v3519_v34 = vpop.permute.xlu1 %3518  ;;  %v3233_v63 = vpop.permute.xlu2 %3232 }
 0x646   : > { %v3391_v7 = vpop.permute.xlu0 %3390 }
 0x647   : > { %v3782_v9 = vsel %vm1856_vm9, %v3750_v42, %v3391_v7 }
 0x648   : > { %v3814_v8 = vsel %vm1889_vm8, %v3782_v9, %v3519_v34 }
 0x649   : > { %4250 = vmatmul.msk.f32.gmra.mxu3 %vm1925_vm10, %v3814_v8 }
 0x64b   : > { %3532 = vrot.lane.b32.xlu1 %v2541_v45, %s4357_s6  ;;  %3498 = vrot.lane.b32.xlu2 %v2524_v46, %s4357_s6  ;;  %v4035_v45 = vld [vmem:[%s4414_s23 + $0x8] sm:$0xff] }
 0x64c   : > { %3404 = vrot.lane.b32.xlu0 %v2509_v49, %s4356_s30  ;;  %v3986_v61 = vpop.f32.mrf.mxu3 }
 0x64d   : > { %v3265_v37 = vpop.permute.xlu1 %3264  ;;  %v3987_v60 = vadd.f32 %v7556_v29, %v3986_v61  ;;  %v3489_v26 = vpop.permute.xlu2 %3488  ;;  %v3576_v61 = vsel %vm225_vm0, %v4337_v5, %v8457_v55 }
 0x64e   : > { %v3359_v1 = vpop.permute.xlu0 %3358  ;;  %v3938_v40 = vpop.f32.mrf.mxu1  ;;  %v3751_v52 = vsel %vm1823_vm7, %v7303_v47, %v3265_v37  ;;  %v8460_v37 = vld [vmem:[#allocation71_spill] sm:$0xff] }
 0x64f   : > { %v4082_v53 = vadd.f32 %v4050_v33, %v3987_v60  ;;  %v3766_v25 = vsel %vm1856_vm9, %v3734_v10, %v3359_v1  ;;  %v3939_v56 = vadd.f32 %v7556_v29, %v3938_v40  ;;  %v8458_v33 = vld [vmem:[#allocation34_spill] sm:$0xff]  ;;  %v8461_v1 = vld [vmem:[#allocation77_spill] sm:$0xff] }
 0x650   : > { %v3798_v58 = vsel %vm1889_vm8, %v3766_v25, %v3487_v28  ;;  %v8455_v28 = vld [vmem:[#allocation38_spill] sm:$0xff]  ;;  %v3608_v50 = vsel %vm1691_vm3, %v3576_v61, %v8458_v33  ;;  %v4054_v33 = vld [vmem:[%s4414_s23 + $0xa0] sm:$0xff] }
 0x651   : > { %4114 = vst.msk [vmem:[%s7577_s14 + $0x80] sm:$0xff] %vm225_vm0, %v4082_v53  ;;  %v4066_v35 = vadd.f32 %v4034_v18, %v3939_v56  ;;  %4234 = vmatmul.msk.f32.gmra.mxu1 %vm1925_vm10, %v3798_v58  ;;  %v3639_v54 = vsel %vm1724_vm4, %v3607_v17, %v8455_v28  ;;  %v4052_v10 = vld [vmem:[%s4414_s23 + $0x90] sm:$0xff]  ;;  %v3577_v17 = vsel %vm225_vm0, %v4338_v16, %v8462_v24  ;;  %v8463_v28 = vld [vmem:[#allocation91_spill] sm:$0xff] }
 0x652   : > { %v3671_v47 = vsel %vm1757_vm6, %v3639_v54, %v8456_v38  ;;  %v3609_v54 = vsel %vm1691_vm3, %v3577_v17, %v8463_v28  ;;  %v8464_v38 = vld [vmem:[#allocation21_spill] sm:$0xff] }
 0x653   : > { %4098 = vst.msk [vmem:[%s7577_s14] sm:$0xff] %vm225_vm0, %v4066_v35  ;;  %3500 = vrot.lane.b32.xlu1 %v2525_v3, %s4357_s6  ;;  %3244 = vrot.lane.b32.xlu2 %v2461_v48, %s4355_s29  ;;  %v3703_v21 = vsel %vm1790_vm5, %v3671_v47, %v7144_v59  ;;  %v4036_v35 = vld [vmem:[%s4414_s23 + $0x10] sm:$0xff]  ;;  %v3641_v47 = vsel %vm1724_vm4, %v3609_v54, %v8464_v38 }
 0x654   : > { %3372 = vrot.lane.b32.xlu0 %v2493_v4, %s4356_s30  ;;  %v3735_v7 = vsel %vm1823_vm7, %v3703_v21, %v3233_v63  ;;  %v4055_v28 = vld [vmem:[%s4414_s23 + $0xa8] sm:$0xff] }
 0x655   : > { %v3521_v15 = vpop.permute.xlu1 %3520  ;;  %v3235_v51 = vpop.permute.xlu2 %3234 }
 0x656   : > { %v3393_v23 = vpop.permute.xlu0 %3392 }
 0x657   : > { %v3783_v32 = vsel %vm1856_vm9, %v3751_v52, %v3393_v23 }
 0x658   : > { %v3815_v39 = vsel %vm1889_vm8, %v3783_v32, %v3521_v15 }
 0x659   : > { %4251 = vmatmul.msk.f32.gmra.mxu3 %vm1925_vm10, %v3815_v39 }
 0x65c   : > { %v3989_v36 = vpop.f32.mrf.mxu3 }
 0x65d   : > { %v3267_v27 = vpop.permute.xlu1 %3266  ;;  %v3990_v34 = vadd.f32 %v7556_v29, %v3989_v36  ;;  %v3491_v42 = vpop.permute.xlu2 %3490  ;;  %v8465_v36 = vld [vmem:[#allocation11_spill] sm:$0xff] }
 0x65e   : > { %v3361_v9 = vpop.permute.xlu0 %3360  ;;  %v3941_v8 = vpop.f32.mrf.mxu1  ;;  %v3752_v63 = vsel %vm1823_vm7, %v7243_v57, %v3267_v27  ;;  %v3640_v57 = vsel %vm1724_vm4, %v3608_v50, %v8459_v6  ;;  %v4053_v27 = vld [vmem:[%s4414_s23 + $0x98] sm:$0xff] }
 0x65f   : > { %v4083_v19 = vadd.f32 %v4051_v13, %v3990_v34  ;;  %v3767_v30 = vsel %vm1856_vm9, %v3735_v7, %v3361_v9  ;;  %v3942_v43 = vadd.f32 %v7556_v29, %v3941_v8  ;;  %v3672_v60 = vsel %vm1757_vm6, %v3640_v57, %v8460_v37  ;;  %v8466_v34 = vld [vmem:[#allocation106_spill] sm:$0xff] }
 0x660   : > { %v3799_v49 = vsel %vm1889_vm8, %v3767_v30, %v3489_v26  ;;  %v3704_v40 = vsel %vm1790_vm5, %v3672_v60, %v8461_v1  ;;  %v3673_v13 = vsel %vm1757_vm6, %v3641_v47, %v8465_v36  ;;  %v4037_v30 = vld [vmem:[%s4414_s23 + $0x18] sm:$0xff]  ;;  %v4038_v60 = vld [vmem:[%s4414_s23 + $0x20] sm:$0xff]  ;;  %v4039_v36 = vld [vmem:[%s4414_s23 + $0x28] sm:$0xff] }
 0x661   : > { %4115 = vst.msk [vmem:[%s7577_s14 + $0x88] sm:$0xff] %vm225_vm0, %v4083_v19  ;;  %v4067_v11 = vadd.f32 %v4035_v45, %v3942_v43  ;;  %4235 = vmatmul.msk.f32.gmra.mxu1 %vm1925_vm10, %v3799_v49  ;;  %v3736_v25 = vsel %vm1823_vm7, %v3704_v40, %v3235_v51  ;;  %v4339_v1 = vld [vmem:[#allocation3 + $0x90] sm:$0xff] }
 0x662   : > { %v8467_v40 = vld [vmem:[#allocation76_spill] sm:$0xff] }
 0x663   : > { %4099 = vst.msk [vmem:[%s7577_s14 + $0x8] sm:$0xff] %vm225_vm0, %v4067_v11 }
 0x665   : > { %v3523_v59 = vpop.permute.xlu1 %3522  ;;  %v3237_v46 = vpop.permute.xlu2 %3236 }
 0x666   : > { %v3395_v14 = vpop.permute.xlu0 %3394 }
 0x667   : > { %v3784_v20 = vsel %vm1856_vm9, %v3752_v63, %v3395_v14 }
 0x668   : > { %v3816_v44 = vsel %vm1889_vm8, %v3784_v20, %v3523_v59 }
 0x669   : > { %4252 = vmatmul.msk.f32.gmra.mxu3 %vm1925_vm10, %v3816_v44 }
 0x66c   : > { %v3992_v26 = vpop.f32.mrf.mxu3 }
 0x66d   : > { %v3269_v18 = vpop.permute.xlu1 %3268  ;;  %v3993_v53 = vadd.f32 %v7556_v29, %v3992_v26  ;;  %v3493_v52 = vpop.permute.xlu2 %3492 }
 0x66e   : > { %v3363_v56 = vpop.permute.xlu0 %3362  ;;  %v3944_v58 = vpop.f32.mrf.mxu1  ;;  %v3753_v32 = vsel %vm1823_vm7, %v7325_v2, %v3269_v18  ;;  %v3578_v18 = vsel %vm225_vm0, %v4339_v1, %v8467_v40  ;;  %v8474_v1 = vld [vmem:[#allocation50_spill] sm:$0xff] }
 0x66f   : > { %v4084_v3 = vadd.f32 %v4052_v10, %v3993_v53  ;;  %v3768_v48 = vsel %vm1856_vm9, %v3736_v25, %v3363_v56  ;;  %v3945_v4 = vadd.f32 %v7556_v29, %v3944_v58  ;;  %v8468_v53 = vld [vmem:[#allocation67_spill] sm:$0xff]  ;;  %v8469_v58 = vld [vmem:[#allocation124_spill] sm:$0xff] }
 0x670   : > { %v3800_v15 = vsel %vm1889_vm8, %v3768_v48, %v3491_v42  ;;  %v3705_v42 = vsel %vm1790_vm5, %v3673_v13, %v8466_v34  ;;  %v3610_v25 = vsel %vm1691_vm3, %v3578_v18, %v8468_v53  ;;  %v8475_v18 = vld [vmem:[#allocation97_spill] sm:$0xff] }
 0x671   : > { %4116 = vst.msk [vmem:[%s7577_s14 + $0x90] sm:$0xff] %vm225_vm0, %v4084_v3  ;;  %v4068_v23 = vadd.f32 %v4036_v35, %v3945_v4  ;;  %4236 = vmatmul.msk.f32.gmra.mxu1 %vm1925_vm10, %v3800_v15  ;;  %v3737_v8 = vsel %vm1823_vm7, %v3705_v42, %v3237_v46  ;;  %v3642_v35 = vsel %vm1724_vm4, %v3610_v25, %v8469_v58  ;;  %v8470_v3 = vld [vmem:[#allocation75_spill] sm:$0xff]  ;;  %v8471_v4 = vld [vmem:[#allocation161_spill] sm:$0xff]  ;;  %v8476_v25 = vld [vmem:[#allocation20_spill] sm:$0xff] }
 0x672   : > { %v3674_v15 = vsel %vm1757_vm6, %v3642_v35, %v8471_v4  ;;  %v8477_v58 = vld [vmem:[#allocation37_spill] sm:$0xff] }
 0x673   : > { %4100 = vst.msk [vmem:[%s7577_s14 + $0x10] sm:$0xff] %vm225_vm0, %v4068_v23 }
 0x675   : > { %v3525_v51 = vpop.permute.xlu1 %3524  ;;  %v3239_v2 = vpop.permute.xlu2 %3238 }
 0x676   : > { %v3397_v39 = vpop.permute.xlu0 %3396 }
 0x677   : > { %v3785_v31 = vsel %vm1856_vm9, %v3753_v32, %v3397_v39 }
 0x678   : > { %v3817_v22 = vsel %vm1889_vm8, %v3785_v31, %v3525_v51 }
 0x679   : > { %4253 = vmatmul.msk.f32.gmra.mxu3 %vm1925_vm10, %v3817_v22 }
 0x67c   : > { %v3995_v21 = vpop.f32.mrf.mxu3 }
 0x67d   : > { %v3271_v7 = vpop.permute.xlu1 %3270  ;;  %v3996_v9 = vadd.f32 %v7556_v29, %v3995_v21  ;;  %v3273_v14 = vpop.permute.xlu2 %3272 }
 0x67e   : > { %v3365_v45 = vpop.permute.xlu0 %3364  ;;  %v3947_v19 = vpop.f32.mrf.mxu1  ;;  %v3754_v20 = vsel %vm1823_vm7, %v7321_v12, %v3271_v7 }
 0x67f   : > { %v4085_v43 = vadd.f32 %v4053_v27, %v3996_v9  ;;  %v3769_v49 = vsel %vm1856_vm9, %v3737_v8, %v3365_v45  ;;  %v3948_v11 = vadd.f32 %v7556_v29, %v3947_v19  ;;  %v8472_v19 = vld [vmem:[#allocation74_spill] sm:$0xff] }
 0x680   : > { %v3801_v59 = vsel %vm1889_vm8, %v3769_v49, %v3493_v52  ;;  %v3706_v52 = vsel %vm1790_vm5, %v3674_v15, %v7174_v62  ;;  %v4056_v49 = vld [vmem:[%s4414_s23 + $0xb0] sm:$0xff] }
 0x681   : > { %4117 = vst.msk [vmem:[%s7577_s14 + $0x98] sm:$0xff] %vm225_vm0, %v4085_v43  ;;  %v4069_v63 = vadd.f32 %v4037_v30, %v3948_v11  ;;  %4237 = vmatmul.msk.f32.gmra.mxu1 %vm1925_vm10, %v3801_v59  ;;  %v3738_v23 = vsel %vm1823_vm7, %v3706_v52, %v3239_v2 }
 0x683   : > { %4101 = vst.msk [vmem:[%s7577_s14 + $0x18] sm:$0xff] %vm225_vm0, %v4069_v63 }
 0x685   : > { %v3527_v46 = vpop.permute.xlu1 %3526  ;;  %v3529_v26 = vpop.permute.xlu2 %3528 }
 0x686   : > { %v3399_v44 = vpop.permute.xlu0 %3398 }
 0x687   : > { %v3786_v5 = vsel %vm1856_vm9, %v3754_v20, %v3399_v44  ;;  %v4040_v20 = vld [vmem:[%s4414_s23 + $0x30] sm:$0xff] }
 0x688   : > { %v3818_v55 = vsel %vm1889_vm8, %v3786_v5, %v3527_v46 }
 0x689   : > { %4254 = vmatmul.msk.f32.gmra.mxu3 %vm1925_vm10, %v3818_v55 }
 0x68c   : > { %v3998_v61 = vpop.f32.mrf.mxu3 }
 0x68d   : > { %v3367_v50 = vpop.permute.xlu1 %3366  ;;  %v3999_v6 = vadd.f32 %v7556_v29, %v3998_v61  ;;  %v3369_v62 = vpop.permute.xlu2 %3368 }
 0x68e   : > { %v3145_v57 = vpop.permute.xlu0 %3144  ;;  %v3950_v37 = vpop.f32.mrf.mxu1  ;;  %v3770_v39 = vsel %vm1856_vm9, %v3738_v23, %v3367_v50 }
 0x68f   : > { %v4086_v10 = vadd.f32 %v4054_v33, %v3999_v6  ;;  %v3951_v12 = vadd.f32 %v7556_v29, %v3950_v37  ;;  %v3723_v48 = vsel %vm1790_vm5, %v8470_v3, %v3145_v57  ;;  %v8473_v6 = vld [vmem:[#allocation119_spill] sm:$0xff] }
 0x690   : > { %v3755_v32 = vsel %vm1823_vm7, %v3723_v48, %v3273_v14  ;;  %v4057_v48 = vld [vmem:[%s4414_s23 + $0xb8] sm:$0xff] }
 0x691   : > { %4118 = vst.msk [vmem:[%s7577_s14 + $0xa0] sm:$0xff] %vm225_vm0, %v4086_v10  ;;  %v4070_v56 = vadd.f32 %v4038_v60, %v3951_v12  ;;  %v4340_v12 = vld [vmem:[#allocation3 + $0x170] sm:$0xff] }
 0x692   : > { %v3597_v40 = vsel %vm225_vm0, %v4340_v12, %v8474_v1 }
 0x693   : > { %4102 = vst.msk [vmem:[%s7577_s14 + $0x20] sm:$0xff] %vm225_vm0, %v4070_v56  ;;  %v3629_v53 = vsel %vm1691_vm3, %v3597_v40, %v8475_v18  ;;  %v4046_v18 = vld [vmem:[%s4414_s23 + $0x60] sm:$0xff] }
 0x694   : > { %v3661_v56 = vsel %vm1724_vm4, %v3629_v53, %v8476_v25 }
 0x695   : > { %v3401_v51 = vpop.permute.xlu1 %3400  ;;  %v3403_v42 = vpop.permute.xlu2 %3402  ;;  %v3693_v35 = vsel %vm1757_vm6, %v3661_v56, %v8477_v58  ;;  %v4063_v58 = vld [vmem:[%s4414_s23 + $0xe8] sm:$0xff] }
 0x696   : > { %v3787_v31 = vsel %vm1856_vm9, %v3755_v32, %v3401_v51  ;;  %v3495_v22 = vpop.permute.xlu0 %3494 }
 0x697   : > { %v3819_v16 = vsel %vm1889_vm8, %v3787_v31, %v3529_v26  ;;  %v3802_v24 = vsel %vm1889_vm8, %v3770_v39, %v3495_v22  ;;  %v4041_v39 = vld [vmem:[%s4414_s23 + $0x38] sm:$0xff] }
 0x698   : > { %4255 = vmatmul.msk.f32.gmra.mxu3 %vm1925_vm10, %v3819_v16  ;;  %4238 = vmatmul.msk.f32.gmra.mxu1 %vm1925_vm10, %v3802_v24 }
 0x69c   : > { %v4001_v17 = vpop.f32.mrf.mxu3 }
 0x69d   : > { %v3147_v54 = vpop.permute.xlu1 %3146  ;;  %v4002_v38 = vadd.f32 %v7556_v29, %v4001_v17  ;;  %v3149_v11 = vpop.permute.xlu2 %3148 }
 0x69e   : > { %v3241_v47 = vpop.permute.xlu0 %3240  ;;  %v3953_v2 = vpop.f32.mrf.mxu1  ;;  %v3724_v30 = vsel %vm1790_vm5, %v8472_v19, %v3147_v54  ;;  %v3725_v4 = vsel %vm1790_vm5, %v3693_v35, %v3149_v11 }
 0x69f   : > { %v4087_v13 = vadd.f32 %v4055_v28, %v4002_v38  ;;  %v3954_v21 = vadd.f32 %v7556_v29, %v3953_v2  ;;  %v3739_v34 = vsel %vm1823_vm7, %v7169_v0, %v3241_v47 }
 0x6a0   : > { %v3771_v9 = vsel %vm1856_vm9, %v3739_v34, %v3369_v62  ;;  %v4042_v34 = vld [vmem:[%s4414_s23 + $0x40] sm:$0xff] }
 0x6a1   : > { %4119 = vst.msk [vmem:[%s7577_s14 + $0xa8] sm:$0xff] %vm225_vm0, %v4087_v13  ;;  %v4071_v27 = vadd.f32 %v4039_v36, %v3954_v21  ;;  %v4058_v13 = vld [vmem:[%s4414_s23 + $0xc0] sm:$0xff] }
 0x6a3   : > { %4103 = vst.msk [vmem:[%s7577_s14 + $0x28] sm:$0xff] %vm225_vm0, %v4071_v27 }
 0x6a5   : > { %v3497_v7 = vpop.permute.xlu1 %3496  ;;  %v3499_v60 = vpop.permute.xlu2 %3498 }
 0x6a6   : > { %v3275_v8 = vpop.permute.xlu0 %3274  ;;  %v3803_v45 = vsel %vm1889_vm8, %v3771_v9, %v3497_v7 }
 0x6a7   : > { %4239 = vmatmul.msk.f32.gmra.mxu1 %vm1925_vm10, %v3803_v45  ;;  %v3756_v43 = vsel %vm1823_vm7, %v3724_v30, %v3275_v8  ;;  %v4059_v8 = vld [vmem:[%s4414_s23 + $0xc8] sm:$0xff] }
 0x6a8   : > { %v3788_v44 = vsel %vm1856_vm9, %v3756_v43, %v3403_v42  ;;  %v4043_v30 = vld [vmem:[%s4414_s23 + $0x48] sm:$0xff] }
 0x6ac   : > { %v4004_v0 = vpop.f32.mrf.mxu3 }
 0x6ad   : > { %v3243_v59 = vpop.permute.xlu1 %3242  ;;  %v4005_v63 = vadd.f32 %v7556_v29, %v4004_v0  ;;  %v3245_v17 = vpop.permute.xlu2 %3244 }
 0x6ae   : > { %v3531_v14 = vpop.permute.xlu0 %3530  ;;  %v3956_v46 = vpop.f32.mrf.mxu1  ;;  %v3740_v57 = vsel %vm1823_vm7, %v8473_v6, %v3243_v59  ;;  %v3741_v28 = vsel %vm1823_vm7, %v7207_v41, %v3245_v17  ;;  %v4060_v59 = vld [vmem:[%s4414_s23 + $0xd0] sm:$0xff]  ;;  %v4045_v6 = vld [vmem:[%s4414_s23 + $0x58] sm:$0xff] }
 0x6af   : > { %v4088_v5 = vadd.f32 %v4056_v49, %v4005_v63  ;;  %v3957_v55 = vadd.f32 %v7556_v29, %v3956_v46  ;;  %v3820_v61 = vsel %vm1889_vm8, %v3788_v44, %v3531_v14  ;;  %v4044_v46 = vld [vmem:[%s4414_s23 + $0x50] sm:$0xff]  ;;  %v4065_v17 = vld [vmem:[%s4414_s23 + $0xf8] sm:$0xff] }
 0x6b0   : > { %4256 = vmatmul.msk.f32.gmra.mxu3 %vm1925_vm10, %v3820_v61  ;;  %v4061_v61 = vld [vmem:[%s4414_s23 + $0xd8] sm:$0xff] }
 0x6b1   : > { %4120 = vst.msk [vmem:[%s7577_s14 + $0xb0] sm:$0xff] %vm225_vm0, %v4088_v5  ;;  %v4072_v33 = vadd.f32 %v4040_v20, %v3957_v55 }
 0x6b3   : > { %4104 = vst.msk [vmem:[%s7577_s14 + $0x30] sm:$0xff] %vm225_vm0, %v4072_v33 }
 0x6b5   : > { %v3277_v50 = vpop.permute.xlu1 %3276 }
 0x6b6   : > { %v3371_v37 = vpop.permute.xlu0 %3370  ;;  %v3757_v23 = vsel %vm1823_vm7, %v3725_v4, %v3277_v50  ;;  %v4047_v4 = vld [vmem:[%s4414_s23 + $0x68] sm:$0xff] }
 0x6b7   : > { %v3772_v26 = vsel %vm1856_vm9, %v3740_v57, %v3371_v37 }
 0x6b8   : > { %v3804_v10 = vsel %vm1889_vm8, %v3772_v26, %v3499_v60 }
 0x6b9   : > { %4240 = vmatmul.msk.f32.gmra.mxu1 %vm1925_vm10, %v3804_v10  ;;  %v4062_v10 = vld [vmem:[%s4414_s23 + $0xe0] sm:$0xff] }
 0x6bc   : > { %v4007_v3 = vpop.f32.mrf.mxu3 }
 0x6bd   : > { %v3533_v15 = vpop.permute.xlu1 %3532  ;;  %v4008_v52 = vadd.f32 %v7556_v29, %v4007_v3 }
 0x6be   : > { %v3405_v51 = vpop.permute.xlu0 %3404  ;;  %v3959_v32 = vpop.f32.mrf.mxu1 }
 0x6bf   : > { %v4089_v31 = vadd.f32 %v4057_v48, %v4008_v52  ;;  %v3789_v22 = vsel %vm1856_vm9, %v3757_v23, %v3405_v51  ;;  %v3960_v16 = vadd.f32 %v7556_v29, %v3959_v32  ;;  %v4064_v51 = vld [vmem:[%s4414_s23 + $0xf0] sm:$0xff] }
 0x6c0   : > { %v3821_v24 = vsel %vm1889_vm8, %v3789_v22, %v3533_v15  ;;  %v4048_v22 = vld [vmem:[%s4414_s23 + $0x70] sm:$0xff] }
 0x6c1   : > { %4121 = vst.msk [vmem:[%s7577_s14 + $0xb8] sm:$0xff] %vm225_vm0, %v4089_v31  ;;  %v4073_v62 = vadd.f32 %v4041_v39, %v3960_v16  ;;  %4257 = vmatmul.msk.f32.gmra.mxu3 %vm1925_vm10, %v3821_v24 }
 0x6c3   : > { %4105 = vst.msk [vmem:[%s7577_s14 + $0x38] sm:$0xff] %vm225_vm0, %v4073_v62 }
 0x6c5   : > { %v3501_v38 = vpop.permute.xlu1 %3500 }
 0x6c6   : > { %v3373_v54 = vpop.permute.xlu0 %3372 }
 0x6c7   : > { %v3773_v47 = vsel %vm1856_vm9, %v3741_v28, %v3373_v54 }
 0x6c8   : > { %v3805_v2 = vsel %vm1889_vm8, %v3773_v47, %v3501_v38  ;;  %v4049_v38 = vld [vmem:[%s4414_s23 + $0x78] sm:$0xff] }
 0x6c9   : > { %4241 = vmatmul.msk.f32.gmra.mxu1 %vm1925_vm10, %v3805_v2 }
 0x6cc   : > { %v4010_v36 = vpop.f32.mrf.mxu3 }
 0x6cd   : > { %v4011_v21 = vadd.f32 %v7556_v29, %v4010_v36 }
 0x6ce   : > { %v3962_v27 = vpop.f32.mrf.mxu1 }
 0x6cf   : > { %v4090_v42 = vadd.f32 %v4058_v13, %v4011_v21  ;;  %v3963_v41 = vadd.f32 %v7556_v29, %v3962_v27 }
 0x6d1   : > { %4122 = vst.msk [vmem:[%s7577_s14 + $0xc0] sm:$0xff] %vm225_vm0, %v4090_v42  ;;  %v4074_v7 = vadd.f32 %v4042_v34, %v3963_v41 }
 0x6d3   : > { %4106 = vst.msk [vmem:[%s7577_s14 + $0x40] sm:$0xff] %vm225_vm0, %v4074_v7 }
 0x6dc   : > { %v4013_v9 = vpop.f32.mrf.mxu3 }
 0x6dd   : > { %v4014_v45 = vadd.f32 %v7556_v29, %v4013_v9 }
 0x6de   : > { %v3965_v19 = vpop.f32.mrf.mxu1 }
 0x6df   : > { %v4091_v43 = vadd.f32 %v4059_v8, %v4014_v45  ;;  %v3966_v0 = vadd.f32 %v7556_v29, %v3965_v19 }
 0x6e1   : > { %4123 = vst.msk [vmem:[%s7577_s14 + $0xc8] sm:$0xff] %vm225_vm0, %v4091_v43  ;;  %v4075_v49 = vadd.f32 %v4043_v30, %v3966_v0 }
 0x6e3   : > { %4107 = vst.msk [vmem:[%s7577_s14 + $0x48] sm:$0xff] %vm225_vm0, %v4075_v49 }
 0x6ec   : > { %v4016_v11 = vpop.f32.mrf.mxu3 }
 0x6ed   : > { %v4017_v63 = vadd.f32 %v7556_v29, %v4016_v11 }
 0x6ee   : > { %v3968_v14 = vpop.f32.mrf.mxu1 }
 0x6ef   : > { %v4092_v20 = vadd.f32 %v4060_v59, %v4017_v63  ;;  %v3969_v44 = vadd.f32 %v7556_v29, %v3968_v14 }
 0x6f1   : > { %4124 = vst.msk [vmem:[%s7577_s14 + $0xd0] sm:$0xff] %vm225_vm0, %v4092_v20  ;;  %v4076_v5 = vadd.f32 %v4044_v46, %v3969_v44 }
 0x6f3   : > { %4108 = vst.msk [vmem:[%s7577_s14 + $0x50] sm:$0xff] %vm225_vm0, %v4076_v5 }
 0x6fc   : > { %v4019_v55 = vpop.f32.mrf.mxu3 }
 0x6fd   : > { %v4020_v33 = vadd.f32 %v7556_v29, %v4019_v55 }
 0x6fe   : > { %v3971_v50 = vpop.f32.mrf.mxu1 }
 0x6ff   : > { %v4093_v57 = vadd.f32 %v4061_v61, %v4020_v33  ;;  %v3972_v37 = vadd.f32 %v7556_v29, %v3971_v50 }
 0x701   : > { %4125 = vst.msk [vmem:[%s7577_s14 + $0xd8] sm:$0xff] %vm225_vm0, %v4093_v57  ;;  %v4077_v60 = vadd.f32 %v4045_v6, %v3972_v37 }
 0x703   : > { %4109 = vst.msk [vmem:[%s7577_s14 + $0x58] sm:$0xff] %vm225_vm0, %v4077_v60 }
 0x70c   : > { %v4022_v26 = vpop.f32.mrf.mxu3 }
 0x70d   : > { %v4023_v12 = vadd.f32 %v7556_v29, %v4022_v26 }
 0x70f   : > { %v4094_v1 = vadd.f32 %v4062_v10, %v4023_v12 }
 0x711   : > { %4126 = vst.msk [vmem:[%s7577_s14 + $0xe0] sm:$0xff] %vm225_vm0, %v4094_v1 }
 0x715   : > { %v3974_v40 = vpop.f32.mrf.mxu1 }
 0x716   : > { %v3975_v53 = vadd.f32 %v7556_v29, %v3974_v40 }
 0x718   : > { %v4078_v25 = vadd.f32 %v4046_v18, %v3975_v53 }
 0x71a   : > { %4110 = vst.msk [vmem:[%s7577_s14 + $0x60] sm:$0xff] %vm225_vm0, %v4078_v25 }
 0x71b   : > { %v4025_v56 = vpop.f32.mrf.mxu3 }
 0x71c   : > { %v4026_v35 = vadd.f32 %v7556_v29, %v4025_v56 }
 0x71e   : > { %v4095_v3 = vadd.f32 %v4063_v58, %v4026_v35 }
 0x720   : > { %4127 = vst.msk [vmem:[%s7577_s14 + $0xe8] sm:$0xff] %vm225_vm0, %v4095_v3 }
 0x724   : > { %v3977_v48 = vpop.f32.mrf.mxu1 }
 0x725   : > { %v3978_v15 = vadd.f32 %v7556_v29, %v3977_v48 }
 0x727   : > { %v4079_v52 = vadd.f32 %v4047_v4, %v3978_v15 }
 0x729   : > { %4111 = vst.msk [vmem:[%s7577_s14 + $0x68] sm:$0xff] %vm225_vm0, %v4079_v52 }
 0x733   : > { %v4028_v23 = vpop.f32.mrf.mxu3 }
 0x734   : > { %v4029_v32 = vadd.f32 %v7556_v29, %v4028_v23 }
 0x736   : > { %v4096_v39 = vadd.f32 %v4064_v51, %v4029_v32  ;;  %v3980_v31 = vpop.f32.mrf.mxu1 }
 0x737   : > { %v3981_v16 = vadd.f32 %v7556_v29, %v3980_v31 }
 0x738   : > { %4128 = vst.msk [vmem:[%s7577_s14 + $0xf0] sm:$0xff] %vm225_vm0, %v4096_v39 }
 0x739   : > { %v4080_v24 = vadd.f32 %v4048_v22, %v3981_v16 }
 0x73b   : > { %4112 = vst.msk [vmem:[%s7577_s14 + $0x70] sm:$0xff] %vm225_vm0, %v4080_v24 }
 0x744   : > { %v4031_v62 = vpop.f32.mrf.mxu3 }
 0x745   : > { %v4032_v28 = vadd.f32 %v7556_v29, %v4031_v62 }
 0x746   : > { %v3983_v54 = vpop.f32.mrf.mxu1 }
 0x747   : > { %v4097_v47 = vadd.f32 %v4065_v17, %v4032_v28  ;;  %v3984_v2 = vadd.f32 %v7556_v29, %v3983_v54 }
 0x749   : > { %4129 = vst.msk [vmem:[%s7577_s14 + $0xf8] sm:$0xff] %vm225_vm0, %v4097_v47  ;;  %v4081_v36 = vadd.f32 %v4049_v38, %v3984_v2 }
 0x74b   : > { %4113 = vst.msk [vmem:[%s7577_s14 + $0x78] sm:$0xff] %vm225_vm0, %v4081_v36 }
 0x74c PF: > { %s15_s18 = sadd.s32 1, %s4347_s18  }
 0x74d   : > { %p12_p4 = scmp.ge.s32.totalorder %s15_s18, 4  }
 0x74f   :  { %14 = sbr.rel (!%p12_p4) target bundleno = 1 (0x1), region = 76 }

</bundles_post_ra>
